<compile_context>
chip_gen: v7x
topology: tpu7x:2x2x1
jax: 0.10.0
libtpu: 0.0.40
codegen_flags: <defaults>
</compile_context>

<pallas_src>
import functools
import math

import jax
import jax.numpy as jnp
from jax.experimental import pallas as pl
from jax.experimental.pallas import tpu as pltpu


# Scoped-VMEM budget: above the 16/32 MiB defaults, below v7x's 64 MiB physical.
_VMEM_LIMIT = 48 * 1024 * 1024


# ----------------------------- pallas plumbing ------------------------------

def _const_spec(a):
    """Full-array block, identical for every grid step (weights, embeddings)."""
    nd = a.ndim
    return pl.BlockSpec(a.shape, lambda l, nd=nd: (0,) * nd)


def _stacked_spec(a):
    """(1, ...) slice of a layer-stacked array, selected by the layer axis."""
    nd = a.ndim
    return pl.BlockSpec((1,) + a.shape[1:], lambda l, nd=nd: (l,) + (0,) * (nd - 1))


def _run1(kernel, out_shape, *args):
    """Single-step pallas_call: every operand is one full VMEM block."""
    return pl.pallas_call(
        kernel,
        out_shape=out_shape,
        grid=(1,),
        in_specs=[_const_spec(a) for a in args],
        out_specs=pl.BlockSpec(out_shape.shape,
                               lambda l, nd=len(out_shape.shape): (0,) * nd),
        compiler_params=pltpu.CompilerParams(vmem_limit_bytes=_VMEM_LIMIT),
    )(*args)


# -------------------------- in-kernel math helpers ---------------------------

def _mm(x, w, b=None):
    """bf16 MXU matmul with f32 accumulation (weights are stored bf16)."""
    y = jnp.dot(x.astype(jnp.bfloat16), w.astype(jnp.bfloat16),
                preferred_element_type=jnp.float32)
    if b is not None:
        y = y + b
    return y


def _gelu(x):
    # TODO(synk): tanh-approx GELU; PyTorch nn.GELU() default is the exact erf GELU.
    c = 0.7978845608028654  # sqrt(2/pi)
    return 0.5 * x * (1.0 + jnp.tanh(c * (x + 0.044715 * x * x * x)))


def _layernorm(x, g, b, eps):
    mu = jnp.mean(x, axis=-1, keepdims=True)
    var = jnp.mean((x - mu) ** 2, axis=-1, keepdims=True)
    return (x - mu) * jax.lax.rsqrt(var + eps) * g + b


def _l2norm(x, eps):          # == F.normalize(x, dim=-1)
    n = jnp.sqrt(jnp.sum(x * x, axis=-1, keepdims=True))
    return x * pl.reciprocal(jnp.maximum(n, eps), approx=True)


def _mha(x, wqkv, bqkv, wo, bo, mask_add, *, heads):
    """Fused multi-head self-attention on the full (B, S, D) batch slab.

    wqkv : (D, 3D) fused Q|K|V weights (bf16); 1/sqrt(hd) pre-folded into Q.
    bqkv : (1, 3D) f32.   wo : (D, D) bf16.   bo : (1, D) f32.
    mask_add : (B, 1, S) additive key mask (f32) or None (vision path).
    """
    bsz, seq, d = x.shape
    hd = d // heads
    x2 = x.reshape(bsz * seq, d).astype(jnp.bfloat16)
    qkv = (jnp.dot(x2, wqkv.astype(jnp.bfloat16),
                   preferred_element_type=jnp.float32) + bqkv)       # (B*S, 3D)
    qkv = qkv.reshape(bsz, seq, 3 * d)

    # Head-major stacking onto the batch dim: (H*B, S, hd).
    def _heads(base):
        return jnp.concatenate(
            [qkv[:, :, base + h * hd: base + (h + 1) * hd] for h in range(heads)],
            axis=0)

    q = _heads(0).astype(jnp.bfloat16)
    k = _heads(d).astype(jnp.bfloat16)
    v = _heads(2 * d).astype(jnp.bfloat16)

    # Batched scores over the merged (head, batch) dim; scale folded into Q.
    s = jnp.einsum('bqd,bkd->bqk', q, k,
                   preferred_element_type=jnp.float32)               # (H*B, S, S)
    if mask_add is not None:
        s = s + jnp.concatenate([mask_add] * heads, axis=0)          # (H*B, 1, S)
    s = s - jnp.max(s, axis=-1, keepdims=True)
    p = jnp.exp(s)
    p = p * pl.reciprocal(jnp.sum(p, axis=-1, keepdims=True), approx=True)

    o = jnp.einsum('bqk,bkd->bqd', p.astype(jnp.bfloat16), v,
                   preferred_element_type=jnp.float32)               # (H*B, S, hd)
    # Concatenate heads back on the feature dim, then ONE output projection.
    o = jnp.concatenate([o[h * bsz:(h + 1) * bsz] for h in range(heads)], axis=-1)
    out = _mm(o.reshape(bsz * seq, d), wo, bo)
    return out.reshape(bsz, seq, d)


# --------------------------------- kernels -----------------------------------

def _patch_embed_kernel(patches_ref, pw_ref, pb_ref, pos_ref, o_ref):
    # patches: (B, NP, C*P*P) -> patch embeddings + positional embedding.
    b, npatch, cpp = patches_ref.shape
    d = pw_ref.shape[-1]
    pe = _mm(patches_ref[...].reshape(b * npatch, cpp), pw_ref[...], pb_ref[...])
    o_ref[...] = (pe.reshape(b, npatch, d) + pos_ref[...]).astype(o_ref.dtype)


def _vit_stack_kernel(x_ref, ln1_g, ln1_b, wqkv, bqkv, wo, bo,
                      ln2_g, ln2_b, w1, b1, w2, b2, post_g, post_b,
                      o_ref, feat_ref, *, heads, eps):
    """Pre-LN ViT encoder.  Grid = (layers,); activation resident in o_ref."""
    layer = pl.program_id(0)
    last = pl.num_programs(0) - 1

    @pl.when(layer == 0)
    def _():
        o_ref[...] = x_ref[...].astype(o_ref.dtype)

    x = o_ref[...].astype(jnp.float32)                  # (B, S, D), stays in VMEM
    bsz, seq, d = x.shape

    h = _layernorm(x, ln1_g[0], ln1_b[0], eps)
    x = x + _mha(h, wqkv[0], bqkv[0], wo[0], bo[0], None, heads=heads)
    h = _layernorm(x, ln2_g[0], ln2_b[0], eps)
    h = _mm(_gelu(_mm(h.reshape(bsz * seq, d), w1[0], b1[0])), w2[0], b2[0])
    x = x + h.reshape(bsz, seq, d)

    @pl.when(layer != last)
    def _():
        o_ref[...] = x.astype(o_ref.dtype)

    @pl.when(layer == last)
    def _():
        y = _layernorm(x, post_g[...], post_b[...], eps)     # fused post-LN
        o_ref[...] = y.astype(o_ref.dtype)
        # fused CLS pool + F.normalize  (valid for method in {'second','third',default})
        feat_ref[...] = _l2norm(y[:, 0, :], 1e-12).astype(feat_ref.dtype)


def _bert_stack_kernel(x_ref, mask_ref, emb_g, emb_b,
                       ln1_g, ln1_b, wqkv, bqkv, wo, bo,
                       ln2_g, ln2_b, w1, b1, w2, b2,
                       o_ref, feat_ref, *, heads, eps):
    """Post-LN BERT encoder.  Grid = (layers,); activation resident in o_ref."""
    layer = pl.program_id(0)
    last = pl.num_programs(0) - 1

    @pl.when(layer == 0)
    def _():
        # Fused BertEmbeddings LayerNorm.
        o_ref[...] = _layernorm(x_ref[...].astype(jnp.float32),
                                emb_g[...], emb_b[...], eps).astype(o_ref.dtype)

    x = o_ref[...].astype(jnp.float32)                  # (B, S, D)
    bsz, seq, d = x.shape

    a = _mha(x, wqkv[0], bqkv[0], wo[0], bo[0], mask_ref[...], heads=heads)
    x = _layernorm(x + a, ln1_g[0], ln1_b[0], eps)
    h = _mm(_gelu(_mm(x.reshape(bsz * seq, d), w1[0], b1[0])), w2[0], b2[0])
    x = _layernorm(x + h.reshape(bsz, seq, d), ln2_g[0], ln2_b[0], eps)
    o_ref[...] = x.astype(o_ref.dtype)

    @pl.when(layer == last)
    def _():
        feat_ref[...] = _l2norm(x[:, 0, :], 1e-12).astype(feat_ref.dtype)


def _l2norm_kernel(x_ref, o_ref, *, eps):               # fallback (method='first')
    o_ref[...] = _l2norm(x_ref[...].astype(jnp.float32), eps).astype(o_ref.dtype)


def _proj_l2norm_kernel(x_ref, w_ref, b_ref, o_ref, *, eps):   # method='concat'
    y = _mm(x_ref[...], w_ref[...], b_ref[...])
    o_ref[...] = _l2norm(y, eps).astype(o_ref.dtype)


# --------------------------- encoder-stack wrappers ---------------------------

def _vit_stack(x_emb, vp, *, heads):
    b, s, d = x_emb.shape
    weights = (vp["ln1_g"], vp["ln1_b"], vp["wqkv"], vp["bqkv"], vp["wo"],
               vp["bo"], vp["ln2_g"], vp["ln2_b"], vp["w1"], vp["b1"],
               vp["w2"], vp["b2"])
    n_layers = vp["wqkv"].shape[0]
    return pl.pallas_call(
        functools.partial(_vit_stack_kernel, heads=heads, eps=1e-5),
        out_shape=(jax.ShapeDtypeStruct((b, s, d), jnp.float32),
                   jax.ShapeDtypeStruct((b, d), jnp.float32)),
        grid=(n_layers,),
        in_specs=[_const_spec(x_emb)]
                 + [_stacked_spec(a) for a in weights]
                 + [_const_spec(vp["post_ln_g"]), _const_spec(vp["post_ln_b"])],
        out_specs=(pl.BlockSpec((b, s, d), lambda l: (0, 0, 0)),
                   pl.BlockSpec((b, d), lambda l: (0, 0))),
        compiler_params=pltpu.CompilerParams(
            dimension_semantics=("arbitrary",),
            vmem_limit_bytes=_VMEM_LIMIT),
    )(x_emb, *weights, vp["post_ln_g"], vp["post_ln_b"])


def _bert_stack(x_emb, mask_add, tp, *, heads):
    b, s, d = x_emb.shape
    weights = (tp["ln1_g"], tp["ln1_b"], tp["wqkv"], tp["bqkv"], tp["wo"],
               tp["bo"], tp["ln2_g"], tp["ln2_b"], tp["w1"], tp["b1"],
               tp["w2"], tp["b2"])
    n_layers = tp["wqkv"].shape[0]
    return pl.pallas_call(
        functools.partial(_bert_stack_kernel, heads=heads, eps=1e-12),
        out_shape=(jax.ShapeDtypeStruct((b, s, d), jnp.float32),
                   jax.ShapeDtypeStruct((b, d), jnp.float32)),
        grid=(n_layers,),
        in_specs=[_const_spec(x_emb), _const_spec(mask_add),
                  _const_spec(tp["emb_ln_g"]), _const_spec(tp["emb_ln_b"])]
                 + [_stacked_spec(a) for a in weights],
        out_specs=(pl.BlockSpec((b, s, d), lambda l: (0, 0, 0)),
                   pl.BlockSpec((b, d), lambda l: (0, 0))),
        compiler_params=pltpu.CompilerParams(
            dimension_semantics=("arbitrary",),
            vmem_limit_bytes=_VMEM_LIMIT),
    )(x_emb, mask_add, tp["emb_ln_g"], tp["emb_ln_b"], *weights)


# ----------------------------- model (JAX glue) -------------------------------

def vision_model(params, pixel_values, *, num_heads):
    b, c, hh, ww = pixel_values.shape
    cpp = params["patch_w"].shape[0]
    p = int(round(math.sqrt(cpp // c)))
    d = params["cls"].shape[-1]
    nh, nw = hh // p, ww // p
    npatch = nh * nw
    seq = npatch + 1

    # Conv2d(kernel=stride=patch) as im2col + matmul.
    # TODO(synk): at real image sizes fold the im2col into the patch-embed DMA
    # (Element index_map) to avoid an extra HBM pass over the pixels.
    patches = (pixel_values.reshape(b, c, nh, p, nw, p)
               .transpose(0, 2, 4, 1, 3, 5)
               .reshape(b, npatch, cpp))
    pos = params["pos"].reshape(-1, d)[:seq]             # (S, D)
    pos_patch = pos[1:]                                   # (NP, D)

    pe = _run1(_patch_embed_kernel,
               jax.ShapeDtypeStruct((b, npatch, d), jnp.float32),
               patches, params["patch_w"], params["patch_b"], pos_patch)

    cls_tok = params["cls"] + pos[0].reshape(1, 1, d)     # (1, 1, D)
    x = jnp.concatenate([jnp.broadcast_to(cls_tok, (b, 1, d)), pe], axis=1)

    hidden, cls_feat = _vit_stack(x, params, heads=num_heads)
    return hidden, cls_feat                               # last_hidden_state, normalized CLS


def text_encoder(params, input_ids, attention_mask, *, num_heads):
    b, l = input_ids.shape
    # Embedding lookups are gathers -> kept in JAX glue.
    x = (jnp.take(params["word_emb"], input_ids, axis=0)
         + params["pos_emb"][None, :l, :]
         + params["type_emb"][0][None, None, :])          # token_type_ids == 0
    # Additive key mask kept tiny as (B, 1, L) f32; broadcast inside the kernel.
    mask_add = ((1.0 - attention_mask.astype(jnp.float32)) * -1e9).reshape(b, 1, l)
    hidden, cls_feat = _bert_stack(x, mask_add, params, heads=num_heads)
    return hidden, cls_feat


def blip1_wrapper_forward(params, pixel_values, input_ids, attention_mask,
                          task_ids, *, num_heads, method="third"):
    # ---- encode_image ----
    patch_tokens, cls_feat = vision_model(params["vision"], pixel_values,
                                          num_heads=num_heads)
    d = patch_tokens.shape[-1]
    task_embeds = jnp.stack(
        [jnp.take(t, task_ids, axis=0) for t in params["task_embeddings"]], axis=1)

    if method == "first":
        x = jnp.concatenate([task_embeds, patch_tokens], axis=1)
        pooled = x[:, 0, :]
        image_features = _run1(functools.partial(_l2norm_kernel, eps=1e-12),
                               jax.ShapeDtypeStruct(pooled.shape, jnp.float32),
                               pooled)
    elif method == "concat":
        pooled = patch_tokens[:, 0, :]
        task_mean = jnp.mean(task_embeds, axis=1)
        cat = jnp.concatenate([pooled, task_mean], axis=-1)
        image_features = _run1(functools.partial(_proj_l2norm_kernel, eps=1e-12),
                               jax.ShapeDtypeStruct((cat.shape[0], d), jnp.float32),
                               cat, params["project"]["w"], params["project"]["b"])
    else:
        # 'second' / 'third' / default: x[:, 0, :] == patch_tokens[:, 0, :],
        # so the fused CLS-pool + L2-norm from the vision stack is the answer.
        image_features = cls_feat

    # ---- encode_text ----
    _, text_features = text_encoder(params["text"], input_ids, attention_mask,
                                    num_heads=num_heads)
    return image_features, text_features


# ------------------------------ parameter init --------------------------------

def init_params(key, *, c=3, patch=8, d=32, num_heads=4, mlp=64,
                vision_layers=2, text_layers=2, vocab=100, max_pos=32,
                num_tasks=3, num_embeds=2, num_patches=4):
    keys = iter(jax.random.split(key, 1024))
    bf16 = jnp.bfloat16
    hd = d // num_heads
    scale = 1.0 / math.sqrt(hd)            # folded into the Q projection

    def nrm(shape, s=0.02):
        return jax.random.normal(next(keys), shape, jnp.float32) * s

    def stacked_blocks(n):
        wq, bq = nrm((n, d, d)), nrm((n, 1, d))
        wk, bk = nrm((n, d, d)), nrm((n, 1, d))
        wv, bv = nrm((n, d, d)), nrm((n, 1, d))
        wo, bo = nrm((n, d, d)), nrm((n, 1, d))
        w1, b1 = nrm((n, d, mlp)), nrm((n, 1, mlp))
        w2, b2 = nrm((n, mlp, d)), nrm((n, 1, d))
        wqkv = jnp.concatenate([wq * scale, wk, wv], axis=-1)      # (n, D, 3D)
        bqkv = jnp.concatenate([bq * scale, bk, bv], axis=-1)      # (n, 1, 3D)
        return dict(
            ln1_g=jnp.ones((n, 1, d), jnp.float32),
            ln1_b=jnp.zeros((n, 1, d), jnp.float32),
            ln2_g=jnp.ones((n, 1, d), jnp.float32),
            ln2_b=jnp.zeros((n, 1, d), jnp.float32),
            wqkv=wqkv.astype(bf16), bqkv=bqkv,
            wo=wo.astype(bf16), bo=bo,
            w1=w1.astype(bf16), b1=b1,
            w2=w2.astype(bf16), b2=b2)

    seq = num_patches + 1
    vision = dict(patch_w=nrm((c * patch * patch, d)).astype(bf16),
                  patch_b=nrm((1, d)),
                  cls=nrm((1, 1, d)), pos=nrm((1, seq, d)),
                  post_ln_g=jnp.ones((1, d), jnp.float32),
                  post_ln_b=jnp.zeros((1, d), jnp.float32),
                  **stacked_blocks(vision_layers))
    text = dict(word_emb=nrm((vocab, d)), pos_emb=nrm((max_pos, d)),
                type_emb=nrm((2, d)),
                emb_ln_g=jnp.ones((1, d), jnp.float32),
                emb_ln_b=jnp.zeros((1, d), jnp.float32),
                **stacked_blocks(text_layers))
    task_embeddings = [nrm((num_tasks, d)) for _ in range(num_embeds)]
    project = dict(w=nrm((2 * d, d)).astype(bf16), b=nrm((1, d)))
    return dict(vision=vision, text=text, task_embeddings=task_embeddings,
                project=project)


# ----------------------------------- main --------------------------------------

if __name__ == "__main__":
    B, C, H, W = 2, 3, 16, 16          # pixel_values (NCHW)
    P, D, HEADS = 8, 32, 4             # patch size / embed_dim / heads
    L, VOCAB = 8, 100                  # text seq / vocab
    NUM_TASKS, NUM_EMBEDS = 3, 2

    key = jax.random.PRNGKey(0)
    kp, kx, kt = jax.random.split(key, 3)

    params = init_params(kp, c=C, patch=P, d=D, num_heads=HEADS, mlp=64,
                         vision_layers=2, text_layers=2, vocab=VOCAB,
                         max_pos=32, num_tasks=NUM_TASKS, num_embeds=NUM_EMBEDS,
                         num_patches=(H // P) * (W // P))

    pixel_values = jax.random.normal(kx, (B, C, H, W), jnp.float32)
    input_ids = jax.random.randint(kt, (B, L), 0, VOCAB)
    attention_mask = jnp.array([[1] * L, [1] * (L - 2) + [0, 0]], jnp.int32)
    task_ids = jnp.array([0, 1], jnp.int32)

    fwd = jax.jit(functools.partial(blip1_wrapper_forward,
                                    num_heads=HEADS, method="third"))
    image_features, text_features = fwd(params, pixel_values, input_ids,
                                        attention_mask, task_ids)
    jax.block_until_ready((image_features, text_features))

    assert image_features.shape == (B, D) and text_features.shape == (B, D)
    assert bool(jnp.all(jnp.isfinite(image_features)))
    assert bool(jnp.all(jnp.isfinite(text_features)))
    print("KERNEL_OK")
</pallas_src>

<mosaic_0001>
module attributes {stable_mosaic.version = 11 : i64} {
  func.func @_patch_embed_kernel(%arg0: i32, %arg1: memref<2x4x192xf32, #tpu.memory_space<vmem>>, %arg2: memref<192x32xbf16, #tpu.memory_space<vmem>>, %arg3: memref<1x32xf32, #tpu.memory_space<vmem>>, %arg4: memref<4x32xf32, #tpu.memory_space<vmem>>, %arg5: memref<2x4x32xf32, #tpu.memory_space<vmem>>) attributes {dimension_semantics = [#tpu.dimension_semantics<arbitrary>], iteration_bounds = array<i64: 1>, scalar_prefetch = 0 : i64, scratch_operands = 0 : i64, tpu.core_type = #tpu.core_type<tc>, window_params = [{pipeline_mode = #tpu.pipeline_mode<synchronous>, transform_indices = @transform_0, window_bounds = array<i64: 2, 4, 192>}, {pipeline_mode = #tpu.pipeline_mode<synchronous>, transform_indices = @transform_1, window_bounds = array<i64: 192, 32>}, {pipeline_mode = #tpu.pipeline_mode<synchronous>, transform_indices = @transform_2, window_bounds = array<i64: 1, 32>}, {pipeline_mode = #tpu.pipeline_mode<synchronous>, transform_indices = @transform_3, window_bounds = array<i64: 4, 32>}, {pipeline_mode = #tpu.pipeline_mode<synchronous>, transform_indices = @transform_4, window_bounds = array<i64: 2, 4, 32>}]} {
    %c0 = arith.constant 0 : index
    %c0_0 = arith.constant 0 : index
    %c0_1 = arith.constant 0 : index
    %0 = vector.load %arg1[%c0, %c0_0, %c0_1] : memref<2x4x192xf32, #tpu.memory_space<vmem>>, vector<2x4x192xf32>
    %1 = vector.shape_cast %0 : vector<2x4x192xf32> to vector<8x192xf32>
    %c0_2 = arith.constant 0 : index
    %c0_3 = arith.constant 0 : index
    %2 = vector.load %arg2[%c0_2, %c0_3] : memref<192x32xbf16, #tpu.memory_space<vmem>>, vector<192x32xbf16>
    %c0_4 = arith.constant 0 : index
    %c0_5 = arith.constant 0 : index
    %3 = vector.load %arg3[%c0_4, %c0_5] : memref<1x32xf32, #tpu.memory_space<vmem>>, vector<1x32xf32>
    %4 = arith.truncf %1 : vector<8x192xf32> to vector<8x192xbf16>
    %cst = arith.constant dense<0.000000e+00> : vector<8x32xf32>
    %5 = tpu.matmul %4, %2, %cst {dimension_numbers = #tpu.dot_dimension_numbers<[1], [0], [0], [1], [0, 0, 1, 1], [], []>} : vector<8x192xbf16>, vector<192x32xbf16>, vector<8x32xf32> -> vector<8x32xf32>
    %6 = vector.broadcast %3 : vector<1x32xf32> to vector<8x32xf32>
    %7 = arith.addf %5, %6 : vector<8x32xf32>
    %8 = vector.shape_cast %7 : vector<8x32xf32> to vector<2x4x32xf32>
    %c0_6 = arith.constant 0 : index
    %c0_7 = arith.constant 0 : index
    %9 = vector.load %arg4[%c0_6, %c0_7] : memref<4x32xf32, #tpu.memory_space<vmem>>, vector<4x32xf32>
    %10 = vector.shape_cast %9 : vector<4x32xf32> to vector<1x4x32xf32>
    %11 = vector.broadcast %10 : vector<1x4x32xf32> to vector<2x4x32xf32>
    %12 = arith.addf %8, %11 : vector<2x4x32xf32>
    %c0_8 = arith.constant 0 : index
    %c0_9 = arith.constant 0 : index
    %c0_10 = arith.constant 0 : index
    %13 = vector.load %arg5[%c0_8, %c0_9, %c0_10] : memref<2x4x32xf32, #tpu.memory_space<vmem>>, vector<2x4x32xf32>
    tpu.vector_store %arg5[%c0_8, %c0_9, %c0_10], %12 {strides = array<i32>} : memref<2x4x32xf32, #tpu.memory_space<vmem>>, vector<2x4x32xf32>,
    return
  }
  func.func @transform_0(%arg0: i32) -> (i32, i32, i32) {
    %c0_i32 = arith.constant 0 : i32
    %c0_i32_0 = arith.constant 0 : i32
    %c0_i32_1 = arith.constant 0 : i32
    %c0_i32_2 = arith.constant 0 : i32
    return %c0_i32, %c0_i32_0, %c0_i32_1 : i32, i32, i32
  }
  func.func @transform_1(%arg0: i32) -> (i32, i32) {
    %c0_i32 = arith.constant 0 : i32
    %c0_i32_0 = arith.constant 0 : i32
    %c0_i32_1 = arith.constant 0 : i32
    return %c0_i32, %c0_i32_0 : i32, i32
  }
  func.func @transform_2(%arg0: i32) -> (i32, i32) {
    %c0_i32 = arith.constant 0 : i32
    %c0_i32_0 = arith.constant 0 : i32
    %c0_i32_1 = arith.constant 0 : i32
    return %c0_i32, %c0_i32_0 : i32, i32
  }
  func.func @transform_3(%arg0: i32) -> (i32, i32) {
    %c0_i32 = arith.constant 0 : i32
    %c0_i32_0 = arith.constant 0 : i32
    %c0_i32_1 = arith.constant 0 : i32
    return %c0_i32, %c0_i32_0 : i32, i32
  }
  func.func @transform_4(%arg0: i32) -> (i32, i32, i32) {
    %c0_i32 = arith.constant 0 : i32
    %c0_i32_0 = arith.constant 0 : i32
    %c0_i32_1 = arith.constant 0 : i32
    %c0_i32_2 = arith.constant 0 : i32
    return %c0_i32, %c0_i32_0, %c0_i32_1 : i32, i32, i32
  }
}

module attributes {stable_mosaic.version = 11 : i64} {
  func.func @_vit_stack_kernel(%arg0: i32, %arg1: memref<2x5x32xf32, #tpu.memory_space<vmem>>, %arg2: memref<1x1x32xf32, #tpu.memory_space<vmem>>, %arg3: memref<1x1x32xf32, #tpu.memory_space<vmem>>, %arg4: memref<1x32x96xbf16, #tpu.memory_space<vmem>>, %arg5: memref<1x1x96xf32, #tpu.memory_space<vmem>>, %arg6: memref<1x32x32xbf16, #tpu.memory_space<vmem>>, %arg7: memref<1x1x32xf32, #tpu.memory_space<vmem>>, %arg8: memref<1x1x32xf32, #tpu.memory_space<vmem>>, %arg9: memref<1x1x32xf32, #tpu.memory_space<vmem>>, %arg10: memref<1x32x64xbf16, #tpu.memory_space<vmem>>, %arg11: memref<1x1x64xf32, #tpu.memory_space<vmem>>, %arg12: memref<1x64x32xbf16, #tpu.memory_space<vmem>>, %arg13: memref<1x1x32xf32, #tpu.memory_space<vmem>>, %arg14: memref<1x32xf32, #tpu.memory_space<vmem>>, %arg15: memref<1x32xf32, #tpu.memory_space<vmem>>, %arg16: memref<2x5x32xf32, #tpu.memory_space<vmem>>, %arg17: memref<2x32xf32, #tpu.memory_space<vmem>>) attributes {dimension_semantics = [#tpu.dimension_semantics<arbitrary>], iteration_bounds = array<i64: 2>, scalar_prefetch = 0 : i64, scratch_operands = 0 : i64, tpu.core_type = #tpu.core_type<tc>, window_params = [{pipeline_mode = #tpu.pipeline_mode<synchronous>, transform_indices = @transform_0, window_bounds = array<i64: 2, 5, 32>}, {transform_indices = @transform_1, window_bounds = array<i64: 1, 1, 32>}, {transform_indices = @transform_2, window_bounds = array<i64: 1, 1, 32>}, {transform_indices = @transform_3, window_bounds = array<i64: 1, 32, 96>}, {transform_indices = @transform_4, window_bounds = array<i64: 1, 1, 96>}, {transform_indices = @transform_5, window_bounds = array<i64: 1, 32, 32>}, {transform_indices = @transform_6, window_bounds = array<i64: 1, 1, 32>}, {transform_indices = @transform_7, window_bounds = array<i64: 1, 1, 32>}, {transform_indices = @transform_8, window_bounds = array<i64: 1, 1, 32>}, {transform_indices = @transform_9, window_bounds = array<i64: 1, 32, 64>}, {transform_indices = @transform_10, window_bounds = array<i64: 1, 1, 64>}, {transform_indices = @transform_11, window_bounds = array<i64: 1, 64, 32>}, {transform_indices = @transform_12, window_bounds = array<i64: 1, 1, 32>}, {pipeline_mode = #tpu.pipeline_mode<synchronous>, transform_indices = @transform_13, window_bounds = array<i64: 1, 32>}, {pipeline_mode = #tpu.pipeline_mode<synchronous>, transform_indices = @transform_14, window_bounds = array<i64: 1, 32>}, {pipeline_mode = #tpu.pipeline_mode<synchronous>, transform_indices = @transform_15, window_bounds = array<i64: 2, 5, 32>}, {pipeline_mode = #tpu.pipeline_mode<synchronous>, transform_indices = @transform_16, window_bounds = array<i64: 2, 32>}]} {
    %c0_i32 = arith.constant 0 : i32
    %0 = arith.cmpi eq, %arg0, %c0_i32 : i32
    %1 = arith.extui %0 : i1 to i32
    %c0_i32_0 = arith.constant 0 : i32
    %2 = arith.cmpi ne, %1, %c0_i32_0 : i32
    scf.if %2 {
      %c0_63 = arith.constant 0 : index
      %c0_64 = arith.constant 0 : index
      %c0_65 = arith.constant 0 : index
      %155 = vector.load %arg1[%c0_63, %c0_64, %c0_65] : memref<2x5x32xf32, #tpu.memory_space<vmem>>, vector<2x5x32xf32>
      %c0_66 = arith.constant 0 : index
      %c0_67 = arith.constant 0 : index
      %c0_68 = arith.constant 0 : index
      %156 = vector.load %arg16[%c0_66, %c0_67, %c0_68] : memref<2x5x32xf32, #tpu.memory_space<vmem>>, vector<2x5x32xf32>
      tpu.vector_store %arg16[%c0_66, %c0_67, %c0_68], %155 {strides = array<i32>} : memref<2x5x32xf32, #tpu.memory_space<vmem>>, vector<2x5x32xf32>,
    } else {
    }
    %c0 = arith.constant 0 : index
    %c0_1 = arith.constant 0 : index
    %c0_2 = arith.constant 0 : index
    %3 = vector.load %arg16[%c0, %c0_1, %c0_2] : memref<2x5x32xf32, #tpu.memory_space<vmem>>, vector<2x5x32xf32>
    %c0_3 = arith.constant 0 : index
    %c0_4 = arith.constant 0 : index
    %c0_5 = arith.constant 0 : index
    %4 = vector.load %arg2[%c0_3, %c0_4, %c0_5] : memref<1x1x32xf32, #tpu.memory_space<vmem>>, vector<1x1x32xf32>
    %5 = vector.shape_cast %4 : vector<1x1x32xf32> to vector<1x32xf32>
    %c0_6 = arith.constant 0 : index
    %c0_7 = arith.constant 0 : index
    %c0_8 = arith.constant 0 : index
    %6 = vector.load %arg3[%c0_6, %c0_7, %c0_8] : memref<1x1x32xf32, #tpu.memory_space<vmem>>, vector<1x1x32xf32>
    %7 = vector.shape_cast %6 : vector<1x1x32xf32> to vector<1x32xf32>
    %cst = arith.constant dense<0.000000e+00> : vector<2x5xf32>
    %8 = vector.multi_reduction <add>, %3, %cst [2] : vector<2x5x32xf32> to vector<2x5xf32>
    %9 = vector.shape_cast %8 : vector<2x5xf32> to vector<2x5x1xf32>
    %cst_9 = arith.constant 3.200000e+01 : f32
    %10 = vector.broadcast %cst_9 : f32 to vector<2x5x1xf32>
    %11 = arith.divf %9, %10 : vector<2x5x1xf32>
    %12 = vector.broadcast %11 : vector<2x5x1xf32> to vector<2x5x32xf32>
    %13 = arith.subf %3, %12 : vector<2x5x32xf32>
    %14 = arith.mulf %13, %13 : vector<2x5x32xf32>
    %cst_10 = arith.constant dense<0.000000e+00> : vector<2x5xf32>
    %15 = vector.multi_reduction <add>, %14, %cst_10 [2] : vector<2x5x32xf32> to vector<2x5xf32>
    %16 = vector.shape_cast %15 : vector<2x5xf32> to vector<2x5x1xf32>
    %cst_11 = arith.constant 3.200000e+01 : f32
    %17 = vector.broadcast %cst_11 : f32 to vector<2x5x1xf32>
    %18 = arith.divf %16, %17 : vector<2x5x1xf32>
    %19 = vector.broadcast %11 : vector<2x5x1xf32> to vector<2x5x32xf32>
    %20 = arith.subf %3, %19 : vector<2x5x32xf32>
    %cst_12 = arith.constant 9.99999974E-6 : f32
    %21 = vector.broadcast %cst_12 : f32 to vector<2x5x1xf32>
    %22 = arith.addf %18, %21 : vector<2x5x1xf32>
    %23 = math.rsqrt %22 : vector<2x5x1xf32>
    %24 = vector.broadcast %23 : vector<2x5x1xf32> to vector<2x5x32xf32>
    %25 = arith.mulf %20, %24 : vector<2x5x32xf32>
    %26 = vector.shape_cast %5 : vector<1x32xf32> to vector<1x1x32xf32>
    %27 = vector.broadcast %26 : vector<1x1x32xf32> to vector<2x5x32xf32>
    %28 = arith.mulf %25, %27 : vector<2x5x32xf32>
    %29 = vector.shape_cast %7 : vector<1x32xf32> to vector<1x1x32xf32>
    %30 = vector.broadcast %29 : vector<1x1x32xf32> to vector<2x5x32xf32>
    %31 = arith.addf %28, %30 : vector<2x5x32xf32>
    %c0_13 = arith.constant 0 : index
    %c0_14 = arith.constant 0 : index
    %c0_15 = arith.constant 0 : index
    %32 = vector.load %arg4[%c0_13, %c0_14, %c0_15] : memref<1x32x96xbf16, #tpu.memory_space<vmem>>, vector<1x32x96xbf16>
    %33 = vector.shape_cast %32 : vector<1x32x96xbf16> to vector<32x96xbf16>
    %c0_16 = arith.constant 0 : index
    %c0_17 = arith.constant 0 : index
    %c0_18 = arith.constant 0 : index
    %34 = vector.load %arg5[%c0_16, %c0_17, %c0_18] : memref<1x1x96xf32, #tpu.memory_space<vmem>>, vector<1x1x96xf32>
    %35 = vector.shape_cast %34 : vector<1x1x96xf32> to vector<1x96xf32>
    %c0_19 = arith.constant 0 : index
    %c0_20 = arith.constant 0 : index
    %c0_21 = arith.constant 0 : index
    %36 = vector.load %arg6[%c0_19, %c0_20, %c0_21] : memref<1x32x32xbf16, #tpu.memory_space<vmem>>, vector<1x32x32xbf16>
    %37 = vector.shape_cast %36 : vector<1x32x32xbf16> to vector<32x32xbf16>
    %c0_22 = arith.constant 0 : index
    %c0_23 = arith.constant 0 : index
    %c0_24 = arith.constant 0 : index
    %38 = vector.load %arg7[%c0_22, %c0_23, %c0_24] : memref<1x1x32xf32, #tpu.memory_space<vmem>>, vector<1x1x32xf32>
    %39 = vector.shape_cast %38 : vector<1x1x32xf32> to vector<1x32xf32>
    %40 = vector.shape_cast %31 : vector<2x5x32xf32> to vector<10x32xf32>
    %41 = arith.truncf %40 : vector<10x32xf32> to vector<10x32xbf16>
    %cst_25 = arith.constant dense<0.000000e+00> : vector<10x96xf32>
    %42 = tpu.matmul %41, %33, %cst_25 {dimension_numbers = #tpu.dot_dimension_numbers<[1], [0], [0], [1], [0, 0, 1, 1], [], []>} : vector<10x32xbf16>, vector<32x96xbf16>, vector<10x96xf32> -> vector<10x96xf32>
    %43 = vector.broadcast %35 : vector<1x96xf32> to vector<10x96xf32>
    %44 = arith.addf %42, %43 : vector<10x96xf32>
    %45 = vector.shape_cast %44 : vector<10x96xf32> to vector<2x5x96xf32>
    %46 = vector.extract_strided_slice %45 {offsets = [0, 0, 0], sizes = [2, 5, 8], strides = [1, 1, 1]} : vector<2x5x96xf32> to vector<2x5x8xf32>
    %47 = vector.extract_strided_slice %45 {offsets = [0, 0, 8], sizes = [2, 5, 8], strides = [1, 1, 1]} : vector<2x5x96xf32> to vector<2x5x8xf32>
    %48 = vector.extract_strided_slice %45 {offsets = [0, 0, 16], sizes = [2, 5, 8], strides = [1, 1, 1]} : vector<2x5x96xf32> to vector<2x5x8xf32>
    %49 = vector.extract_strided_slice %45 {offsets = [0, 0, 24], sizes = [2, 5, 8], strides = [1, 1, 1]} : vector<2x5x96xf32> to vector<2x5x8xf32>
    %50 = tpu.concatenate %46, %47, %48, %49 in 0 : vector<2x5x8xf32>, vector<2x5x8xf32>, vector<2x5x8xf32>, vector<2x5x8xf32> -> vector<8x5x8xf32>
    %51 = arith.truncf %50 : vector<8x5x8xf32> to vector<8x5x8xbf16>
    %52 = vector.extract_strided_slice %45 {offsets = [0, 0, 32], sizes = [2, 5, 8], strides = [1, 1, 1]} : vector<2x5x96xf32> to vector<2x5x8xf32>
    %53 = vector.extract_strided_slice %45 {offsets = [0, 0, 40], sizes = [2, 5, 8], strides = [1, 1, 1]} : vector<2x5x96xf32> to vector<2x5x8xf32>
    %54 = vector.extract_strided_slice %45 {offsets = [0, 0, 48], sizes = [2, 5, 8], strides = [1, 1, 1]} : vector<2x5x96xf32> to vector<2x5x8xf32>
    %55 = vector.extract_strided_slice %45 {offsets = [0, 0, 56], sizes = [2, 5, 8], strides = [1, 1, 1]} : vector<2x5x96xf32> to vector<2x5x8xf32>
    %56 = tpu.concatenate %52, %53, %54, %55 in 0 : vector<2x5x8xf32>, vector<2x5x8xf32>, vector<2x5x8xf32>, vector<2x5x8xf32> -> vector<8x5x8xf32>
    %57 = arith.truncf %56 : vector<8x5x8xf32> to vector<8x5x8xbf16>
    %58 = vector.extract_strided_slice %45 {offsets = [0, 0, 64], sizes = [2, 5, 8], strides = [1, 1, 1]} : vector<2x5x96xf32> to vector<2x5x8xf32>
    %59 = vector.extract_strided_slice %45 {offsets = [0, 0, 72], sizes = [2, 5, 8], strides = [1, 1, 1]} : vector<2x5x96xf32> to vector<2x5x8xf32>
    %60 = vector.extract_strided_slice %45 {offsets = [0, 0, 80], sizes = [2, 5, 8], strides = [1, 1, 1]} : vector<2x5x96xf32> to vector<2x5x8xf32>
    %61 = vector.extract_strided_slice %45 {offsets = [0, 0, 88], sizes = [2, 5, 8], strides = [1, 1, 1]} : vector<2x5x96xf32> to vector<2x5x8xf32>
    %62 = tpu.concatenate %58, %59, %60, %61 in 0 : vector<2x5x8xf32>, vector<2x5x8xf32>, vector<2x5x8xf32>, vector<2x5x8xf32> -> vector<8x5x8xf32>
    %63 = arith.truncf %62 : vector<8x5x8xf32> to vector<8x5x8xbf16>
    "tpu.trace_start"() <{level = 10 : i32, message = "bqd,bkd->bqk"}> : () -> ()
    %cst_26 = arith.constant dense<0.000000e+00> : vector<8x5x5xf32>
    %64 = tpu.matmul %51, %57, %cst_26 {dimension_numbers = #tpu.dot_dimension_numbers<[2], [2], [1], [1], [0, 0, 0, 1, 1, 1], [0], [0]>} : vector<8x5x8xbf16>, vector<8x5x8xbf16>, vector<8x5x5xf32> -> vector<8x5x5xf32>
    "tpu.trace_stop"() : () -> ()
    %cst_27 = arith.constant dense<0xFF800000> : vector<8x5xf32>
    %65 = vector.multi_reduction <maximumf>, %64, %cst_27 [2] : vector<8x5x5xf32> to vector<8x5xf32>
    %66 = vector.shape_cast %65 : vector<8x5xf32> to vector<8x5x1xf32>
    %67 = vector.broadcast %66 : vector<8x5x1xf32> to vector<8x5x5xf32>
    %68 = arith.subf %64, %67 : vector<8x5x5xf32>
    %69 = math.exp %68 : vector<8x5x5xf32>
    %cst_28 = arith.constant dense<0.000000e+00> : vector<8x5xf32>
    %70 = vector.multi_reduction <add>, %69, %cst_28 [2] : vector<8x5x5xf32> to vector<8x5xf32>
    %71 = vector.shape_cast %70 : vector<8x5xf32> to vector<8x5x1xf32>
    %72 = tpu.reciprocal %71 {approx = true} : vector<8x5x1xf32> -> vector<8x5x1xf32>
    %73 = vector.broadcast %72 : vector<8x5x1xf32> to vector<8x5x5xf32>
    %74 = arith.mulf %69, %73 : vector<8x5x5xf32>
    %75 = arith.truncf %74 : vector<8x5x5xf32> to vector<8x5x5xbf16>
    "tpu.trace_start"() <{level = 10 : i32, message = "bqk,bkd->bqd"}> : () -> ()
    %cst_29 = arith.constant dense<0.000000e+00> : vector<8x5x8xf32>
    %76 = tpu.matmul %75, %63, %cst_29 {dimension_numbers = #tpu.dot_dimension_numbers<[2], [1], [1], [2], [0, 0, 0, 1, 1, 2], [0], [0]>} : vector<8x5x5xbf16>, vector<8x5x8xbf16>, vector<8x5x8xf32> -> vector<8x5x8xf32>
    "tpu.trace_stop"() : () -> ()
    %77 = vector.extract_strided_slice %76 {offsets = [0, 0, 0], sizes = [2, 5, 8], strides = [1, 1, 1]} : vector<8x5x8xf32> to vector<2x5x8xf32>
    %78 = vector.extract_strided_slice %76 {offsets = [2, 0, 0], sizes = [2, 5, 8], strides = [1, 1, 1]} : vector<8x5x8xf32> to vector<2x5x8xf32>
    %79 = vector.extract_strided_slice %76 {offsets = [4, 0, 0], sizes = [2, 5, 8], strides = [1, 1, 1]} : vector<8x5x8xf32> to vector<2x5x8xf32>
    %80 = vector.extract_strided_slice %76 {offsets = [6, 0, 0], sizes = [2, 5, 8], strides = [1, 1, 1]} : vector<8x5x8xf32> to vector<2x5x8xf32>
    %81 = tpu.concatenate %77, %78, %79, %80 in 2 : vector<2x5x8xf32>, vector<2x5x8xf32>, vector<2x5x8xf32>, vector<2x5x8xf32> -> vector<2x5x32xf32>
    %82 = vector.shape_cast %81 : vector<2x5x32xf32> to vector<10x32xf32>
    %83 = arith.truncf %82 : vector<10x32xf32> to vector<10x32xbf16>
    %cst_30 = arith.constant dense<0.000000e+00> : vector<10x32xf32>
    %84 = tpu.matmul %83, %37, %cst_30 {dimension_numbers = #tpu.dot_dimension_numbers<[1], [0], [0], [1], [0, 0, 1, 1], [], []>} : vector<10x32xbf16>, vector<32x32xbf16>, vector<10x32xf32> -> vector<10x32xf32>
    %85 = vector.broadcast %39 : vector<1x32xf32> to vector<10x32xf32>
    %86 = arith.addf %84, %85 : vector<10x32xf32>
    %87 = vector.shape_cast %86 : vector<10x32xf32> to vector<2x5x32xf32>
    %88 = arith.addf %3, %87 : vector<2x5x32xf32>
    %c0_31 = arith.constant 0 : index
    %c0_32 = arith.constant 0 : index
    %c0_33 = arith.constant 0 : index
    %89 = vector.load %arg8[%c0_31, %c0_32, %c0_33] : memref<1x1x32xf32, #tpu.memory_space<vmem>>, vector<1x1x32xf32>
    %90 = vector.shape_cast %89 : vector<1x1x32xf32> to vector<1x32xf32>
    %c0_34 = arith.constant 0 : index
    %c0_35 = arith.constant 0 : index
    %c0_36 = arith.constant 0 : index
    %91 = vector.load %arg9[%c0_34, %c0_35, %c0_36] : memref<1x1x32xf32, #tpu.memory_space<vmem>>, vector<1x1x32xf32>
    %92 = vector.shape_cast %91 : vector<1x1x32xf32> to vector<1x32xf32>
    %cst_37 = arith.constant dense<0.000000e+00> : vector<2x5xf32>
    %93 = vector.multi_reduction <add>, %88, %cst_37 [2] : vector<2x5x32xf32> to vector<2x5xf32>
    %94 = vector.shape_cast %93 : vector<2x5xf32> to vector<2x5x1xf32>
    %cst_38 = arith.constant 3.200000e+01 : f32
    %95 = vector.broadcast %cst_38 : f32 to vector<2x5x1xf32>
    %96 = arith.divf %94, %95 : vector<2x5x1xf32>
    %97 = vector.broadcast %96 : vector<2x5x1xf32> to vector<2x5x32xf32>
    %98 = arith.subf %88, %97 : vector<2x5x32xf32>
    %99 = arith.mulf %98, %98 : vector<2x5x32xf32>
    %cst_39 = arith.constant dense<0.000000e+00> : vector<2x5xf32>
    %100 = vector.multi_reduction <add>, %99, %cst_39 [2] : vector<2x5x32xf32> to vector<2x5xf32>
    %101 = vector.shape_cast %100 : vector<2x5xf32> to vector<2x5x1xf32>
    %cst_40 = arith.constant 3.200000e+01 : f32
    %102 = vector.broadcast %cst_40 : f32 to vector<2x5x1xf32>
    %103 = arith.divf %101, %102 : vector<2x5x1xf32>
    %104 = vector.broadcast %96 : vector<2x5x1xf32> to vector<2x5x32xf32>
    %105 = arith.subf %88, %104 : vector<2x5x32xf32>
    %cst_41 = arith.constant 9.99999974E-6 : f32
    %106 = vector.broadcast %cst_41 : f32 to vector<2x5x1xf32>
    %107 = arith.addf %103, %106 : vector<2x5x1xf32>
    %108 = math.rsqrt %107 : vector<2x5x1xf32>
    %109 = vector.broadcast %108 : vector<2x5x1xf32> to vector<2x5x32xf32>
    %110 = arith.mulf %105, %109 : vector<2x5x32xf32>
    %111 = vector.shape_cast %90 : vector<1x32xf32> to vector<1x1x32xf32>
    %112 = vector.broadcast %111 : vector<1x1x32xf32> to vector<2x5x32xf32>
    %113 = arith.mulf %110, %112 : vector<2x5x32xf32>
    %114 = vector.shape_cast %92 : vector<1x32xf32> to vector<1x1x32xf32>
    %115 = vector.broadcast %114 : vector<1x1x32xf32> to vector<2x5x32xf32>
    %116 = arith.addf %113, %115 : vector<2x5x32xf32>
    %117 = vector.shape_cast %116 : vector<2x5x32xf32> to vector<10x32xf32>
    %c0_42 = arith.constant 0 : index
    %c0_43 = arith.constant 0 : index
    %c0_44 = arith.constant 0 : index
    %118 = vector.load %arg10[%c0_42, %c0_43, %c0_44] : memref<1x32x64xbf16, #tpu.memory_space<vmem>>, vector<1x32x64xbf16>
    %119 = vector.shape_cast %118 : vector<1x32x64xbf16> to vector<32x64xbf16>
    %c0_45 = arith.constant 0 : index
    %c0_46 = arith.constant 0 : index
    %c0_47 = arith.constant 0 : index
    %120 = vector.load %arg11[%c0_45, %c0_46, %c0_47] : memref<1x1x64xf32, #tpu.memory_space<vmem>>, vector<1x1x64xf32>
    %121 = vector.shape_cast %120 : vector<1x1x64xf32> to vector<1x64xf32>
    %122 = arith.truncf %117 : vector<10x32xf32> to vector<10x32xbf16>
    %cst_48 = arith.constant dense<0.000000e+00> : vector<10x64xf32>
    %123 = tpu.matmul %122, %119, %cst_48 {dimension_numbers = #tpu.dot_dimension_numbers<[1], [0], [0], [1], [0, 0, 1, 1], [], []>} : vector<10x32xbf16>, vector<32x64xbf16>, vector<10x64xf32> -> vector<10x64xf32>
    %124 = vector.broadcast %121 : vector<1x64xf32> to vector<10x64xf32>
    %125 = arith.addf %123, %124 : vector<10x64xf32>
    %cst_49 = arith.constant 5.000000e-01 : f32
    %126 = vector.broadcast %cst_49 : f32 to vector<10x64xf32>
    %127 = arith.mulf %126, %125 : vector<10x64xf32>
    %cst_50 = arith.constant 4.471500e-02 : f32
    %128 = vector.broadcast %cst_50 : f32 to vector<10x64xf32>
    %129 = arith.mulf %128, %125 : vector<10x64xf32>
    %130 = arith.mulf %129, %125 : vector<10x64xf32>
    %131 = arith.mulf %130, %125 : vector<10x64xf32>
    %132 = arith.addf %125, %131 : vector<10x64xf32>
    %cst_51 = arith.constant 0.797884583 : f32
    %133 = vector.broadcast %cst_51 : f32 to vector<10x64xf32>
    %134 = arith.mulf %133, %132 : vector<10x64xf32>
    %135 = math.tanh %134 : vector<10x64xf32>
    %cst_52 = arith.constant 1.000000e+00 : f32
    %136 = vector.broadcast %cst_52 : f32 to vector<10x64xf32>
    %137 = arith.addf %136, %135 : vector<10x64xf32>
    %138 = arith.mulf %127, %137 : vector<10x64xf32>
    %c0_53 = arith.constant 0 : index
    %c0_54 = arith.constant 0 : index
    %c0_55 = arith.constant 0 : index
    %139 = vector.load %arg12[%c0_53, %c0_54, %c0_55] : memref<1x64x32xbf16, #tpu.memory_space<vmem>>, vector<1x64x32xbf16>
    %140 = vector.shape_cast %139 : vector<1x64x32xbf16> to vector<64x32xbf16>
    %c0_56 = arith.constant 0 : index
    %c0_57 = arith.constant 0 : index
    %c0_58 = arith.constant 0 : index
    %141 = vector.load %arg13[%c0_56, %c0_57, %c0_58] : memref<1x1x32xf32, #tpu.memory_space<vmem>>, vector<1x1x32xf32>
    %142 = vector.shape_cast %141 : vector<1x1x32xf32> to vector<1x32xf32>
    %143 = arith.truncf %138 : vector<10x64xf32> to vector<10x64xbf16>
    %cst_59 = arith.constant dense<0.000000e+00> : vector<10x32xf32>
    %144 = tpu.matmul %143, %140, %cst_59 {dimension_numbers = #tpu.dot_dimension_numbers<[1], [0], [0], [1], [0, 0, 1, 1], [], []>} : vector<10x64xbf16>, vector<64x32xbf16>, vector<10x32xf32> -> vector<10x32xf32>
    %145 = vector.broadcast %142 : vector<1x32xf32> to vector<10x32xf32>
    %146 = arith.addf %144, %145 : vector<10x32xf32>
    %147 = vector.shape_cast %146 : vector<10x32xf32> to vector<2x5x32xf32>
    %148 = arith.addf %88, %147 : vector<2x5x32xf32>
    %c1_i32 = arith.constant 1 : i32
    %149 = arith.cmpi ne, %arg0, %c1_i32 : i32
    %150 = arith.extui %149 : i1 to i32
    %c0_i32_60 = arith.constant 0 : i32
    %151 = arith.cmpi ne, %150, %c0_i32_60 : i32
    scf.if %151 {
      %c0_63 = arith.constant 0 : index
      %c0_64 = arith.constant 0 : index
      %c0_65 = arith.constant 0 : index
      %155 = vector.load %arg16[%c0_63, %c0_64, %c0_65] : memref<2x5x32xf32, #tpu.memory_space<vmem>>, vector<2x5x32xf32>
      tpu.vector_store %arg16[%c0_63, %c0_64, %c0_65], %148 {strides = array<i32>} : memref<2x5x32xf32, #tpu.memory_space<vmem>>, vector<2x5x32xf32>,
    } else {
    }
    %c1_i32_61 = arith.constant 1 : i32
    %152 = arith.cmpi eq, %arg0, %c1_i32_61 : i32
    %153 = arith.extui %152 : i1 to i32
    %c0_i32_62 = arith.constant 0 : i32
    %154 = arith.cmpi ne, %153, %c0_i32_62 : i32
    scf.if %154 {
      %c0_63 = arith.constant 0 : index
      %c0_64 = arith.constant 0 : index
      %155 = vector.load %arg14[%c0_63, %c0_64] : memref<1x32xf32, #tpu.memory_space<vmem>>, vector<1x32xf32>
      %c0_65 = arith.constant 0 : index
      %c0_66 = arith.constant 0 : index
      %156 = vector.load %arg15[%c0_65, %c0_66] : memref<1x32xf32, #tpu.memory_space<vmem>>, vector<1x32xf32>
      %cst_67 = arith.constant dense<0.000000e+00> : vector<2x5xf32>
      %157 = vector.multi_reduction <add>, %148, %cst_67 [2] : vector<2x5x32xf32> to vector<2x5xf32>
      %158 = vector.shape_cast %157 : vector<2x5xf32> to vector<2x5x1xf32>
      %cst_68 = arith.constant 3.200000e+01 : f32
      %159 = vector.broadcast %cst_68 : f32 to vector<2x5x1xf32>
      %160 = arith.divf %158, %159 : vector<2x5x1xf32>
      %161 = vector.broadcast %160 : vector<2x5x1xf32> to vector<2x5x32xf32>
      %162 = arith.subf %148, %161 : vector<2x5x32xf32>
      %163 = arith.mulf %162, %162 : vector<2x5x32xf32>
      %cst_69 = arith.constant dense<0.000000e+00> : vector<2x5xf32>
      %164 = vector.multi_reduction <add>, %163, %cst_69 [2] : vector<2x5x32xf32> to vector<2x5xf32>
      %165 = vector.shape_cast %164 : vector<2x5xf32> to vector<2x5x1xf32>
      %cst_70 = arith.constant 3.200000e+01 : f32
      %166 = vector.broadcast %cst_70 : f32 to vector<2x5x1xf32>
      %167 = arith.divf %165, %166 : vector<2x5x1xf32>
      %168 = vector.broadcast %160 : vector<2x5x1xf32> to vector<2x5x32xf32>
      %169 = arith.subf %148, %168 : vector<2x5x32xf32>
      %cst_71 = arith.constant 9.99999974E-6 : f32
      %170 = vector.broadcast %cst_71 : f32 to vector<2x5x1xf32>
      %171 = arith.addf %167, %170 : vector<2x5x1xf32>
      %172 = math.rsqrt %171 : vector<2x5x1xf32>
      %173 = vector.broadcast %172 : vector<2x5x1xf32> to vector<2x5x32xf32>
      %174 = arith.mulf %169, %173 : vector<2x5x32xf32>
      %175 = vector.shape_cast %155 : vector<1x32xf32> to vector<1x1x32xf32>
      %176 = vector.broadcast %175 : vector<1x1x32xf32> to vector<2x5x32xf32>
      %177 = arith.mulf %174, %176 : vector<2x5x32xf32>
      %178 = vector.shape_cast %156 : vector<1x32xf32> to vector<1x1x32xf32>
      %179 = vector.broadcast %178 : vector<1x1x32xf32> to vector<2x5x32xf32>
      %180 = arith.addf %177, %179 : vector<2x5x32xf32>
      %c0_72 = arith.constant 0 : index
      %c0_73 = arith.constant 0 : index
      %c0_74 = arith.constant 0 : index
      %181 = vector.load %arg16[%c0_72, %c0_73, %c0_74] : memref<2x5x32xf32, #tpu.memory_space<vmem>>, vector<2x5x32xf32>
      tpu.vector_store %arg16[%c0_72, %c0_73, %c0_74], %180 {strides = array<i32>} : memref<2x5x32xf32, #tpu.memory_space<vmem>>, vector<2x5x32xf32>,
      %182 = vector.extract_strided_slice %180 {offsets = [0, 0, 0], sizes = [2, 1, 32], strides = [1, 1, 1]} : vector<2x5x32xf32> to vector<2x1x32xf32>
      %183 = vector.shape_cast %182 : vector<2x1x32xf32> to vector<2x32xf32>
      %184 = arith.mulf %183, %183 : vector<2x32xf32>
      %cst_75 = arith.constant dense<0.000000e+00> : vector<2xf32>
      %185 = vector.multi_reduction <add>, %184, %cst_75 [1] : vector<2x32xf32> to vector<2xf32>
      %186 = vector.shape_cast %185 : vector<2xf32> to vector<2x1xf32>
      %187 = math.sqrt %186 : vector<2x1xf32>
      %cst_76 = arith.constant 9.99999996E-13 : f32
      %188 = vector.broadcast %cst_76 : f32 to vector<2x1xf32>
      %189 = arith.maximumf %187, %188 : vector<2x1xf32>
      %190 = tpu.reciprocal %189 {approx = true} : vector<2x1xf32> -> vector<2x1xf32>
      %191 = vector.broadcast %190 : vector<2x1xf32> to vector<2x32xf32>
      %192 = arith.mulf %183, %191 : vector<2x32xf32>
      %c0_77 = arith.constant 0 : index
      %c0_78 = arith.constant 0 : index
      %193 = vector.load %arg17[%c0_77, %c0_78] : memref<2x32xf32, #tpu.memory_space<vmem>>, vector<2x32xf32>
      tpu.vector_store %arg17[%c0_77, %c0_78], %192 {strides = array<i32>} : memref<2x32xf32, #tpu.memory_space<vmem>>, vector<2x32xf32>,
    } else {
    }
    return
  }
  func.func @transform_0(%arg0: i32) -> (i32, i32, i32) {
    %c0_i32 = arith.constant 0 : i32
    %c0_i32_0 = arith.constant 0 : i32
    %c0_i32_1 = arith.constant 0 : i32
    %c0_i32_2 = arith.constant 0 : i32
    return %c0_i32, %c0_i32_0, %c0_i32_1 : i32, i32, i32
  }
  func.func @transform_1(%arg0: i32) -> (i32, i32, i32) {
    %c0_i32 = arith.constant 0 : i32
    %c0_i32_0 = arith.constant 0 : i32
    %c0_i32_1 = arith.constant 0 : i32
    return %arg0, %c0_i32, %c0_i32_0 : i32, i32, i32
  }
  func.func @transform_2(%arg0: i32) -> (i32, i32, i32) {
    %c0_i32 = arith.constant 0 : i32
    %c0_i32_0 = arith.constant 0 : i32
    %c0_i32_1 = arith.constant 0 : i32
    return %arg0, %c0_i32, %c0_i32_0 : i32, i32, i32
  }
  func.func @transform_3(%arg0: i32) -> (i32, i32, i32) {
    %c0_i32 = arith.constant 0 : i32
    %c0_i32_0 = arith.constant 0 : i32
    %c0_i32_1 = arith.constant 0 : i32
    return %arg0, %c0_i32, %c0_i32_0 : i32, i32, i32
  }
  func.func @transform_4(%arg0: i32) -> (i32, i32, i32) {
    %c0_i32 = arith.constant 0 : i32
    %c0_i32_0 = arith.constant 0 : i32
    %c0_i32_1 = arith.constant 0 : i32
    return %arg0, %c0_i32, %c0_i32_0 : i32, i32, i32
  }
  func.func @transform_5(%arg0: i32) -> (i32, i32, i32) {
    %c0_i32 = arith.constant 0 : i32
    %c0_i32_0 = arith.constant 0 : i32
    %c0_i32_1 = arith.constant 0 : i32
    return %arg0, %c0_i32, %c0_i32_0 : i32, i32, i32
  }
  func.func @transform_6(%arg0: i32) -> (i32, i32, i32) {
    %c0_i32 = arith.constant 0 : i32
    %c0_i32_0 = arith.constant 0 : i32
    %c0_i32_1 = arith.constant 0 : i32
    return %arg0, %c0_i32, %c0_i32_0 : i32, i32, i32
  }
  func.func @transform_7(%arg0: i32) -> (i32, i32, i32) {
    %c0_i32 = arith.constant 0 : i32
    %c0_i32_0 = arith.constant 0 : i32
    %c0_i32_1 = arith.constant 0 : i32
    return %arg0, %c0_i32, %c0_i32_0 : i32, i32, i32
  }
  func.func @transform_8(%arg0: i32) -> (i32, i32, i32) {
    %c0_i32 = arith.constant 0 : i32
    %c0_i32_0 = arith.constant 0 : i32
    %c0_i32_1 = arith.constant 0 : i32
    return %arg0, %c0_i32, %c0_i32_0 : i32, i32, i32
  }
  func.func @transform_9(%arg0: i32) -> (i32, i32, i32) {
    %c0_i32 = arith.constant 0 : i32
    %c0_i32_0 = arith.constant 0 : i32
    %c0_i32_1 = arith.constant 0 : i32
    return %arg0, %c0_i32, %c0_i32_0 : i32, i32, i32
  }
  func.func @transform_10(%arg0: i32) -> (i32, i32, i32) {
    %c0_i32 = arith.constant 0 : i32
    %c0_i32_0 = arith.constant 0 : i32
    %c0_i32_1 = arith.constant 0 : i32
    return %arg0, %c0_i32, %c0_i32_0 : i32, i32, i32
  }
  func.func @transform_11(%arg0: i32) -> (i32, i32, i32) {
    %c0_i32 = arith.constant 0 : i32
    %c0_i32_0 = arith.constant 0 : i32
    %c0_i32_1 = arith.constant 0 : i32
    return %arg0, %c0_i32, %c0_i32_0 : i32, i32, i32
  }
  func.func @transform_12(%arg0: i32) -> (i32, i32, i32) {
    %c0_i32 = arith.constant 0 : i32
    %c0_i32_0 = arith.constant 0 : i32
    %c0_i32_1 = arith.constant 0 : i32
    return %arg0, %c0_i32, %c0_i32_0 : i32, i32, i32
  }
  func.func @transform_13(%arg0: i32) -> (i32, i32) {
    %c0_i32 = arith.constant 0 : i32
    %c0_i32_0 = arith.constant 0 : i32
    %c0_i32_1 = arith.constant 0 : i32
    return %c0_i32, %c0_i32_0 : i32, i32
  }
  func.func @transform_14(%arg0: i32) -> (i32, i32) {
    %c0_i32 = arith.constant 0 : i32
    %c0_i32_0 = arith.constant 0 : i32
    %c0_i32_1 = arith.constant 0 : i32
    return %c0_i32, %c0_i32_0 : i32, i32
  }
  func.func @transform_15(%arg0: i32) -> (i32, i32, i32) {
    %c0_i32 = arith.constant 0 : i32
    %c0_i32_0 = arith.constant 0 : i32
    %c0_i32_1 = arith.constant 0 : i32
    %c0_i32_2 = arith.constant 0 : i32
    return %c0_i32, %c0_i32_0, %c0_i32_1 : i32, i32, i32
  }
  func.func @transform_16(%arg0: i32) -> (i32, i32) {
    %c0_i32 = arith.constant 0 : i32
    %c0_i32_0 = arith.constant 0 : i32
    %c0_i32_1 = arith.constant 0 : i32
    return %c0_i32, %c0_i32_0 : i32, i32
  }
}

module attributes {stable_mosaic.version = 11 : i64} {
  func.func @_bert_stack_kernel(%arg0: i32, %arg1: memref<2x8x32xf32, #tpu.memory_space<vmem>>, %arg2: memref<2x1x8xf32, #tpu.memory_space<vmem>>, %arg3: memref<1x32xf32, #tpu.memory_space<vmem>>, %arg4: memref<1x32xf32, #tpu.memory_space<vmem>>, %arg5: memref<1x1x32xf32, #tpu.memory_space<vmem>>, %arg6: memref<1x1x32xf32, #tpu.memory_space<vmem>>, %arg7: memref<1x32x96xbf16, #tpu.memory_space<vmem>>, %arg8: memref<1x1x96xf32, #tpu.memory_space<vmem>>, %arg9: memref<1x32x32xbf16, #tpu.memory_space<vmem>>, %arg10: memref<1x1x32xf32, #tpu.memory_space<vmem>>, %arg11: memref<1x1x32xf32, #tpu.memory_space<vmem>>, %arg12: memref<1x1x32xf32, #tpu.memory_space<vmem>>, %arg13: memref<1x32x64xbf16, #tpu.memory_space<vmem>>, %arg14: memref<1x1x64xf32, #tpu.memory_space<vmem>>, %arg15: memref<1x64x32xbf16, #tpu.memory_space<vmem>>, %arg16: memref<1x1x32xf32, #tpu.memory_space<vmem>>, %arg17: memref<2x8x32xf32, #tpu.memory_space<vmem>>, %arg18: memref<2x32xf32, #tpu.memory_space<vmem>>) attributes {dimension_semantics = [#tpu.dimension_semantics<arbitrary>], iteration_bounds = array<i64: 2>, scalar_prefetch = 0 : i64, scratch_operands = 0 : i64, tpu.core_type = #tpu.core_type<tc>, window_params = [{pipeline_mode = #tpu.pipeline_mode<synchronous>, transform_indices = @transform_0, window_bounds = array<i64: 2, 8, 32>}, {pipeline_mode = #tpu.pipeline_mode<synchronous>, transform_indices = @transform_1, window_bounds = array<i64: 2, 1, 8>}, {pipeline_mode = #tpu.pipeline_mode<synchronous>, transform_indices = @transform_2, window_bounds = array<i64: 1, 32>}, {pipeline_mode = #tpu.pipeline_mode<synchronous>, transform_indices = @transform_3, window_bounds = array<i64: 1, 32>}, {transform_indices = @transform_4, window_bounds = array<i64: 1, 1, 32>}, {transform_indices = @transform_5, window_bounds = array<i64: 1, 1, 32>}, {transform_indices = @transform_6, window_bounds = array<i64: 1, 32, 96>}, {transform_indices = @transform_7, window_bounds = array<i64: 1, 1, 96>}, {transform_indices = @transform_8, window_bounds = array<i64: 1, 32, 32>}, {transform_indices = @transform_9, window_bounds = array<i64: 1, 1, 32>}, {transform_indices = @transform_10, window_bounds = array<i64: 1, 1, 32>}, {transform_indices = @transform_11, window_bounds = array<i64: 1, 1, 32>}, {transform_indices = @transform_12, window_bounds = array<i64: 1, 32, 64>}, {transform_indices = @transform_13, window_bounds = array<i64: 1, 1, 64>}, {transform_indices = @transform_14, window_bounds = array<i64: 1, 64, 32>}, {transform_indices = @transform_15, window_bounds = array<i64: 1, 1, 32>}, {pipeline_mode = #tpu.pipeline_mode<synchronous>, transform_indices = @transform_16, window_bounds = array<i64: 2, 8, 32>}, {pipeline_mode = #tpu.pipeline_mode<synchronous>, transform_indices = @transform_17, window_bounds = array<i64: 2, 32>}]} {
    %c0_i32 = arith.constant 0 : i32
    %0 = arith.cmpi eq, %arg0, %c0_i32 : i32
    %1 = arith.extui %0 : i1 to i32
    %c0_i32_0 = arith.constant 0 : i32
    %2 = arith.cmpi ne, %1, %c0_i32_0 : i32
    scf.if %2 {
      %c0_67 = arith.constant 0 : index
      %c0_68 = arith.constant 0 : index
      %c0_69 = arith.constant 0 : index
      %157 = vector.load %arg1[%c0_67, %c0_68, %c0_69] : memref<2x8x32xf32, #tpu.memory_space<vmem>>, vector<2x8x32xf32>
      %c0_70 = arith.constant 0 : index
      %c0_71 = arith.constant 0 : index
      %158 = vector.load %arg3[%c0_70, %c0_71] : memref<1x32xf32, #tpu.memory_space<vmem>>, vector<1x32xf32>
      %c0_72 = arith.constant 0 : index
      %c0_73 = arith.constant 0 : index
      %159 = vector.load %arg4[%c0_72, %c0_73] : memref<1x32xf32, #tpu.memory_space<vmem>>, vector<1x32xf32>
      %cst_74 = arith.constant dense<0.000000e+00> : vector<2x8xf32>
      %160 = vector.multi_reduction <add>, %157, %cst_74 [2] : vector<2x8x32xf32> to vector<2x8xf32>
      %161 = vector.shape_cast %160 : vector<2x8xf32> to vector<2x8x1xf32>
      %cst_75 = arith.constant 3.200000e+01 : f32
      %162 = vector.broadcast %cst_75 : f32 to vector<2x8x1xf32>
      %163 = arith.divf %161, %162 : vector<2x8x1xf32>
      %164 = vector.broadcast %163 : vector<2x8x1xf32> to vector<2x8x32xf32>
      %165 = arith.subf %157, %164 : vector<2x8x32xf32>
      %166 = arith.mulf %165, %165 : vector<2x8x32xf32>
      %cst_76 = arith.constant dense<0.000000e+00> : vector<2x8xf32>
      %167 = vector.multi_reduction <add>, %166, %cst_76 [2] : vector<2x8x32xf32> to vector<2x8xf32>
      %168 = vector.shape_cast %167 : vector<2x8xf32> to vector<2x8x1xf32>
      %cst_77 = arith.constant 3.200000e+01 : f32
      %169 = vector.broadcast %cst_77 : f32 to vector<2x8x1xf32>
      %170 = arith.divf %168, %169 : vector<2x8x1xf32>
      %171 = vector.broadcast %163 : vector<2x8x1xf32> to vector<2x8x32xf32>
      %172 = arith.subf %157, %171 : vector<2x8x32xf32>
      %cst_78 = arith.constant 9.99999996E-13 : f32
      %173 = vector.broadcast %cst_78 : f32 to vector<2x8x1xf32>
      %174 = arith.addf %170, %173 : vector<2x8x1xf32>
      %175 = math.rsqrt %174 : vector<2x8x1xf32>
      %176 = vector.broadcast %175 : vector<2x8x1xf32> to vector<2x8x32xf32>
      %177 = arith.mulf %172, %176 : vector<2x8x32xf32>
      %178 = vector.shape_cast %158 : vector<1x32xf32> to vector<1x1x32xf32>
      %179 = vector.broadcast %178 : vector<1x1x32xf32> to vector<2x8x32xf32>
      %180 = arith.mulf %177, %179 : vector<2x8x32xf32>
      %181 = vector.shape_cast %159 : vector<1x32xf32> to vector<1x1x32xf32>
      %182 = vector.broadcast %181 : vector<1x1x32xf32> to vector<2x8x32xf32>
      %183 = arith.addf %180, %182 : vector<2x8x32xf32>
      %c0_79 = arith.constant 0 : index
      %c0_80 = arith.constant 0 : index
      %c0_81 = arith.constant 0 : index
      %184 = vector.load %arg17[%c0_79, %c0_80, %c0_81] : memref<2x8x32xf32, #tpu.memory_space<vmem>>, vector<2x8x32xf32>
      tpu.vector_store %arg17[%c0_79, %c0_80, %c0_81], %183 {strides = array<i32>} : memref<2x8x32xf32, #tpu.memory_space<vmem>>, vector<2x8x32xf32>,
    } else {
    }
    %c0 = arith.constant 0 : index
    %c0_1 = arith.constant 0 : index
    %c0_2 = arith.constant 0 : index
    %3 = vector.load %arg17[%c0, %c0_1, %c0_2] : memref<2x8x32xf32, #tpu.memory_space<vmem>>, vector<2x8x32xf32>
    %c0_3 = arith.constant 0 : index
    %c0_4 = arith.constant 0 : index
    %c0_5 = arith.constant 0 : index
    %4 = vector.load %arg7[%c0_3, %c0_4, %c0_5] : memref<1x32x96xbf16, #tpu.memory_space<vmem>>, vector<1x32x96xbf16>
    %5 = vector.shape_cast %4 : vector<1x32x96xbf16> to vector<32x96xbf16>
    %c0_6 = arith.constant 0 : index
    %c0_7 = arith.constant 0 : index
    %c0_8 = arith.constant 0 : index
    %6 = vector.load %arg8[%c0_6, %c0_7, %c0_8] : memref<1x1x96xf32, #tpu.memory_space<vmem>>, vector<1x1x96xf32>
    %7 = vector.shape_cast %6 : vector<1x1x96xf32> to vector<1x96xf32>
    %c0_9 = arith.constant 0 : index
    %c0_10 = arith.constant 0 : index
    %c0_11 = arith.constant 0 : index
    %8 = vector.load %arg9[%c0_9, %c0_10, %c0_11] : memref<1x32x32xbf16, #tpu.memory_space<vmem>>, vector<1x32x32xbf16>
    %9 = vector.shape_cast %8 : vector<1x32x32xbf16> to vector<32x32xbf16>
    %c0_12 = arith.constant 0 : index
    %c0_13 = arith.constant 0 : index
    %c0_14 = arith.constant 0 : index
    %10 = vector.load %arg10[%c0_12, %c0_13, %c0_14] : memref<1x1x32xf32, #tpu.memory_space<vmem>>, vector<1x1x32xf32>
    %11 = vector.shape_cast %10 : vector<1x1x32xf32> to vector<1x32xf32>
    %c0_15 = arith.constant 0 : index
    %c0_16 = arith.constant 0 : index
    %c0_17 = arith.constant 0 : index
    %12 = vector.load %arg2[%c0_15, %c0_16, %c0_17] : memref<2x1x8xf32, #tpu.memory_space<vmem>>, vector<2x1x8xf32>
    %13 = vector.shape_cast %3 : vector<2x8x32xf32> to vector<16x32xf32>
    %14 = arith.truncf %13 : vector<16x32xf32> to vector<16x32xbf16>
    %cst = arith.constant dense<0.000000e+00> : vector<16x96xf32>
    %15 = tpu.matmul %14, %5, %cst {dimension_numbers = #tpu.dot_dimension_numbers<[1], [0], [0], [1], [0, 0, 1, 1], [], []>} : vector<16x32xbf16>, vector<32x96xbf16>, vector<16x96xf32> -> vector<16x96xf32>
    %16 = vector.broadcast %7 : vector<1x96xf32> to vector<16x96xf32>
    %17 = arith.addf %15, %16 : vector<16x96xf32>
    %18 = vector.shape_cast %17 : vector<16x96xf32> to vector<2x8x96xf32>
    %19 = vector.extract_strided_slice %18 {offsets = [0, 0, 0], sizes = [2, 8, 8], strides = [1, 1, 1]} : vector<2x8x96xf32> to vector<2x8x8xf32>
    %20 = vector.extract_strided_slice %18 {offsets = [0, 0, 8], sizes = [2, 8, 8], strides = [1, 1, 1]} : vector<2x8x96xf32> to vector<2x8x8xf32>
    %21 = vector.extract_strided_slice %18 {offsets = [0, 0, 16], sizes = [2, 8, 8], strides = [1, 1, 1]} : vector<2x8x96xf32> to vector<2x8x8xf32>
    %22 = vector.extract_strided_slice %18 {offsets = [0, 0, 24], sizes = [2, 8, 8], strides = [1, 1, 1]} : vector<2x8x96xf32> to vector<2x8x8xf32>
    %23 = tpu.concatenate %19, %20, %21, %22 in 0 : vector<2x8x8xf32>, vector<2x8x8xf32>, vector<2x8x8xf32>, vector<2x8x8xf32> -> vector<8x8x8xf32>
    %24 = arith.truncf %23 : vector<8x8x8xf32> to vector<8x8x8xbf16>
    %25 = vector.extract_strided_slice %18 {offsets = [0, 0, 32], sizes = [2, 8, 8], strides = [1, 1, 1]} : vector<2x8x96xf32> to vector<2x8x8xf32>
    %26 = vector.extract_strided_slice %18 {offsets = [0, 0, 40], sizes = [2, 8, 8], strides = [1, 1, 1]} : vector<2x8x96xf32> to vector<2x8x8xf32>
    %27 = vector.extract_strided_slice %18 {offsets = [0, 0, 48], sizes = [2, 8, 8], strides = [1, 1, 1]} : vector<2x8x96xf32> to vector<2x8x8xf32>
    %28 = vector.extract_strided_slice %18 {offsets = [0, 0, 56], sizes = [2, 8, 8], strides = [1, 1, 1]} : vector<2x8x96xf32> to vector<2x8x8xf32>
    %29 = tpu.concatenate %25, %26, %27, %28 in 0 : vector<2x8x8xf32>, vector<2x8x8xf32>, vector<2x8x8xf32>, vector<2x8x8xf32> -> vector<8x8x8xf32>
    %30 = arith.truncf %29 : vector<8x8x8xf32> to vector<8x8x8xbf16>
    %31 = vector.extract_strided_slice %18 {offsets = [0, 0, 64], sizes = [2, 8, 8], strides = [1, 1, 1]} : vector<2x8x96xf32> to vector<2x8x8xf32>
    %32 = vector.extract_strided_slice %18 {offsets = [0, 0, 72], sizes = [2, 8, 8], strides = [1, 1, 1]} : vector<2x8x96xf32> to vector<2x8x8xf32>
    %33 = vector.extract_strided_slice %18 {offsets = [0, 0, 80], sizes = [2, 8, 8], strides = [1, 1, 1]} : vector<2x8x96xf32> to vector<2x8x8xf32>
    %34 = vector.extract_strided_slice %18 {offsets = [0, 0, 88], sizes = [2, 8, 8], strides = [1, 1, 1]} : vector<2x8x96xf32> to vector<2x8x8xf32>
    %35 = tpu.concatenate %31, %32, %33, %34 in 0 : vector<2x8x8xf32>, vector<2x8x8xf32>, vector<2x8x8xf32>, vector<2x8x8xf32> -> vector<8x8x8xf32>
    %36 = arith.truncf %35 : vector<8x8x8xf32> to vector<8x8x8xbf16>
    "tpu.trace_start"() <{level = 10 : i32, message = "bqd,bkd->bqk"}> : () -> ()
    %cst_18 = arith.constant dense<0.000000e+00> : vector<8x8x8xf32>
    %37 = tpu.matmul %24, %30, %cst_18 {dimension_numbers = #tpu.dot_dimension_numbers<[2], [2], [1], [1], [0, 0, 0, 1, 1, 1], [0], [0]>} : vector<8x8x8xbf16>, vector<8x8x8xbf16>, vector<8x8x8xf32> -> vector<8x8x8xf32>
    "tpu.trace_stop"() : () -> ()
    %38 = tpu.concatenate %12, %12, %12, %12 in 0 : vector<2x1x8xf32>, vector<2x1x8xf32>, vector<2x1x8xf32>, vector<2x1x8xf32> -> vector<8x1x8xf32>
    %39 = vector.broadcast %38 : vector<8x1x8xf32> to vector<8x8x8xf32>
    %40 = arith.addf %37, %39 : vector<8x8x8xf32>
    %cst_19 = arith.constant dense<0xFF800000> : vector<8x8xf32>
    %41 = vector.multi_reduction <maximumf>, %40, %cst_19 [2] : vector<8x8x8xf32> to vector<8x8xf32>
    %42 = vector.shape_cast %41 : vector<8x8xf32> to vector<8x8x1xf32>
    %43 = vector.broadcast %42 : vector<8x8x1xf32> to vector<8x8x8xf32>
    %44 = arith.subf %40, %43 : vector<8x8x8xf32>
    %45 = math.exp %44 : vector<8x8x8xf32>
    %cst_20 = arith.constant dense<0.000000e+00> : vector<8x8xf32>
    %46 = vector.multi_reduction <add>, %45, %cst_20 [2] : vector<8x8x8xf32> to vector<8x8xf32>
    %47 = vector.shape_cast %46 : vector<8x8xf32> to vector<8x8x1xf32>
    %48 = tpu.reciprocal %47 {approx = true} : vector<8x8x1xf32> -> vector<8x8x1xf32>
    %49 = vector.broadcast %48 : vector<8x8x1xf32> to vector<8x8x8xf32>
    %50 = arith.mulf %45, %49 : vector<8x8x8xf32>
    %51 = arith.truncf %50 : vector<8x8x8xf32> to vector<8x8x8xbf16>
    "tpu.trace_start"() <{level = 10 : i32, message = "bqk,bkd->bqd"}> : () -> ()
    %cst_21 = arith.constant dense<0.000000e+00> : vector<8x8x8xf32>
    %52 = tpu.matmul %51, %36, %cst_21 {dimension_numbers = #tpu.dot_dimension_numbers<[2], [1], [1], [2], [0, 0, 0, 1, 1, 2], [0], [0]>} : vector<8x8x8xbf16>, vector<8x8x8xbf16>, vector<8x8x8xf32> -> vector<8x8x8xf32>
    "tpu.trace_stop"() : () -> ()
    %53 = vector.extract_strided_slice %52 {offsets = [0, 0, 0], sizes = [2, 8, 8], strides = [1, 1, 1]} : vector<8x8x8xf32> to vector<2x8x8xf32>
    %54 = vector.extract_strided_slice %52 {offsets = [2, 0, 0], sizes = [2, 8, 8], strides = [1, 1, 1]} : vector<8x8x8xf32> to vector<2x8x8xf32>
    %55 = vector.extract_strided_slice %52 {offsets = [4, 0, 0], sizes = [2, 8, 8], strides = [1, 1, 1]} : vector<8x8x8xf32> to vector<2x8x8xf32>
    %56 = vector.extract_strided_slice %52 {offsets = [6, 0, 0], sizes = [2, 8, 8], strides = [1, 1, 1]} : vector<8x8x8xf32> to vector<2x8x8xf32>
    %57 = tpu.concatenate %53, %54, %55, %56 in 2 : vector<2x8x8xf32>, vector<2x8x8xf32>, vector<2x8x8xf32>, vector<2x8x8xf32> -> vector<2x8x32xf32>
    %58 = vector.shape_cast %57 : vector<2x8x32xf32> to vector<16x32xf32>
    %59 = arith.truncf %58 : vector<16x32xf32> to vector<16x32xbf16>
    %cst_22 = arith.constant dense<0.000000e+00> : vector<16x32xf32>
    %60 = tpu.matmul %59, %9, %cst_22 {dimension_numbers = #tpu.dot_dimension_numbers<[1], [0], [0], [1], [0, 0, 1, 1], [], []>} : vector<16x32xbf16>, vector<32x32xbf16>, vector<16x32xf32> -> vector<16x32xf32>
    %61 = vector.broadcast %11 : vector<1x32xf32> to vector<16x32xf32>
    %62 = arith.addf %60, %61 : vector<16x32xf32>
    %63 = vector.shape_cast %62 : vector<16x32xf32> to vector<2x8x32xf32>
    %64 = arith.addf %3, %63 : vector<2x8x32xf32>
    %c0_23 = arith.constant 0 : index
    %c0_24 = arith.constant 0 : index
    %c0_25 = arith.constant 0 : index
    %65 = vector.load %arg5[%c0_23, %c0_24, %c0_25] : memref<1x1x32xf32, #tpu.memory_space<vmem>>, vector<1x1x32xf32>
    %66 = vector.shape_cast %65 : vector<1x1x32xf32> to vector<1x32xf32>
    %c0_26 = arith.constant 0 : index
    %c0_27 = arith.constant 0 : index
    %c0_28 = arith.constant 0 : index
    %67 = vector.load %arg6[%c0_26, %c0_27, %c0_28] : memref<1x1x32xf32, #tpu.memory_space<vmem>>, vector<1x1x32xf32>
    %68 = vector.shape_cast %67 : vector<1x1x32xf32> to vector<1x32xf32>
    %cst_29 = arith.constant dense<0.000000e+00> : vector<2x8xf32>
    %69 = vector.multi_reduction <add>, %64, %cst_29 [2] : vector<2x8x32xf32> to vector<2x8xf32>
    %70 = vector.shape_cast %69 : vector<2x8xf32> to vector<2x8x1xf32>
    %cst_30 = arith.constant 3.200000e+01 : f32
    %71 = vector.broadcast %cst_30 : f32 to vector<2x8x1xf32>
    %72 = arith.divf %70, %71 : vector<2x8x1xf32>
    %73 = vector.broadcast %72 : vector<2x8x1xf32> to vector<2x8x32xf32>
    %74 = arith.subf %64, %73 : vector<2x8x32xf32>
    %75 = arith.mulf %74, %74 : vector<2x8x32xf32>
    %cst_31 = arith.constant dense<0.000000e+00> : vector<2x8xf32>
    %76 = vector.multi_reduction <add>, %75, %cst_31 [2] : vector<2x8x32xf32> to vector<2x8xf32>
    %77 = vector.shape_cast %76 : vector<2x8xf32> to vector<2x8x1xf32>
    %cst_32 = arith.constant 3.200000e+01 : f32
    %78 = vector.broadcast %cst_32 : f32 to vector<2x8x1xf32>
    %79 = arith.divf %77, %78 : vector<2x8x1xf32>
    %80 = vector.broadcast %72 : vector<2x8x1xf32> to vector<2x8x32xf32>
    %81 = arith.subf %64, %80 : vector<2x8x32xf32>
    %cst_33 = arith.constant 9.99999996E-13 : f32
    %82 = vector.broadcast %cst_33 : f32 to vector<2x8x1xf32>
    %83 = arith.addf %79, %82 : vector<2x8x1xf32>
    %84 = math.rsqrt %83 : vector<2x8x1xf32>
    %85 = vector.broadcast %84 : vector<2x8x1xf32> to vector<2x8x32xf32>
    %86 = arith.mulf %81, %85 : vector<2x8x32xf32>
    %87 = vector.shape_cast %66 : vector<1x32xf32> to vector<1x1x32xf32>
    %88 = vector.broadcast %87 : vector<1x1x32xf32> to vector<2x8x32xf32>
    %89 = arith.mulf %86, %88 : vector<2x8x32xf32>
    %90 = vector.shape_cast %68 : vector<1x32xf32> to vector<1x1x32xf32>
    %91 = vector.broadcast %90 : vector<1x1x32xf32> to vector<2x8x32xf32>
    %92 = arith.addf %89, %91 : vector<2x8x32xf32>
    %93 = vector.shape_cast %92 : vector<2x8x32xf32> to vector<16x32xf32>
    %c0_34 = arith.constant 0 : index
    %c0_35 = arith.constant 0 : index
    %c0_36 = arith.constant 0 : index
    %94 = vector.load %arg13[%c0_34, %c0_35, %c0_36] : memref<1x32x64xbf16, #tpu.memory_space<vmem>>, vector<1x32x64xbf16>
    %95 = vector.shape_cast %94 : vector<1x32x64xbf16> to vector<32x64xbf16>
    %c0_37 = arith.constant 0 : index
    %c0_38 = arith.constant 0 : index
    %c0_39 = arith.constant 0 : index
    %96 = vector.load %arg14[%c0_37, %c0_38, %c0_39] : memref<1x1x64xf32, #tpu.memory_space<vmem>>, vector<1x1x64xf32>
    %97 = vector.shape_cast %96 : vector<1x1x64xf32> to vector<1x64xf32>
    %98 = arith.truncf %93 : vector<16x32xf32> to vector<16x32xbf16>
    %cst_40 = arith.constant dense<0.000000e+00> : vector<16x64xf32>
    %99 = tpu.matmul %98, %95, %cst_40 {dimension_numbers = #tpu.dot_dimension_numbers<[1], [0], [0], [1], [0, 0, 1, 1], [], []>} : vector<16x32xbf16>, vector<32x64xbf16>, vector<16x64xf32> -> vector<16x64xf32>
    %100 = vector.broadcast %97 : vector<1x64xf32> to vector<16x64xf32>
    %101 = arith.addf %99, %100 : vector<16x64xf32>
    %cst_41 = arith.constant 5.000000e-01 : f32
    %102 = vector.broadcast %cst_41 : f32 to vector<16x64xf32>
    %103 = arith.mulf %102, %101 : vector<16x64xf32>
    %cst_42 = arith.constant 4.471500e-02 : f32
    %104 = vector.broadcast %cst_42 : f32 to vector<16x64xf32>
    %105 = arith.mulf %104, %101 : vector<16x64xf32>
    %106 = arith.mulf %105, %101 : vector<16x64xf32>
    %107 = arith.mulf %106, %101 : vector<16x64xf32>
    %108 = arith.addf %101, %107 : vector<16x64xf32>
    %cst_43 = arith.constant 0.797884583 : f32
    %109 = vector.broadcast %cst_43 : f32 to vector<16x64xf32>
    %110 = arith.mulf %109, %108 : vector<16x64xf32>
    %111 = math.tanh %110 : vector<16x64xf32>
    %cst_44 = arith.constant 1.000000e+00 : f32
    %112 = vector.broadcast %cst_44 : f32 to vector<16x64xf32>
    %113 = arith.addf %112, %111 : vector<16x64xf32>
    %114 = arith.mulf %103, %113 : vector<16x64xf32>
    %c0_45 = arith.constant 0 : index
    %c0_46 = arith.constant 0 : index
    %c0_47 = arith.constant 0 : index
    %115 = vector.load %arg15[%c0_45, %c0_46, %c0_47] : memref<1x64x32xbf16, #tpu.memory_space<vmem>>, vector<1x64x32xbf16>
    %116 = vector.shape_cast %115 : vector<1x64x32xbf16> to vector<64x32xbf16>
    %c0_48 = arith.constant 0 : index
    %c0_49 = arith.constant 0 : index
    %c0_50 = arith.constant 0 : index
    %117 = vector.load %arg16[%c0_48, %c0_49, %c0_50] : memref<1x1x32xf32, #tpu.memory_space<vmem>>, vector<1x1x32xf32>
    %118 = vector.shape_cast %117 : vector<1x1x32xf32> to vector<1x32xf32>
    %119 = arith.truncf %114 : vector<16x64xf32> to vector<16x64xbf16>
    %cst_51 = arith.constant dense<0.000000e+00> : vector<16x32xf32>
    %120 = tpu.matmul %119, %116, %cst_51 {dimension_numbers = #tpu.dot_dimension_numbers<[1], [0], [0], [1], [0, 0, 1, 1], [], []>} : vector<16x64xbf16>, vector<64x32xbf16>, vector<16x32xf32> -> vector<16x32xf32>
    %121 = vector.broadcast %118 : vector<1x32xf32> to vector<16x32xf32>
    %122 = arith.addf %120, %121 : vector<16x32xf32>
    %123 = vector.shape_cast %122 : vector<16x32xf32> to vector<2x8x32xf32>
    %124 = arith.addf %92, %123 : vector<2x8x32xf32>
    %c0_52 = arith.constant 0 : index
    %c0_53 = arith.constant 0 : index
    %c0_54 = arith.constant 0 : index
    %125 = vector.load %arg11[%c0_52, %c0_53, %c0_54] : memref<1x1x32xf32, #tpu.memory_space<vmem>>, vector<1x1x32xf32>
    %126 = vector.shape_cast %125 : vector<1x1x32xf32> to vector<1x32xf32>
    %c0_55 = arith.constant 0 : index
    %c0_56 = arith.constant 0 : index
    %c0_57 = arith.constant 0 : index
    %127 = vector.load %arg12[%c0_55, %c0_56, %c0_57] : memref<1x1x32xf32, #tpu.memory_space<vmem>>, vector<1x1x32xf32>
    %128 = vector.shape_cast %127 : vector<1x1x32xf32> to vector<1x32xf32>
    %cst_58 = arith.constant dense<0.000000e+00> : vector<2x8xf32>
    %129 = vector.multi_reduction <add>, %124, %cst_58 [2] : vector<2x8x32xf32> to vector<2x8xf32>
    %130 = vector.shape_cast %129 : vector<2x8xf32> to vector<2x8x1xf32>
    %cst_59 = arith.constant 3.200000e+01 : f32
    %131 = vector.broadcast %cst_59 : f32 to vector<2x8x1xf32>
    %132 = arith.divf %130, %131 : vector<2x8x1xf32>
    %133 = vector.broadcast %132 : vector<2x8x1xf32> to vector<2x8x32xf32>
    %134 = arith.subf %124, %133 : vector<2x8x32xf32>
    %135 = arith.mulf %134, %134 : vector<2x8x32xf32>
    %cst_60 = arith.constant dense<0.000000e+00> : vector<2x8xf32>
    %136 = vector.multi_reduction <add>, %135, %cst_60 [2] : vector<2x8x32xf32> to vector<2x8xf32>
    %137 = vector.shape_cast %136 : vector<2x8xf32> to vector<2x8x1xf32>
    %cst_61 = arith.constant 3.200000e+01 : f32
    %138 = vector.broadcast %cst_61 : f32 to vector<2x8x1xf32>
    %139 = arith.divf %137, %138 : vector<2x8x1xf32>
    %140 = vector.broadcast %132 : vector<2x8x1xf32> to vector<2x8x32xf32>
    %141 = arith.subf %124, %140 : vector<2x8x32xf32>
    %cst_62 = arith.constant 9.99999996E-13 : f32
    %142 = vector.broadcast %cst_62 : f32 to vector<2x8x1xf32>
    %143 = arith.addf %139, %142 : vector<2x8x1xf32>
    %144 = math.rsqrt %143 : vector<2x8x1xf32>
    %145 = vector.broadcast %144 : vector<2x8x1xf32> to vector<2x8x32xf32>
    %146 = arith.mulf %141, %145 : vector<2x8x32xf32>
    %147 = vector.shape_cast %126 : vector<1x32xf32> to vector<1x1x32xf32>
    %148 = vector.broadcast %147 : vector<1x1x32xf32> to vector<2x8x32xf32>
    %149 = arith.mulf %146, %148 : vector<2x8x32xf32>
    %150 = vector.shape_cast %128 : vector<1x32xf32> to vector<1x1x32xf32>
    %151 = vector.broadcast %150 : vector<1x1x32xf32> to vector<2x8x32xf32>
    %152 = arith.addf %149, %151 : vector<2x8x32xf32>
    %c0_63 = arith.constant 0 : index
    %c0_64 = arith.constant 0 : index
    %c0_65 = arith.constant 0 : index
    %153 = vector.load %arg17[%c0_63, %c0_64, %c0_65] : memref<2x8x32xf32, #tpu.memory_space<vmem>>, vector<2x8x32xf32>
    tpu.vector_store %arg17[%c0_63, %c0_64, %c0_65], %152 {strides = array<i32>} : memref<2x8x32xf32, #tpu.memory_space<vmem>>, vector<2x8x32xf32>,
    %c1_i32 = arith.constant 1 : i32
    %154 = arith.cmpi eq, %arg0, %c1_i32 : i32
    %155 = arith.extui %154 : i1 to i32
    %c0_i32_66 = arith.constant 0 : i32
    %156 = arith.cmpi ne, %155, %c0_i32_66 : i32
    scf.if %156 {
      %157 = vector.extract_strided_slice %152 {offsets = [0, 0, 0], sizes = [2, 1, 32], strides = [1, 1, 1]} : vector<2x8x32xf32> to vector<2x1x32xf32>
      %158 = vector.shape_cast %157 : vector<2x1x32xf32> to vector<2x32xf32>
      %159 = arith.mulf %158, %158 : vector<2x32xf32>
      %cst_67 = arith.constant dense<0.000000e+00> : vector<2xf32>
      %160 = vector.multi_reduction <add>, %159, %cst_67 [1] : vector<2x32xf32> to vector<2xf32>
      %161 = vector.shape_cast %160 : vector<2xf32> to vector<2x1xf32>
      %162 = math.sqrt %161 : vector<2x1xf32>
      %cst_68 = arith.constant 9.99999996E-13 : f32
      %163 = vector.broadcast %cst_68 : f32 to vector<2x1xf32>
      %164 = arith.maximumf %162, %163 : vector<2x1xf32>
      %165 = tpu.reciprocal %164 {approx = true} : vector<2x1xf32> -> vector<2x1xf32>
      %166 = vector.broadcast %165 : vector<2x1xf32> to vector<2x32xf32>
      %167 = arith.mulf %158, %166 : vector<2x32xf32>
      %c0_69 = arith.constant 0 : index
      %c0_70 = arith.constant 0 : index
      %168 = vector.load %arg18[%c0_69, %c0_70] : memref<2x32xf32, #tpu.memory_space<vmem>>, vector<2x32xf32>
      tpu.vector_store %arg18[%c0_69, %c0_70], %167 {strides = array<i32>} : memref<2x32xf32, #tpu.memory_space<vmem>>, vector<2x32xf32>,
    } else {
    }
    return
  }
  func.func @transform_0(%arg0: i32) -> (i32, i32, i32) {
    %c0_i32 = arith.constant 0 : i32
    %c0_i32_0 = arith.constant 0 : i32
    %c0_i32_1 = arith.constant 0 : i32
    %c0_i32_2 = arith.constant 0 : i32
    return %c0_i32, %c0_i32_0, %c0_i32_1 : i32, i32, i32
  }
  func.func @transform_1(%arg0: i32) -> (i32, i32, i32) {
    %c0_i32 = arith.constant 0 : i32
    %c0_i32_0 = arith.constant 0 : i32
    %c0_i32_1 = arith.constant 0 : i32
    %c0_i32_2 = arith.constant 0 : i32
    return %c0_i32, %c0_i32_0, %c0_i32_1 : i32, i32, i32
  }
  func.func @transform_2(%arg0: i32) -> (i32, i32) {
    %c0_i32 = arith.constant 0 : i32
    %c0_i32_0 = arith.constant 0 : i32
    %c0_i32_1 = arith.constant 0 : i32
    return %c0_i32, %c0_i32_0 : i32, i32
  }
  func.func @transform_3(%arg0: i32) -> (i32, i32) {
    %c0_i32 = arith.constant 0 : i32
    %c0_i32_0 = arith.constant 0 : i32
    %c0_i32_1 = arith.constant 0 : i32
    return %c0_i32, %c0_i32_0 : i32, i32
  }
  func.func @transform_4(%arg0: i32) -> (i32, i32, i32) {
    %c0_i32 = arith.constant 0 : i32
    %c0_i32_0 = arith.constant 0 : i32
    %c0_i32_1 = arith.constant 0 : i32
    return %arg0, %c0_i32, %c0_i32_0 : i32, i32, i32
  }
  func.func @transform_5(%arg0: i32) -> (i32, i32, i32) {
    %c0_i32 = arith.constant 0 : i32
    %c0_i32_0 = arith.constant 0 : i32
    %c0_i32_1 = arith.constant 0 : i32
    return %arg0, %c0_i32, %c0_i32_0 : i32, i32, i32
  }
  func.func @transform_6(%arg0: i32) -> (i32, i32, i32) {
    %c0_i32 = arith.constant 0 : i32
    %c0_i32_0 = arith.constant 0 : i32
    %c0_i32_1 = arith.constant 0 : i32
    return %arg0, %c0_i32, %c0_i32_0 : i32, i32, i32
  }
  func.func @transform_7(%arg0: i32) -> (i32, i32, i32) {
    %c0_i32 = arith.constant 0 : i32
    %c0_i32_0 = arith.constant 0 : i32
    %c0_i32_1 = arith.constant 0 : i32
    return %arg0, %c0_i32, %c0_i32_0 : i32, i32, i32
  }
  func.func @transform_8(%arg0: i32) -> (i32, i32, i32) {
    %c0_i32 = arith.constant 0 : i32
    %c0_i32_0 = arith.constant 0 : i32
    %c0_i32_1 = arith.constant 0 : i32
    return %arg0, %c0_i32, %c0_i32_0 : i32, i32, i32
  }
  func.func @transform_9(%arg0: i32) -> (i32, i32, i32) {
    %c0_i32 = arith.constant 0 : i32
    %c0_i32_0 = arith.constant 0 : i32
    %c0_i32_1 = arith.constant 0 : i32
    return %arg0, %c0_i32, %c0_i32_0 : i32, i32, i32
  }
  func.func @transform_10(%arg0: i32) -> (i32, i32, i32) {
    %c0_i32 = arith.constant 0 : i32
    %c0_i32_0 = arith.constant 0 : i32
    %c0_i32_1 = arith.constant 0 : i32
    return %arg0, %c0_i32, %c0_i32_0 : i32, i32, i32
  }
  func.func @transform_11(%arg0: i32) -> (i32, i32, i32) {
    %c0_i32 = arith.constant 0 : i32
    %c0_i32_0 = arith.constant 0 : i32
    %c0_i32_1 = arith.constant 0 : i32
    return %arg0, %c0_i32, %c0_i32_0 : i32, i32, i32
  }
  func.func @transform_12(%arg0: i32) -> (i32, i32, i32) {
    %c0_i32 = arith.constant 0 : i32
    %c0_i32_0 = arith.constant 0 : i32
    %c0_i32_1 = arith.constant 0 : i32
    return %arg0, %c0_i32, %c0_i32_0 : i32, i32, i32
  }
  func.func @transform_13(%arg0: i32) -> (i32, i32, i32) {
    %c0_i32 = arith.constant 0 : i32
    %c0_i32_0 = arith.constant 0 : i32
    %c0_i32_1 = arith.constant 0 : i32
    return %arg0, %c0_i32, %c0_i32_0 : i32, i32, i32
  }
  func.func @transform_14(%arg0: i32) -> (i32, i32, i32) {
    %c0_i32 = arith.constant 0 : i32
    %c0_i32_0 = arith.constant 0 : i32
    %c0_i32_1 = arith.constant 0 : i32
    return %arg0, %c0_i32, %c0_i32_0 : i32, i32, i32
  }
  func.func @transform_15(%arg0: i32) -> (i32, i32, i32) {
    %c0_i32 = arith.constant 0 : i32
    %c0_i32_0 = arith.constant 0 : i32
    %c0_i32_1 = arith.constant 0 : i32
    return %arg0, %c0_i32, %c0_i32_0 : i32, i32, i32
  }
  func.func @transform_16(%arg0: i32) -> (i32, i32, i32) {
    %c0_i32 = arith.constant 0 : i32
    %c0_i32_0 = arith.constant 0 : i32
    %c0_i32_1 = arith.constant 0 : i32
    %c0_i32_2 = arith.constant 0 : i32
    return %c0_i32, %c0_i32_0, %c0_i32_1 : i32, i32, i32
  }
  func.func @transform_17(%arg0: i32) -> (i32, i32) {
    %c0_i32 = arith.constant 0 : i32
    %c0_i32_0 = arith.constant 0 : i32
    %c0_i32_1 = arith.constant 0 : i32
    return %c0_i32, %c0_i32_0 : i32, i32
  }
}

</mosaic_0001>

<bundles_post_ra>
// kernel: blip1_wrapper_forward.3
= control target key start
LH: loop header
LB: loop body
LE: loop exit
PB: predicated region body
PF: predicated region fallthrough
CT: control target
= control target key end

     0   :  { %v218_v0 = vmov 0   ;;  %vm131_vm0 = vcmask 523264   ;;  %vm181_vm1 = vcmask 257024   ;;  %s298_s1 = inlined_call_operand.vmem [shape: bf16[192,32], index: 1, kind: input, shape index: {}]   ;;  %s299_s0 = inlined_call_operand.vmem [shape: f32[2,4,192], index: 0, kind: input, shape index: {}]   ;;  %s300_s2 = inlined_call_operand.vmem [shape: f32[1,32], index: 2, kind: input, shape index: {}]   ;;  %s301_s3 = inlined_call_operand.vmem [shape: f32[4,32], index: 3, kind: input, shape index: {}]   ;;  %s302_s4 = inlined_call_operand.vmem [shape: f32[2,4,32], index: 4, kind: output, shape index: {}]  }
   0x1   :  { %135 = vmatprep.subr.bf16.mxu0 %v218_v0  ;;  %v203_v1 = vld [vmem:[%s298_s1] sm:$0xff]   ;;  %v204_v2 = vld [vmem:[%s298_s1 + $0x8] sm:$0xff]   ;;  %v205_v3 = vld [vmem:[%s298_s1 + $0x10] sm:$0xff]  }
   0x2   :  { %136 = vmatpush1.bf16.msra.mxu0 %v203_v1  ;;  %v206_v4 = vld [vmem:[%s298_s1 + $0x18] sm:$0xff]   ;;  %v217_v5 = vld [vmem:[%s299_s0 + $0x4] ss:$8 sps:$4 sm:$0xff]   ;;  %v209_v9 = vld [vmem:[%s298_s1 + $0x30] sm:$0xff]  }
   0x3   :  { %137 = vmatprep.subr.bf16.mxu0 %v218_v0  ;;  %v207_v6 = vld [vmem:[%s298_s1 + $0x20] sm:$0xff]   ;;  %v52_v7 = vpack.c.bf16 %v217_v5, %v217_v5  ;;  %v208_v8 = vld [vmem:[%s298_s1 + $0x28] sm:$0xff]   ;;  %v210_v10 = vld [vmem:[%s298_s1 + $0x38] sm:$0xff]  }
   0x4   :  { %v211_v11 = vld [vmem:[%s298_s1 + $0x40] sm:$0xff]   ;;  %v212_v12 = vld [vmem:[%s298_s1 + $0x48] sm:$0xff]   ;;  %v213_v13 = vld [vmem:[%s298_s1 + $0x50] sm:$0xff]  }
   0x5   :  { %201 = vmatprep.mubr.msk.bf16.mxu0 %vm131_vm0, %v52_v7  ;;  %v215_v14 = vld [vmem:[%s299_s0] ss:$8 sps:$4 sm:$0xff]   ;;  %v214_v15 = vld [vmem:[%s298_s1 + $0x58] sm:$0xff]  }
   0x6   :  { %138 = vmatpush1.bf16.msra.mxu0 %v204_v2  ;;  %v51_v16 = vpack.c.bf16 %v215_v14, %v215_v14  ;;  %v188_v17 = vld [vmem:[%s300_s2] ss:$0 sm:$0xff] }
   0x7   :  { %139 = vmatprep.subr.bf16.mxu0 %v218_v0  ;;  %v178_v19 = vld [vmem:[%s301_s3] sm:$0xf] }
   0xa   :  { %140 = vmatpush1.bf16.msra.mxu0 %v205_v3 }
   0xb   :  { %141 = vmatprep.subr.bf16.mxu0 %v218_v0 }
   0xe   :  { %142 = vmatpush1.bf16.msra.mxu0 %v206_v4 }
   0xf   :  { %143 = vmatprep.subr.bf16.mxu0 %v218_v0 }
  0x12   :  { %144 = vmatpush1.bf16.msra.mxu0 %v207_v6 }
  0x13   :  { %145 = vmatprep.subr.bf16.mxu0 %v218_v0 }
  0x16   :  { %146 = vmatpush1.bf16.msra.mxu0 %v208_v8 }
  0x17   :  { %147 = vmatprep.subr.bf16.mxu0 %v218_v0 }
  0x1a   :  { %148 = vmatpush1.bf16.msra.mxu0 %v209_v9 }
  0x1b   :  { %149 = vmatprep.subr.bf16.mxu0 %v218_v0 }
  0x1e   :  { %150 = vmatpush1.bf16.msra.mxu0 %v210_v10 }
  0x1f   :  { %151 = vmatprep.subr.bf16.mxu0 %v218_v0 }
  0x22   :  { %152 = vmatpush1.bf16.msra.mxu0 %v211_v11 }
  0x23   :  { %153 = vmatprep.subr.bf16.mxu0 %v218_v0 }
  0x26   :  { %154 = vmatpush1.bf16.msra.mxu0 %v212_v12 }
  0x27   :  { %155 = vmatprep.subr.bf16.mxu0 %v218_v0 }
  0x2a   :  { %156 = vmatpush1.bf16.msra.mxu0 %v213_v13 }
  0x2b   :  { %157 = vmatprep.subr.bf16.mxu0 %v218_v0 }
  0x2e   :  { %158 = vmatpush1.bf16.msra.mxu0 %v214_v15 }
  0x31   :  { %168 = vmatmul.mubr.bf16.vlgmr.msra.gmra.mrb[0].mxu0 %v51_v16 }
 0x104   :  { %v169_v18 = vpop.f32.mrb[0].mxu0 }
 0x105   :  { %v170_v20 = vadd.f32 %v188_v17, %v169_v18  ;;  %v171_v21 = vpop.f32.mrb[1].mxu0 }
 0x106   :  { %v172_v22 = vpop.f32.mrb[2].mxu0 }
 0x107   :  { %v176_v23 = vcombine.high %v170_v20, %v170_v20  ;;  %v179_v24 = vadd.f32 %v178_v19, %v170_v20  ;;  %v173_v25 = vpop.f32.mrb[3].mxu0 }
 0x109   :  { %v180_v26 = vadd.f32 %v178_v19, %v176_v23  ;;  %182 = vst.msk [vmem:[%s302_s4] sm:$0xf] %vm181_vm1, %v179_v24 }
 0x10b   :  { %183 = vst.msk [vmem:[%s302_s4 + $0x4] sm:$0xf] %vm181_vm1, %v180_v26 }

// kernel: blip1_wrapper_forward.5
= control target key start
LH: loop header
LB: loop body
LE: loop exit
PB: predicated region body
PF: predicated region fallthrough
CT: control target
= control target key end

     0   :  { %s3282_s0 = inlined_call_operand.vmem [shape: f32[2,8,32], index: 0, kind: input, shape index: {}]   ;;  %s3283_s1 = inlined_call_operand.vmem [shape: f32[2,1,8], index: 1, kind: input, shape index: {}]   ;;  %s3284_s2 = inlined_call_operand.vmem [shape: f32[1,32], index: 2, kind: input, shape index: {}]   ;;  %s3285_s3 = inlined_call_operand.vmem [shape: f32[1,32], index: 3, kind: input, shape index: {}]   ;;  %s3286_s4 = inlined_call_operand.vmem [shape: f32[2,1,32], index: 4, kind: input, shape index: {}]   ;;  %s3287_s5 = inlined_call_operand.vmem [shape: f32[2,1,32], index: 5, kind: input, shape index: {}]   ;;  %s3288_s6 = inlined_call_operand.vmem [shape: bf16[2,32,96], index: 6, kind: input, shape index: {}]   ;;  %s3289_s7 = inlined_call_operand.vmem [shape: f32[2,1,96], index: 7, kind: input, shape index: {}]   ;;  %s3290_s8 = inlined_call_operand.vmem [shape: bf16[2,32,32], index: 8, kind: input, shape index: {}]   ;;  %s3291_s9 = inlined_call_operand.vmem [shape: f32[2,1,32], index: 9, kind: input, shape index: {}]   ;;  %s3292_s10 = inlined_call_operand.vmem [shape: f32[2,1,32], index: 10, kind: input, shape index: {}]   ;;  %s3293_s11 = inlined_call_operand.vmem [shape: f32[2,1,32], index: 11, kind: input, shape index: {}]   ;;  %s3294_s12 = inlined_call_operand.vmem [shape: bf16[2,32,64], index: 12, kind: input, shape index: {}]   ;;  %s3295_s13 = inlined_call_operand.vmem [shape: f32[2,1,64], index: 13, kind: input, shape index: {}]   ;;  %s3296_s14 = inlined_call_operand.vmem [shape: bf16[2,64,32], index: 14, kind: input, shape index: {}]   ;;  %s3297_s15 = inlined_call_operand.vmem [shape: f32[2,1,32], index: 15, kind: input, shape index: {}]   ;;  %s3298_s16 = inlined_call_operand.hbm [shape: f32[2,8,32], index: 16, kind: output, shape index: {0}]   ;;  %s3299_s17 = inlined_call_operand.hbm [shape: f32[2,32], index: 17, kind: output, shape index: {1}]  }
   0x1   :  { %3305 = sst [smem:[#allocation9_spill]] %s3282_s0 }
   0x2   :  { %3306 = sst [smem:[#allocation10_spill]] %s3283_s1 }
   0x3   :  { %3307 = sst [smem:[#allocation11_spill]] %s3286_s4 }
   0x4   :  { %3308 = sst [smem:[#allocation12_spill]] %s3287_s5 }
   0x5   :  { %3309 = sst [smem:[#allocation13_spill]] %s3288_s6 }
   0x6   :  { %3310 = sst [smem:[#allocation14_spill]] %s3290_s8 }
   0x7   :  { %3311 = sst [smem:[#allocation15_spill]] %s3298_s16 }
   0x8   :  { %3312 = sst [smem:[#allocation16_spill]] %s3299_s17 }
   0x9   :  { %23 = vsyncpa [#allocation3], 0 }
   0xa   :  { %24 = vsyncpa [#allocation5], 0  ;;  %s2869_s24 = smov 0  }
   0xb LB: > { %3313 = sst [smem:[#allocation8_spill]] %s2764_s24  ;;  %s2875_s25 = sadd.s32 4294967295, %s2764_s24   ;;  %s2764_s24 = sphi %s2869_s24, %s30_s24  }
   0xc   : > { %p2332_p0 = scmp.ge.s32.totalorder %s2764_s24, 1  ;;  %p576_p1 = scmp.lt.s32.totalorder %s2764_s24, 3 }
   0xe   : > { %p577_p2 = pnand %p2332_p0, %p576_p1 }
   0xf   : > { %p662_p3 = scmp.lt.s32.totalorder (!%p577_p2), %s2875_s25, 1  ;;  %s3316_s6 = sld [smem:[#allocation13_spill]] (!%p577_p2) }
  0x10   : > { %580 = sbr.rel (%p577_p2) target bundleno = 3298 (0xce2), region = 84  ;;  %s3317_s8 = sld [smem:[#allocation14_spill]] (!%p577_p2) }
  0x11   : > { %p2341_p4 = scmp.ne.s32.totalorder (!%p577_p2), %s2875_s25, 0 }
  0x17   : > { %s2881_s26 = scalar_select %p662_p3, %s2875_s25, 1 }
  0x18   : > { %710 = sbr.rel (%p2341_p4) target bundleno = 349 (0x15d), region = 88  ;;  %s3318_s22 = sld [smem:[#allocation9_spill]] (!%p2341_p4)  ;;  %vm715_vm0 = vcmask (!%p2341_p4), 261120   ;;  %v2342_v21 = vld [vmem:[%s3284_s2] ss:$0 sm:$0xff] (!%p2341_p4) }
  0x19   : > { %s2391_s19 = sshll.u32 %s2881_s26, 4  ;;  %s686_s5 = scalar_lea.vmem %s3292_s10, %s2881_s26  ;;  %v2343_v23 = vld [vmem:[%s3285_s3] ss:$0 sm:$0xff] (!%p2341_p4) }
  0x1a   : > { %s2899_s27 = scalar_lea.vmem %s3316_s6, %s2391_s19  ;;  %s2904_s17 = scalar_lea.vmem %s3317_s8, %s2391_s19 }
  0x1b   : > { %s689_s21 = scalar_lea.vmem %s3293_s11, %s2881_s26  ;;  %s2921_s6 = scalar_lea.vmem %s3294_s12, %s2391_s19 }
  0x1c   : > { %s697_s8 = scalar_lea.vmem %s3295_s13, %s2881_s26  ;;  %s2394_s4 = sshll.u32 %s2881_s26, 5 }
  0x1d   : > { %s2931_s0 = scalar_lea.vmem %s3296_s14, %s2394_s4  ;;  %s705_s1 = scalar_lea.vmem %s3297_s15, %s2881_s26 }
  0x1e   : > { %v711_v0 = vld [vmem:[%s3318_s22] sm:$0xff] (!%p2341_p4)  ;;  %v712_v1 = vld [vmem:[%s3318_s22 + $0x8] sm:$0xff] (!%p2341_p4) }
  0x1f   : > { %v716_v2 = vsel %vm715_vm0, %v711_v0, 0.0  ;;  %v719_v3 = vsel %vm715_vm0, %v712_v1, 0.0 }
  0x20   : > { %717 = vadd.xlane.f32.xlu0 %v716_v2 }
  0x24   : > { %720 = vadd.xlane.f32.xlu0 %v719_v3 }
  0xad   : > { %v718_v4 = vpop.xlane.xlu0 %717 }
  0xae   : > { %v723_v5 = vmul.f32 0.03125, %v718_v4 }
  0xb0   : > { %v725_v6 = vsub.f32 %v711_v0, %v723_v5 }
  0xb1   : > { %v721_v7 = vpop.xlane.xlu0 %720 }
  0xb2   : > { %v724_v8 = vmul.f32 0.03125, %v721_v7  ;;  %v727_v9 = vmul.f32 %v725_v6, %v725_v6 }
  0xb4   : > { %v726_v10 = vsub.f32 %v712_v1, %v724_v8  ;;  %v729_v11 = vsel %vm715_vm0, %v727_v9, 0.0 }
  0xb5   : > { %730 = vadd.xlane.f32.xlu1 %v729_v11 }
  0xb6   : > { %v728_v12 = vmul.f32 %v726_v10, %v726_v10 }
  0xb8   : > { %v732_v13 = vsel %vm715_vm0, %v728_v12, 0.0 }
  0xb9   : > { %733 = vadd.xlane.f32.xlu1 %v732_v13 }
 0x142   : > { %v731_v14 = vpop.xlane.xlu1 %730 }
 0x143   : > { %v735_v15 = vmul.f32 0.03125, %v731_v14 }
 0x145   : > { %v737_v16 = vadd.f32 1e-12, %v735_v15 }
 0x146   : > { %v734_v17 = vpop.xlane.xlu1 %733 }
 0x147   : > { %2606 = vrsqrt.f32 %v737_v16  ;;  %v736_v18 = vmul.f32 0.03125, %v734_v17 }
 0x149   : > { %v738_v19 = vadd.f32 1e-12, %v736_v18 }
 0x14b   : > { %2608 = vrsqrt.f32 %v738_v19 }
 0x151   : > { %v2607_v20 = vpop.eup %2606 }
 0x152   : > { %v741_v22 = vmul.f32 %v2607_v20, %v725_v6 }
 0x154   : > { %v749_v24 = vmul.f32 %v2342_v21, %v741_v22 }
 0x155   : > { %v2609_v25 = vpop.eup %2608 }
 0x156   : > { %v757_v26 = vadd.f32 %v2343_v23, %v749_v24  ;;  %v742_v27 = vmul.f32 %v2609_v25, %v726_v10 }
 0x158   : > { %759 = vst.msk [vmem:[#allocation2] sm:$0xff] %vm715_vm0, %v757_v26  ;;  %v750_v28 = vmul.f32 %v2342_v21, %v742_v27 }
 0x15a   : > { %v758_v29 = vadd.f32 %v2343_v23, %v750_v28 }
 0x15c   : > { %760 = vst.msk [vmem:[#allocation2 + $0x8] sm:$0xff] %vm715_vm0, %v758_v29 }
 0x15d PF: > { %v2640_v30 = vld [vmem:[%s2899_s27] sm:$0xff]   ;;  %v2766_v31 = vmov 0.0   ;;  %v2641_v32 = vld [vmem:[%s2899_s27 + $0x8] sm:$0xff]   ;;  %vm2767_vm1 = vmmov 0   ;;  %vm794_vm2 = vcmask 261120   ;;  %s3319_s30 = scalar_lea.vmem %s3289_s7, %s2881_s26  ;;  %s2768_s20 = smov 104  }
 0x15e   : > { %2441 = vmatprep.subr.bf16.mxu0 %v2766_v31  ;;  %2449 = vmatprep.subr.bf16.mxu1 %v2766_v31  ;;  %v2344_v36 = vld [vmem:[%s3319_s30] ss:$0 sm:$0xff]  ;;  %s2769_s19 = smov 120   ;;  %s2770_s23 = smov 96   ;;  %vm882_vm3 = vcmask 64512   ;;  %vm1373_vm4 = vcmask 1043456  }
 0x15f   : > { %2442 = vmatpush3.bf16.msra.mxu0 %v2640_v30  ;;  %2445 = vmatprep.mubr.msk.bf16.mxu0 %vm2767_vm1, %v2766_v31  ;;  %v2962_v33 = vld [vmem:[#allocation2] sm:$0xff]  ;;  %s2771_s24 = smov 112   ;;  %s2772_s4 = smov 64   ;;  %vm1779_vm5 = vcmask 130048   ;;  %vm1782_vm6 = vcmask 195584   ;;  %vm2021_vm7 = vcmask 523264  }
 0x160   : > { %2443 = vmatprep.subr.bf16.mxu0 %v2766_v31  ;;  %2451 = vmatprep.mubr.msk.bf16.mxu1 %vm2767_vm1, %v2766_v31  ;;  %s3320_s29 = sld [smem:[#allocation10_spill]]  ;;  %s2773_s30 = smov 8  }
 0x161   : > { %s3322_s16 = sld [smem:[#allocation11_spill]]  ;;  %p2384_p5 = scmp.ne.s32.totalorder %s2875_s25, 1 }
 0x162   : > { %vm2123_vm8 = vcmask (!%p2384_p5), 1041409   ;;  %vm2126_vm9 = vcmask (!%p2384_p5), 254976  }
 0x163   : > { %v2964_v34 = vld [vmem:[#allocation2 + $0x8] sm:$0xff]  ;;  %2444 = vmatpush3.bf16.msra.mxu0 %v2641_v32 }
 0x164   : > { %v775_v35 = vpack.c.bf16 %v2964_v34, %v2962_v33  ;;  %2455 = vmatprep.subr.bf16.mxu0 %v2766_v31 }
 0x166   : > { %2446 = vmatmul.mubr.msk.bf16.vlgmr.msra.gmra.mrb[0].mxu0 %vm794_vm2, %v775_v35  ;;  %v2348_v17 = vld [vmem:[%s3320_s29] ss:$0 sm:$0xff]  ;;  %v2349_v22 = vld [vmem:[%s3320_s29 + $0x1] ss:$0 sm:$0xff] }
 0x167   : > { %2457 = vmatprep.mubr.msk.bf16.mxu0 %vm2767_vm1, %v2766_v31 }
 0x239   : > { %v832_v37 = vpop.f32.mrb[0].mxu0 }
 0x23a   : > { %v2447_v38 = vpop.f32.mrb[1].mxu0  ;;  %v833_v40 = vadd.f32 %v2344_v36, %v832_v37 }
 0x23b   : > { %v835_v39 = vpop.f32.mrb[2].mxu0 }
 0x23c   : > { %v836_v41 = vadd.f32 %v2344_v36, %v835_v39  ;;  %v2448_v42 = vpop.f32.mrb[3].mxu0  ;;  %v859_v44 = vpack.c.bf16 %v833_v40, %v833_v40 }
 0x23e   : > { %v2620_v43 = vpack.i.bf16 %v836_v41, %v833_v40  ;;  %v860_v45 = vpack.c.bf16 %v836_v41, %v836_v41 }
 0x240   : > { %2621 = vrot.lane.b32.xlu1 %v2620_v43, %s2768_s20  ;;  %2611 = vrot.lane.b32.xlu0 %v2620_v43, %s2769_s19  ;;  %s2774_s20 = smov 16   ;;  %s2775_s19 = smov 24  }
 0x244   : > { %880 = vrot.lane.b32.xlu1 %v859_v44, %s2770_s23  ;;  %2616 = vrot.lane.b32.xlu0 %v2620_v43, %s2771_s24  ;;  %s3321_s24 = scalar_lea.vmem %s3291_s9, %s2881_s26 }
 0x248   : > { %930 = vrot.lane.b32.xlu0 %v860_v45, %s2770_s23 }
 0x2b2   : > { %v2622_v46 = vpop.permute.xlu1 %2621  ;;  %v2612_v47 = vpop.permute.xlu0 %2611 }
 0x2b3   : > { %v2614_v48 = vunpack.i.h.bf16 %v2612_v47  ;;  %v2613_v49 = vunpack.i.l.bf16 %v2612_v47  ;;  %v2623_v57 = vunpack.i.l.bf16 %v2622_v46  ;;  %v2624_v60 = vunpack.i.h.bf16 %v2622_v46 }
 0x2b5   : > { %v2982_v50 = vpack.c.bf16 %v2614_v48, %v2614_v48  ;;  %v2984_v51 = vpack.c.bf16 %v2613_v49, %v2613_v49  ;;  %v3001_v63 = vpack.c.bf16 %v2623_v57, %v2623_v57  ;;  %v3004_v0 = vpack.c.bf16 %v2624_v60, %v2624_v60 }
 0x2b6   : > { %v881_v52 = vpop.permute.xlu1 %880  ;;  %v2617_v53 = vpop.permute.xlu0 %2616 }
 0x2b7   : > { %v2619_v54 = vunpack.i.h.bf16 %v2617_v53  ;;  %v2618_v55 = vunpack.i.l.bf16 %v2617_v53  ;;  %979 = vrot.lane.b32.xlu1 %v2984_v51, %s2770_s23  ;;  %1028 = vrot.lane.b32.xlu0 %v2982_v50, %s2770_s23  ;;  %v887_v56 = vsel %vm882_vm3, %v881_v52, 0 }
 0x2b8   : > { %2450 = vmatpush3.bf16.xpose.msra.mxu1 %v887_v56 }
 0x2b9   : > { %v2991_v58 = vpack.c.bf16 %v2619_v54, %v2619_v54  ;;  %v2993_v59 = vpack.c.bf16 %v2618_v55, %v2618_v55  ;;  %2461 = vmatprep.subr.bf16.mxu1 %v2766_v31 }
 0x2ba   : > { %v931_v61 = vpop.permute.xlu0 %930 }
 0x2bb   : > { %v936_v62 = vsel %vm882_vm3, %v931_v61, 0  ;;  %1077 = vrot.lane.b32.xlu1 %v2993_v59, %s2770_s23  ;;  %1126 = vrot.lane.b32.xlu0 %v2991_v58, %s2770_s23 }
 0x2bc   : > { %2456 = vmatpush3.bf16.xpose.msra.mxu0 %v936_v62 }
 0x2bd   : > { %2467 = vmatprep.subr.bf16.mxu0 %v2766_v31 }
 0x2bf   : > { %2452 = vmatmul.mubr.msk.bf16.vlgmr.msra.gmra.mrb[0].mxu1 %vm882_vm3, %v859_v44  ;;  %1175 = vrot.lane.b32.xlu1 %v3001_v63, %s2770_s23 }
 0x2c0   : > { %1224 = vrot.lane.b32.xlu0 %v3004_v0, %s2770_s23  ;;  %2463 = vmatprep.mubr.msk.bf16.mxu1 %vm2767_vm1, %v2766_v31 }
 0x2c3   : > { %1417 = vrot.lane.b32.xlu1 %v860_v45, %s2772_s4  ;;  %2458 = vmatmul.mubr.msk.bf16.vlgmr.msra.gmra.mrb[4].mxu0 %vm882_vm3, %v860_v45 }
 0x2c4   : > { %1368 = vrot.lane.b32.xlu0 %v859_v44, %s2772_s4  ;;  %2469 = vmatprep.mubr.msk.bf16.mxu0 %vm2767_vm1, %v2766_v31 }
 0x329   : > { %v980_v1 = vpop.permute.xlu1 %979  ;;  %v1029_v2 = vpop.permute.xlu0 %1028 }
 0x32a   : > { %v985_v3 = vsel %vm882_vm3, %v980_v1, 0  ;;  %v1034_v4 = vsel %vm882_vm3, %v1029_v2, 0 }
 0x32b   : > { %2462 = vmatpush3.bf16.xpose.msra.mxu1 %v985_v3  ;;  %2468 = vmatpush3.bf16.xpose.msra.mxu0 %v1034_v4 }
 0x32c   : > { %2473 = vmatprep.subr.bf16.mxu1 %v2766_v31  ;;  %2479 = vmatprep.subr.bf16.mxu0 %v2766_v31 }
 0x32d   : > { %v1078_v5 = vpop.permute.xlu1 %1077  ;;  %v1127_v6 = vpop.permute.xlu0 %1126 }
 0x32e   : > { %v1083_v7 = vsel %vm882_vm3, %v1078_v5, 0  ;;  %v1132_v8 = vsel %vm882_vm3, %v1127_v6, 0 }
 0x331   : > { %v1176_v9 = vpop.permute.xlu1 %1175 }
 0x332   : > { %2464 = vmatmul.mubr.msk.bf16.vlgmr.msra.gmra.mrb[4].mxu1 %vm882_vm3, %v2984_v51  ;;  %2470 = vmatmul.mubr.msk.bf16.vlgmr.msra.gmra.mrb[8].mxu0 %vm882_vm3, %v2982_v50  ;;  %v1225_v10 = vpop.permute.xlu0 %1224  ;;  %v1181_v11 = vsel %vm882_vm3, %v1176_v9, 0 }
 0x333   : > { %2474 = vmatpush3.bf16.xpose.msra.mxu1 %v1083_v7  ;;  %2480 = vmatpush3.bf16.xpose.msra.mxu0 %v1132_v8  ;;  %v1230_v12 = vsel %vm882_vm3, %v1225_v10, 0 }
 0x334   : > { %2475 = vmatprep.mubr.msk.bf16.mxu1 %vm2767_vm1, %v2766_v31  ;;  %2481 = vmatprep.mubr.msk.bf16.mxu0 %vm2767_vm1, %v2766_v31 }
 0x335   : > { %2485 = vmatprep.subr.bf16.mxu1 %v2766_v31  ;;  %2491 = vmatprep.subr.bf16.mxu0 %v2766_v31  ;;  %v1418_v13 = vpop.permute.xlu1 %1417 }
 0x336   : > { %v1369_v14 = vpop.permute.xlu0 %1368  ;;  %v1423_v15 = vsel %vm1373_vm4, %v1418_v13, 0 }
 0x337   : > { %v1375_v16 = vsel %vm1373_vm4, %v1369_v14, 0 }
 0x33a   : > { %2476 = vmatmul.mubr.msk.bf16.vlgmr.msra.gmra.mrb[8].mxu1 %vm882_vm3, %v2993_v59  ;;  %2482 = vmatmul.mubr.msk.bf16.vlgmr.msra.gmra.mrb[12].mxu0 %vm882_vm3, %v2991_v58 }
 0x33b   : > { %2486 = vmatpush3.bf16.xpose.msra.mxu1 %v1181_v11  ;;  %2492 = vmatpush3.bf16.xpose.msra.mxu0 %v1230_v12 }
 0x33c   : > { %2487 = vmatprep.mubr.msk.bf16.mxu1 %vm2767_vm1, %v2766_v31  ;;  %2493 = vmatprep.mubr.msk.bf16.mxu0 %vm2767_vm1, %v2766_v31 }
 0x33d   : > { %2497 = vmatprep.subr.bf16.mxu1 %v2766_v31  ;;  %2503 = vmatprep.subr.bf16.mxu0 %v2766_v31 }
 0x342   : > { %2488 = vmatmul.mubr.msk.bf16.vlgmr.msra.gmra.mrb[12].mxu1 %vm882_vm3, %v3001_v63  ;;  %2494 = vmatmul.mubr.msk.bf16.vlgmr.msra.gmra.mrb[16].mxu0 %vm882_vm3, %v3004_v0 }
 0x343   : > { %2498 = vmatpush3.bf16.msra.mxu1 %v1375_v16  ;;  %2504 = vmatpush3.bf16.msra.mxu0 %v1423_v15 }
 0x344   : > { %2499 = vmatprep.mubr.msk.bf16.mxu1 %vm2767_vm1, %v2766_v31  ;;  %2505 = vmatprep.mubr.msk.bf16.mxu0 %vm2767_vm1, %v2766_v31 }
 0x345   : > { %2509 = vmatprep.subr.bf16.mxu1 %v2766_v31  ;;  %2515 = vmatprep.subr.bf16.mxu0 %v2766_v31 }
 0x392   : > { %v923_v18 = vpop.f32.mrb[0].mxu1 }
 0x393   : > { %v924_v19 = vadd.f32 %v2348_v17, %v923_v18  ;;  %v2453_v20 = vpop.f32.mrb[1].mxu1 }
 0x394   : > { %v926_v21 = vpop.f32.mrb[2].mxu1 }
 0x395   : > { %v2454_v23 = vpop.f32.mrb[3].mxu1  ;;  %v1272_v24 = vsel %vm882_vm3, %v924_v19, -inf }
 0x396   : > { %1273 = vmax.xlane.f32.xlu1 %v1272_v24  ;;  %v972_v25 = vpop.f32.mrb[4].mxu0 }
 0x397   : > { %v973_v26 = vadd.f32 %v2349_v22, %v972_v25  ;;  %v2459_v27 = vpop.f32.mrb[5].mxu0 }
 0x398   : > { %v975_v28 = vpop.f32.mrb[6].mxu0 }
 0x399   : > { %v2460_v29 = vpop.f32.mrb[7].mxu0  ;;  %v1275_v30 = vsel %vm882_vm3, %v973_v26, -inf }
 0x39a   : > { %1276 = vmax.xlane.f32.xlu0 %v1275_v30 }
 0x405   : > { %v1021_v32 = vpop.f32.mrb[4].mxu1  ;;  %v1070_v35 = vpop.f32.mrb[8].mxu0 }
 0x406   : > { %v1022_v36 = vadd.f32 %v2348_v17, %v1021_v32  ;;  %v1071_v37 = vadd.f32 %v2349_v22, %v1070_v35  ;;  %v2465_v38 = vpop.f32.mrb[5].mxu1  ;;  %v2471_v39 = vpop.f32.mrb[9].mxu0 }
 0x407   : > { %v1024_v40 = vpop.f32.mrb[6].mxu1  ;;  %v1073_v41 = vpop.f32.mrb[10].mxu0 }
 0x408   : > { %v2466_v42 = vpop.f32.mrb[7].mxu1  ;;  %v2472_v43 = vpop.f32.mrb[11].mxu0  ;;  %v1278_v44 = vsel %vm882_vm3, %v1022_v36, -inf  ;;  %v1281_v45 = vsel %vm882_vm3, %v1071_v37, -inf }
 0x409   : > { %1279 = vmax.xlane.f32.xlu0 %v1278_v44  ;;  %1282 = vmax.xlane.f32.xlu1 %v1281_v45 }
 0x40d   : > { %v1119_v46 = vpop.f32.mrb[8].mxu1  ;;  %v1168_v47 = vpop.f32.mrb[12].mxu0 }
 0x40e   : > { %v3068_v48 = vadd.f32 %v2348_v17, %v1119_v46  ;;  %v1169_v49 = vadd.f32 %v2349_v22, %v1168_v47  ;;  %v2477_v52 = vpop.f32.mrb[9].mxu1  ;;  %v2483_v53 = vpop.f32.mrb[13].mxu0 }
 0x40f   : > { %v1122_v54 = vpop.f32.mrb[10].mxu1  ;;  %v1171_v55 = vpop.f32.mrb[14].mxu0 }
 0x410   : > { %v2478_v56 = vpop.f32.mrb[11].mxu1  ;;  %v2484_v57 = vpop.f32.mrb[15].mxu0  ;;  %v1284_v60 = vsel %vm882_vm3, %v3068_v48, -inf  ;;  %v1287_v61 = vsel %vm882_vm3, %v1169_v49, -inf }
 0x411   : > { %1285 = vmax.xlane.f32.xlu0 %v1284_v60  ;;  %1288 = vmax.xlane.f32.xlu1 %v1287_v61 }
 0x415   : > { %v1217_v62 = vpop.f32.mrb[12].mxu1  ;;  %v1266_v1 = vpop.f32.mrb[16].mxu0 }
 0x416   : > { %v3073_v2 = vadd.f32 %v2348_v17, %v1217_v62  ;;  %v1267_v3 = vadd.f32 %v2349_v22, %v1266_v1  ;;  %v2489_v4 = vpop.f32.mrb[13].mxu1  ;;  %v2495_v5 = vpop.f32.mrb[17].mxu0 }
 0x417   : > { %v1220_v6 = vpop.f32.mrb[14].mxu1  ;;  %v1269_v7 = vpop.f32.mrb[18].mxu0 }
 0x418   : > { %v2490_v8 = vpop.f32.mrb[15].mxu1  ;;  %v2496_v9 = vpop.f32.mrb[19].mxu0  ;;  %v1290_v10 = vsel %vm882_vm3, %v3073_v2, -inf  ;;  %v1293_v11 = vsel %vm882_vm3, %v1267_v3, -inf }
 0x419   : > { %1291 = vmax.xlane.f32.xlu0 %v1290_v10  ;;  %1294 = vmax.xlane.f32.xlu1 %v1293_v11 }
 0x423   : > { %v1274_v12 = vpop.xlane.xlu1 %1273 }
 0x424   : > { %v1296_v14 = vsub.f32 %v924_v19, %v1274_v12 }
 0x426   : > { %v1304_v16 = vmul.f32 1.442695, %v1296_v14 }
 0x427   : > { %v1277_v13 = vpop.xlane.xlu0 %1276 }
 0x428   : > { %v1297_v15 = vsub.f32 %v973_v26, %v1277_v13  ;;  %2650 = vpow2.f32 %v1304_v16 }
 0x42a   : > { %1465 = vrot.lane.b32.xlu1 %v2984_v51, %s2772_s4  ;;  %v1306_v17 = vmul.f32 1.442695, %v1297_v15 }
 0x42c   : > { %2652 = vpow2.f32 %v1306_v17 }
 0x42f   : > { %1513 = vrot.lane.b32.xlu0 %v2982_v50, %s2772_s4 }
 0x432   : > { %v2651_v18 = vpop.eup %2650 }
 0x433   : > { %v1320_v21 = vsel %vm882_vm3, %v2651_v18, 0.0 }
 0x436   : > { %v2653_v20 = vpop.eup %2652 }
 0x437   : > { %v1323_v22 = vsel %vm882_vm3, %v2653_v20, 0.0 }
 0x44e   : > { %1321 = vadd.xlane.f32.xlu0 %v1320_v21  ;;  %1324 = vadd.xlane.f32.xlu1 %v1323_v22 }
 0x45f   : > { %1561 = vrot.lane.b32.xlu1 %v2993_v59, %s2772_s4 }
 0x496   : > { %v1280_v50 = vpop.xlane.xlu0 %1279  ;;  %v1283_v51 = vpop.xlane.xlu1 %1282 }
 0x497   : > { %v1298_v23 = vsub.f32 %v1022_v36, %v1280_v50  ;;  %v1299_v19 = vsub.f32 %v1071_v37, %v1283_v51 }
 0x499   : > { %v1308_v24 = vmul.f32 1.442695, %v1298_v23  ;;  %v1310_v25 = vmul.f32 1.442695, %v1299_v19 }
 0x49b   : > { %2654 = vpow2.f32 %v1308_v24 }
 0x49c   : > { %2656 = vpow2.f32 %v1310_v25 }
 0x49e   : > { %v1289_v26 = vpop.xlane.xlu1 %1288  ;;  %v1286_v42 = vpop.xlane.xlu0 %1285 }
 0x49f   : > { %v1301_v27 = vsub.f32 %v1169_v49, %v1289_v26  ;;  %v1300_v43 = vsub.f32 %v3068_v48, %v1286_v42 }
 0x4a1   : > { %v1314_v28 = vmul.f32 1.442695, %v1301_v27  ;;  %v1312_v45 = vmul.f32 1.442695, %v1300_v43 }
 0x4a3   : > { %2658 = vpow2.f32 %v1314_v28 }
 0x4a5   : > { %v3086_v29 = vpop.eup %2654 }
 0x4a6   : > { %v3088_v30 = vpop.eup %2656  ;;  %v1295_v32 = vpop.xlane.xlu1 %1294  ;;  %v1326_v59 = vsel %vm882_vm3, %v3086_v29, 0.0 }
 0x4a7   : > { %v1303_v35 = vsub.f32 %v1267_v3, %v1295_v32  ;;  %1327 = vadd.xlane.f32.xlu0 %v1326_v59  ;;  %v1329_v36 = vsel %vm882_vm3, %v3088_v30, 0.0  ;;  %v1292_v44 = vpop.xlane.xlu0 %1291 }
 0x4a8   : > { %1330 = vadd.xlane.f32.xlu1 %v1329_v36  ;;  %v1302_v46 = vsub.f32 %v3073_v2, %v1292_v44 }
 0x4a9   : > { %v1318_v37 = vmul.f32 1.442695, %v1303_v35 }
 0x4aa   : > { %v1316_v47 = vmul.f32 1.442695, %v1302_v46  ;;  %v1466_v52 = vpop.permute.xlu1 %1465 }
 0x4ab   : > { %2660 = vpow2.f32 %v1318_v37  ;;  %v1514_v49 = vpop.permute.xlu0 %1513  ;;  %v1471_v2 = vsel %vm1373_vm4, %v1466_v52, 0 }
 0x4ac   : > { %2662 = vpow2.f32 %v1312_v45  ;;  %v1519_v3 = vsel %vm1373_vm4, %v1514_v49, 0 }
 0x4ad   : > { %v3094_v38 = vpop.eup %2658  ;;  %2664 = vpow2.f32 %v1316_v47 }
 0x4ae   : > { %v1335_v39 = vsel %vm882_vm3, %v3094_v38, 0.0 }
 0x4af   : > { %1336 = vadd.xlane.f32.xlu1 %v1335_v39 }
 0x4b5   : > { %v3098_v40 = vpop.eup %2660 }
 0x4b6   : > { %v1341_v41 = vsel %vm882_vm3, %v3098_v40, 0.0  ;;  %v3108_v53 = vpop.eup %2662 }
 0x4b7   : > { %1342 = vadd.xlane.f32.xlu1 %v1341_v41  ;;  %v3112_v48 = vpop.eup %2664 }
 0x4bd   : > { %1609 = vrot.lane.b32.xlu0 %v2991_v58, %s2772_s4  ;;  %v1332_v58 = vsel %vm882_vm3, %v3108_v53, 0.0 }
 0x4c8   : > { %1657 = vrot.lane.b32.xlu1 %v3001_v63, %s2772_s4  ;;  %v1338_v63 = vsel %vm882_vm3, %v3112_v48, 0.0 }
 0x4db   : > { %v1322_v54 = vpop.xlane.xlu0 %1321  ;;  %v1325_v55 = vpop.xlane.xlu1 %1324 }
 0x4dc   : > { %2666 = vrcp.f32 %v1322_v54  ;;  %1333 = vadd.xlane.f32.xlu0 %v1332_v58 }
 0x4dd   : > { %2668 = vrcp.f32 %v1325_v55 }
 0x4df   : > { %v1562_v4 = vpop.permute.xlu1 %1561 }
 0x4e0   : > { %1339 = vadd.xlane.f32.xlu0 %v1338_v63  ;;  %v1567_v15 = vsel %vm1373_vm4, %v1562_v4, 0 }
 0x4e6   : > { %v2667_v56 = vpop.eup %2666 }
 0x4e7   : > { %v2669_v57 = vpop.eup %2668  ;;  %v1352_v60 = vmul.f32 %v2667_v56, %v2651_v18  ;;  %v2642_v56 = vld [vmem:[%s2904_s17] sm:$0xff]  }
 0x4e8   : > { %v1353_v61 = vmul.f32 %v2669_v57, %v2653_v20 }
 0x4e9   : > { %v1360_v62 = vpack.c.bf16 %v1352_v60, %v1352_v60 }
 0x4ea   : > { %v1361_v1 = vpack.c.bf16 %v1353_v61, %v1353_v61 }
 0x4eb   : > { %2500 = vmatmul.mubr.msk.bf16.vlgmr.msra.gmra.mrb[16].mxu1 %vm882_vm3, %v1360_v62 }
 0x4ec   : > { %2506 = vmatmul.mubr.msk.bf16.vlgmr.msra.gmra.mrb[20].mxu0 %vm882_vm3, %v1361_v1  ;;  %2510 = vmatpush3.bf16.msra.mxu1 %v1471_v2  ;;  %v2643_v2 = vld [vmem:[%s2904_s17 + $0x8] sm:$0xff]  }
 0x4ed   : > { %2516 = vmatpush3.bf16.msra.mxu0 %v1519_v3  ;;  %2511 = vmatprep.mubr.msk.bf16.mxu1 %vm2767_vm1, %v2766_v31 }
 0x4ee   : > { %2517 = vmatprep.mubr.msk.bf16.mxu0 %vm2767_vm1, %v2766_v31  ;;  %2521 = vmatprep.subr.bf16.mxu1 %v2766_v31 }
 0x4ef   : > { %2527 = vmatprep.subr.bf16.mxu0 %v2766_v31 }
 0x4f6   : > { %1705 = vrot.lane.b32.xlu0 %v3004_v0, %s2772_s4 }
 0x534   : > { %v1328_v5 = vpop.xlane.xlu0 %1327 }
 0x535   : > { %2670 = vrcp.f32 %v1328_v5  ;;  %v1331_v6 = vpop.xlane.xlu1 %1330 }
 0x536   : > { %2672 = vrcp.f32 %v1331_v6 }
 0x538   : > { %v1610_v12 = vpop.permute.xlu0 %1609 }
 0x539   : > { %v1615_v0 = vsel %vm1373_vm4, %v1610_v12, 0 }
 0x53c   : > { %v1337_v7 = vpop.xlane.xlu1 %1336 }
 0x53d   : > { %2674 = vrcp.f32 %v1337_v7 }
 0x53f   : > { %v2671_v8 = vpop.eup %2670 }
 0x540   : > { %v2673_v9 = vpop.eup %2672  ;;  %v1354_v10 = vmul.f32 %v2671_v8, %v3086_v29 }
 0x541   : > { %v1355_v11 = vmul.f32 %v2673_v9, %v3088_v30 }
 0x542   : > { %v1362_v13 = vpack.c.bf16 %v1354_v10, %v1354_v10 }
 0x543   : > { %v1363_v14 = vpack.c.bf16 %v1355_v11, %v1355_v11 }
 0x544   : > { %2512 = vmatmul.mubr.msk.bf16.vlgmr.msra.gmra.mrb[20].mxu1 %vm882_vm3, %v1362_v13  ;;  %v1343_v20 = vpop.xlane.xlu1 %1342 }
 0x545   : > { %2518 = vmatmul.mubr.msk.bf16.vlgmr.msra.gmra.mrb[24].mxu0 %vm882_vm3, %v1363_v14  ;;  %2522 = vmatpush3.bf16.msra.mxu1 %v1567_v15  ;;  %2676 = vrcp.f32 %v1343_v20 }
 0x546   : > { %2528 = vmatpush3.bf16.msra.mxu0 %v1615_v0  ;;  %2529 = vmatprep.mubr.msk.bf16.mxu0 %vm2767_vm1, %v2766_v31 }
 0x547   : > { %2539 = vmatprep.subr.bf16.mxu0 %v2766_v31  ;;  %2523 = vmatprep.mubr.msk.bf16.mxu1 %vm2767_vm1, %v2766_v31  ;;  %v2675_v16 = vpop.eup %2674 }
 0x548   : > { %2533 = vmatprep.subr.bf16.mxu1 %v2766_v31  ;;  %v1357_v17 = vmul.f32 %v2675_v16, %v3094_v38  ;;  %v1658_v27 = vpop.permute.xlu1 %1657 }
 0x549   : > { %v1663_v30 = vsel %vm1373_vm4, %v1658_v27, 0 }
 0x54a   : > { %v1365_v18 = vpack.c.bf16 %v1357_v17, %v1357_v17 }
 0x54d   : > { %2530 = vmatmul.mubr.msk.bf16.vlgmr.msra.gmra.mrb[28].mxu0 %vm882_vm3, %v1365_v18 }
 0x54e   : > { %2541 = vmatprep.mubr.msk.bf16.mxu0 %vm2767_vm1, %v2766_v31 }
 0x54f   : > { %v2677_v22 = vpop.eup %2676 }
 0x550   : > { %v1359_v51 = vmul.f32 %v2677_v22, %v3098_v40 }
 0x552   : > { %v1367_v25 = vpack.c.bf16 %v1359_v51, %v1359_v51 }
 0x569   : > { %v1334_v21 = vpop.xlane.xlu0 %1333 }
 0x56a   : > { %2678 = vrcp.f32 %v1334_v21 }
 0x56d   : > { %v1340_v50 = vpop.xlane.xlu0 %1339 }
 0x56e   : > { %2680 = vrcp.f32 %v1340_v50 }
 0x571   : > { %v1706_v23 = vpop.permute.xlu0 %1705 }
 0x572   : > { %v1711_v19 = vsel %vm1373_vm4, %v1706_v23, 0 }
 0x573   : > { %2540 = vmatpush3.bf16.msra.mxu0 %v1711_v19 }
 0x574   : > { %v2679_v24 = vpop.eup %2678  ;;  %2553 = vmatprep.subr.bf16.mxu0 %v2766_v31 }
 0x575   : > { %v1356_v26 = vmul.f32 %v2679_v24, %v3108_v53 }
 0x576   : > { %2542 = vmatmul.mubr.msk.bf16.vlgmr.msra.gmra.mrb[32].mxu0 %vm882_vm3, %v1367_v25  ;;  %v2366_v25 = vld [vmem:[%s3321_s24] ss:$0 sm:$0xff] }
 0x577   : > { %v1364_v28 = vpack.c.bf16 %v1356_v26, %v1356_v26  ;;  %2557 = vmatprep.mubr.msk.bf16.mxu0 %vm2767_vm1, %v2766_v31 }
 0x578   : > { %v2681_v29 = vpop.eup %2680 }
 0x579   : > { %2524 = vmatmul.mubr.msk.bf16.vlgmr.msra.gmra.mrb[24].mxu1 %vm882_vm3, %v1364_v28  ;;  %v1358_v32 = vmul.f32 %v2681_v29, %v3112_v48 }
 0x57a   : > { %2534 = vmatpush3.bf16.msra.mxu1 %v1663_v30  ;;  %2535 = vmatprep.mubr.msk.bf16.mxu1 %vm2767_vm1, %v2766_v31 }
 0x57b   : > { %2545 = vmatprep.subr.bf16.mxu1 %v2766_v31  ;;  %v1366_v59 = vpack.c.bf16 %v1358_v32, %v1358_v32 }
 0x581   : > { %2536 = vmatmul.mubr.msk.bf16.vlgmr.msra.gmra.mrb[28].mxu1 %vm882_vm3, %v1366_v59 }
 0x582   : > { %2549 = vmatprep.mubr.msk.bf16.mxu1 %vm2767_vm1, %v2766_v31  ;;  %2546 = vmatpush3.bf16.msra.mxu1 %v2642_v56 }
 0x583   : > { %2547 = vmatprep.subr.bf16.mxu1 %v2766_v31 }
 0x586   : > { %2548 = vmatpush3.bf16.msra.mxu1 %v2643_v2 }
 0x587   : > { %2561 = vmatprep.subr.bf16.mxu1 %v2766_v31 }
 0x5be   : > { %v1411_v35 = vpop.f32.mrb[16].mxu1 }
 0x5bf   : > { %v1459_v36 = vpop.f32.mrb[20].mxu0  ;;  %v2501_v37 = vpop.f32.mrb[17].mxu1 }
 0x5c0   : > { %v2507_v38 = vpop.f32.mrb[21].mxu0  ;;  %v1414_v39 = vpop.f32.mrb[18].mxu1 }
 0x5c1   : > { %v1462_v40 = vpop.f32.mrb[22].mxu0  ;;  %v2502_v41 = vpop.f32.mrb[19].mxu1 }
 0x5c2   : > { %v2508_v42 = vpop.f32.mrb[23].mxu0 }
 0x617   : > { %v1507_v43 = vpop.f32.mrb[20].mxu1 }
 0x618   : > { %v1555_v44 = vpop.f32.mrb[24].mxu0  ;;  %v2513_v45 = vpop.f32.mrb[21].mxu1 }
 0x619   : > { %v2625_v46 = vpack.i.bf16 %v1555_v44, %v1507_v43  ;;  %v2519_v47 = vpop.f32.mrb[25].mxu0  ;;  %v1510_v49 = vpop.f32.mrb[22].mxu1 }
 0x61a   : > { %v1558_v52 = vpop.f32.mrb[26].mxu0  ;;  %v2514_v53 = vpop.f32.mrb[23].mxu1  ;;  %v2645_v47 = vld [vmem:[%s2921_s6 + $0x8] sm:$0xff]  }
 0x61b   : > { %2626 = vrot.lane.b32.xlu1 %v2625_v46, %s2773_s30  ;;  %v2520_v54 = vpop.f32.mrb[27].mxu0 }
 0x620   : > { %v1651_v55 = vpop.f32.mrb[28].mxu0 }
 0x621   : > { %v2531_v58 = vpop.f32.mrb[29].mxu0 }
 0x622   : > { %v1654_v48 = vpop.f32.mrb[30].mxu0 }
 0x623   : > { %v2532_v63 = vpop.f32.mrb[31].mxu0 }
 0x649   : > { %v1747_v57 = vpop.f32.mrb[32].mxu0 }
 0x64a   : > { %v2543_v60 = vpop.f32.mrb[33].mxu0 }
 0x64b   : > { %v1750_v61 = vpop.f32.mrb[34].mxu0 }
 0x64c   : > { %v1603_v62 = vpop.f32.mrb[24].mxu1  ;;  %v2544_v1 = vpop.f32.mrb[35].mxu0 }
 0x64d   : > { %v2630_v3 = vpack.i.bf16 %v1651_v55, %v1603_v62  ;;  %v2525_v4 = vpop.f32.mrb[25].mxu1 }
 0x64e   : > { %v1606_v5 = vpop.f32.mrb[26].mxu1 }
 0x64f   : > { %v2526_v6 = vpop.f32.mrb[27].mxu1  ;;  %2631 = vrot.lane.b32.xlu0 %v2630_v3, %s2774_s20  ;;  %s3324_s20 = sld [smem:[#allocation12_spill]]  ;;  %v2646_v5 = vld [vmem:[%s2931_s0] sm:$0xff]  }
 0x650   : > { %v2647_v6 = vld [vmem:[%s2931_s0 + $0x8] sm:$0xff]  }
 0x654   : > { %v1699_v7 = vpop.f32.mrb[28].mxu1 }
 0x655   : > { %v2635_v8 = vpack.i.bf16 %v1747_v57, %v1699_v7  ;;  %v2537_v9 = vpop.f32.mrb[29].mxu1  ;;  %v2648_v7 = vld [vmem:[%s2931_s0 + $0x10] sm:$0xff]  }
 0x656   : > { %v1702_v10 = vpop.f32.mrb[30].mxu1  ;;  %v2372_v9 = vld [vmem:[%s697_s8] ss:$0 sm:$0xff] }
 0x657   : > { %v2538_v11 = vpop.f32.mrb[31].mxu1  ;;  %2636 = vrot.lane.b32.xlu1 %v2635_v8, %s2775_s19  ;;  %s3325_s19 = scalar_lea.vmem %s3324_s20, %s2881_s26  ;;  %v2649_v8 = vld [vmem:[%s2931_s0 + $0x18] sm:$0xff]  }
 0x658   : > { %v2371_v62 = vld [vmem:[%s3325_s19] ss:$0 sm:$0xff] }
 0x68d   : > { %v2627_v12 = vpop.permute.xlu1 %2626 }
 0x68e   : > { %v2629_v14 = vunpack.i.h.bf16 %v2627_v12  ;;  %v2628_v15 = vunpack.i.l.bf16 %v2627_v12 }
 0x690   : > { %v1778_v18 = vsel %vm882_vm3, %v1459_v36, %v2629_v14  ;;  %v1777_v20 = vsel %vm882_vm3, %v1411_v35, %v2628_v15 }
 0x6c1   : > { %v2632_v13 = vpop.permute.xlu0 %2631 }
 0x6c2   : > { %v2634_v0 = vunpack.i.h.bf16 %v2632_v13  ;;  %v2633_v16 = vunpack.i.l.bf16 %v2632_v13 }
 0x6c4   : > { %v1781_v50 = vsel %vm1779_vm5, %v1778_v18, %v2634_v0  ;;  %v1780_v51 = vsel %vm1779_vm5, %v1777_v20, %v2633_v16 }
 0x6c9   : > { %v2637_v17 = vpop.permute.xlu1 %2636 }
 0x6ca   : > { %v2639_v21 = vunpack.i.h.bf16 %v2637_v17  ;;  %v2638_v22 = vunpack.i.l.bf16 %v2637_v17 }
 0x6cc   : > { %v1784_v23 = vsel %vm1782_vm6, %v1781_v50, %v2639_v21  ;;  %v1783_v19 = vsel %vm1782_vm6, %v1780_v51, %v2638_v22 }
 0x6cd   : > { %v1785_v24 = vpack.c.bf16 %v1784_v23, %v1783_v19 }
 0x6cf   : > { %2550 = vmatmul.mubr.msk.bf16.vlgmr.msra.gmra.mrb[32].mxu1 %vm794_vm2, %v1785_v24 }
 0x6d0   : > { %2569 = vmatprep.mubr.msk.bf16.mxu1 %vm2767_vm1, %v2766_v31  ;;  %2562 = vmatpush3.bf16.msra.mxu1 %v2646_v5 }
 0x6d1   : > { %2563 = vmatprep.subr.bf16.mxu1 %v2766_v31 }
 0x6d4   : > { %2564 = vmatpush3.bf16.msra.mxu1 %v2647_v6 }
 0x6d5   : > { %2565 = vmatprep.subr.bf16.mxu1 %v2766_v31 }
 0x6d8   : > { %2566 = vmatpush3.bf16.msra.mxu1 %v2648_v7 }
 0x6d9   : > { %2567 = vmatprep.subr.bf16.mxu1 %v2766_v31 }
 0x6dc   : > { %2568 = vmatpush3.bf16.msra.mxu1 %v2649_v8 }
 0x7a2   : > { %v1841_v26 = vpop.f32.mrb[32].mxu1 }
 0x7a3   : > { %v1842_v27 = vadd.f32 %v2366_v25, %v1841_v26  ;;  %v2551_v28 = vpop.f32.mrb[33].mxu1 }
 0x7a4   : > { %v1844_v29 = vpop.f32.mrb[34].mxu1 }
 0x7a5   : > { %v1845_v30 = vadd.f32 %v2366_v25, %v1844_v29  ;;  %v2552_v32 = vpop.f32.mrb[35].mxu1  ;;  %v1848_v59 = vadd.f32 %v1842_v27, %v2962_v33 }
 0x7a6   : > { %v2376_v32 = vld [vmem:[%s705_s1] ss:$0 sm:$0xff] }
 0x7a7   : > { %v1852_v35 = vsel %vm794_vm2, %v1848_v59, 0.0  ;;  %v1849_v36 = vadd.f32 %v1845_v30, %v2964_v34  ;;  %v2644_v34 = vld [vmem:[%s2921_s6] sm:$0xff]   ;;  %s3323_s6 = scalar_lea.vmem %s3322_s16, %s2881_s26 }
 0x7a8   : > { %1853 = vadd.xlane.f32.xlu0 %v1852_v35  ;;  %2554 = vmatpush3.bf16.msra.mxu0 %v2644_v34  ;;  %v2370_v56 = vld [vmem:[%s3323_s6] ss:$0 sm:$0xff] }
 0x7a9   : > { %v1855_v37 = vsel %vm794_vm2, %v1849_v36, 0.0  ;;  %2555 = vmatprep.subr.bf16.mxu0 %v2766_v31 }
 0x7aa   : > { %1856 = vadd.xlane.f32.xlu1 %v1855_v37 }
 0x7ac   : > { %2556 = vmatpush3.bf16.msra.mxu0 %v2645_v47 }
 0x835   : > { %v1854_v38 = vpop.xlane.xlu0 %1853 }
 0x836   : > { %v1859_v39 = vmul.f32 0.03125, %v1854_v38 }
 0x837   : > { %v1857_v40 = vpop.xlane.xlu1 %1856 }
 0x838   : > { %v1861_v41 = vsub.f32 %v1848_v59, %v1859_v39  ;;  %v1860_v42 = vmul.f32 0.03125, %v1857_v40 }
 0x83a   : > { %v1862_v43 = vsub.f32 %v1849_v36, %v1860_v42  ;;  %v1863_v44 = vmul.f32 %v1861_v41, %v1861_v41 }
 0x83c   : > { %v1865_v45 = vsel %vm794_vm2, %v1863_v44, 0.0  ;;  %v1864_v33 = vmul.f32 %v1862_v43, %v1862_v43 }
 0x83d   : > { %1866 = vadd.xlane.f32.xlu0 %v1865_v45 }
 0x83e   : > { %v1868_v46 = vsel %vm794_vm2, %v1864_v33, 0.0 }
 0x841   : > { %1869 = vadd.xlane.f32.xlu0 %v1868_v46 }
 0x8ca   : > { %v1867_v49 = vpop.xlane.xlu0 %1866 }
 0x8cb   : > { %v1871_v52 = vmul.f32 0.03125, %v1867_v49 }
 0x8cd   : > { %v1873_v53 = vadd.f32 1e-12, %v1871_v52 }
 0x8ce   : > { %v1870_v54 = vpop.xlane.xlu0 %1869 }
 0x8cf   : > { %2682 = vrsqrt.f32 %v1873_v53  ;;  %v1872_v55 = vmul.f32 0.03125, %v1870_v54 }
 0x8d1   : > { %v1874_v58 = vadd.f32 1e-12, %v1872_v55 }
 0x8d3   : > { %2684 = vrsqrt.f32 %v1874_v58 }
 0x8d9   : > { %v2683_v48 = vpop.eup %2682 }
 0x8da   : > { %v1877_v63 = vmul.f32 %v2683_v48, %v1861_v41 }
 0x8dc   : > { %v1885_v60 = vmul.f32 %v2370_v56, %v1877_v63 }
 0x8dd   : > { %v2685_v57 = vpop.eup %2684 }
 0x8de   : > { %v1878_v61 = vmul.f32 %v2685_v57, %v1862_v43  ;;  %v1893_v2 = vadd.f32 %v2371_v62, %v1885_v60 }
 0x8e0   : > { %v1886_v1 = vmul.f32 %v2370_v56, %v1878_v61  ;;  %v2382_v61 = vld [vmem:[%s686_s5] ss:$0 sm:$0xff] }
 0x8e2   : > { %v1894_v3 = vadd.f32 %v2371_v62, %v1886_v1 }
 0x8e4   : > { %v1900_v4 = vpack.c.bf16 %v1894_v3, %v1893_v2 }
 0x8e6   : > { %2558 = vmatmul.mubr.msk.bf16.vlgmr.msra.gmra.mrb[36].mxu0 %vm794_vm2, %v1900_v4 }
 0x9b9   : > { %v1956_v10 = vpop.f32.mrb[36].mxu0 }
 0x9ba   : > { %v1957_v11 = vadd.f32 %v2372_v9, %v1956_v10  ;;  %v2559_v12 = vpop.f32.mrb[37].mxu0 }
 0x9bb   : > { %v1959_v13 = vpop.f32.mrb[38].mxu0 }
 0x9bc   : > { %v1965_v14 = vmul.f32 0.044715, %v1957_v11  ;;  %v1960_v15 = vadd.f32 %v2372_v9, %v1959_v13  ;;  %v2560_v0 = vpop.f32.mrb[39].mxu0  ;;  %v1963_v25 = vmul.f32 0.5, %v1957_v11 }
 0x9be   : > { %v1967_v16 = vmul.f32 %v1965_v14, %v1957_v11  ;;  %v1966_v17 = vmul.f32 0.044715, %v1960_v15  ;;  %v1964_v26 = vmul.f32 0.5, %v1960_v15 }
 0x9c0   : > { %v1969_v18 = vmul.f32 %v1967_v16, %v1957_v11  ;;  %v1968_v20 = vmul.f32 %v1966_v17, %v1960_v15 }
 0x9c2   : > { %v1971_v21 = vadd.f32 %v1969_v18, %v1957_v11  ;;  %v1970_v22 = vmul.f32 %v1968_v20, %v1960_v15 }
 0x9c4   : > { %v1973_v31 = vmul.f32 0.7978846, %v1971_v21  ;;  %v1972_v50 = vadd.f32 %v1970_v22, %v1960_v15 }
 0x9c6   : > { %2686 = vtanh.f32 %v1973_v31  ;;  %v1974_v51 = vmul.f32 0.7978846, %v1972_v50 }
 0x9c8   : > { %2688 = vtanh.f32 %v1974_v51 }
 0x9d0   : > { %v2687_v23 = vpop.eup %2686 }
 0x9d1   : > { %v1977_v19 = vadd.f32 1.0, %v2687_v23 }
 0x9d2   : > { %v2689_v24 = vpop.eup %2688 }
 0x9d3   : > { %v1978_v27 = vadd.f32 1.0, %v2689_v24  ;;  %v1979_v28 = vmul.f32 %v1977_v19, %v1963_v25 }
 0x9d5   : > { %v1980_v29 = vmul.f32 %v1978_v27, %v1964_v26 }
 0x9d7   : > { %v1990_v30 = vpack.c.bf16 %v1980_v29, %v1979_v28 }
 0x9d9   : > { %2570 = vmatmul.mubr.msk.bf16.vlgmr.msra.gmra.mrb[36].mxu1 %vm2021_vm7, %v1990_v30 }
 0xaac   : > { %v2059_v59 = vpop.f32.mrb[36].mxu1 }
 0xaad   : > { %v2060_v35 = vadd.f32 %v2376_v32, %v2059_v59  ;;  %v2571_v36 = vpop.f32.mrb[37].mxu1 }
 0xaae   : > { %v2062_v37 = vpop.f32.mrb[38].mxu1 }
 0xaaf   : > { %v2063_v38 = vadd.f32 %v2376_v32, %v2062_v37  ;;  %v2572_v39 = vpop.f32.mrb[39].mxu1  ;;  %v2066_v40 = vadd.f32 %v2060_v35, %v1893_v2  ;;  %v2383_v2 = vld [vmem:[%s689_s21] ss:$0 sm:$0xff] }
 0xab1   : > { %v2070_v41 = vsel %vm794_vm2, %v2066_v40, 0.0  ;;  %v2067_v42 = vadd.f32 %v2063_v38, %v1894_v3 }
 0xab2   : > { %2071 = vadd.xlane.f32.xlu1 %v2070_v41 }
 0xab3   : > { %v2073_v43 = vsel %vm794_vm2, %v2067_v42, 0.0 }
 0xab4   : > { %2074 = vadd.xlane.f32.xlu0 %v2073_v43 }
 0xb3f   : > { %v2072_v44 = vpop.xlane.xlu1 %2071 }
 0xb40   : > { %v2076_v45 = vmul.f32 0.03125, %v2072_v44 }
 0xb41   : > { %v2075_v33 = vpop.xlane.xlu0 %2074 }
 0xb42   : > { %v2078_v46 = vsub.f32 %v2066_v40, %v2076_v45  ;;  %v2077_v34 = vmul.f32 0.03125, %v2075_v33 }
 0xb44   : > { %v2079_v47 = vsub.f32 %v2067_v42, %v2077_v34  ;;  %v2080_v49 = vmul.f32 %v2078_v46, %v2078_v46 }
 0xb46   : > { %v2082_v52 = vsel %vm794_vm2, %v2080_v49, 0.0  ;;  %v2081_v53 = vmul.f32 %v2079_v47, %v2079_v47 }
 0xb47   : > { %2083 = vadd.xlane.f32.xlu1 %v2082_v52 }
 0xb48   : > { %v2085_v54 = vsel %vm794_vm2, %v2081_v53, 0.0 }
 0xb49   : > { %2086 = vadd.xlane.f32.xlu0 %v2085_v54 }
 0xbd4   : > { %v2084_v55 = vpop.xlane.xlu1 %2083 }
 0xbd5   : > { %v2088_v58 = vmul.f32 0.03125, %v2084_v55 }
 0xbd6   : > { %v2087_v48 = vpop.xlane.xlu0 %2086 }
 0xbd7   : > { %v2090_v63 = vadd.f32 1e-12, %v2088_v58  ;;  %v2089_v56 = vmul.f32 0.03125, %v2087_v48 }
 0xbd9   : > { %2690 = vrsqrt.f32 %v2090_v63  ;;  %v2091_v57 = vadd.f32 1e-12, %v2089_v56 }
 0xbdb   : > { %2692 = vrsqrt.f32 %v2091_v57 }
 0xbe3   : > { %v2691_v60 = vpop.eup %2690 }
 0xbe4   : > { %v2094_v62 = vmul.f32 %v2691_v60, %v2078_v46 }
 0xbe5   : > { %v2693_v1 = vpop.eup %2692 }
 0xbe6   : > { %v2102_v3 = vmul.f32 %v2382_v61, %v2094_v62  ;;  %v2095_v4 = vmul.f32 %v2693_v1, %v2079_v47  ;;  %2117 = sbr.rel (%p2384_p5) target bundleno = 3236 (0xca4), region = 92 }
 0xbe8   : > { %v2110_v5 = vadd.f32 %v2383_v2, %v2102_v3  ;;  %v2103_v6 = vmul.f32 %v2382_v61, %v2095_v4 }
 0xbea   : > { %2112 = vst.msk [vmem:[#allocation2] sm:$0xff] %vm794_vm2, %v2110_v5  ;;  %v2111_v7 = vadd.f32 %v2383_v2, %v2103_v6  ;;  %v2118_v8 = vmul.f32 (!%p2384_p5), %v2110_v5, %v2110_v5 }
 0xbec   : > { %2113 = vst.msk [vmem:[#allocation2 + $0x8] sm:$0xff] %vm794_vm2, %v2111_v7  ;;  %v2119_v9 = vmul.f32 (!%p2384_p5), %v2111_v7, %v2111_v7 }
 0xbee   : > { %v2122_v10 = vrot.slane %v2119_v9, 7 }
 0xbf0   : > { %v2124_v11 = vsel %vm2123_vm8, %v2122_v10, %v2118_v8 }
 0xbf1   : > { %v2127_v12 = vsel %vm2126_vm9, %v2124_v11, 0.0 }
 0xbf2   : > { %2128 = vadd.xlane.f32.xlu0 %v2127_v12 }
 0xc7f   : > { %v2129_v13 = vpop.xlane.xlu0 %2128 }
 0xc80   : > { %2694 = vrsqrt.f32 %v2129_v13  ;;  %vm2132_vm10 = vcmp.eq.f32.partialorder %v2129_v13, inf  ;;  %v2135_v0 = vand.u32 2147483648, %v2129_v13  ;;  %vm2134_vm11 = vcmp.eq.f32.partialorder %v2129_v13, 0.0 }
 0xc8a   : > { %v2695_v14 = vpop.eup %2694 }
 0xc8b   : > { %v2131_v15 = vmul.f32 %v2695_v14, %v2129_v13 }
 0xc8d   : > { %v2133_v16 = vsel %vm2132_vm10, %v2129_v13, %v2131_v15 }
 0xc8e   : > { %v2136_v17 = vsel %vm2134_vm11, %v2135_v0, %v2133_v16 }
 0xc8f   : > { %v2137_v18 = vmax.f32 %v2136_v17, 1e-12 }
 0xc91   : > { %2696 = vrcp.f32 %v2137_v18 }
 0xc9b   : > { %v2697_v20 = vpop.eup %2696 }
 0xc9c   : > { %v2140_v21 = vrot.slane %v2697_v20, 1  ;;  %v2143_v31 = vmul.f32 %v2697_v20, %v2110_v5 }
 0xc9e   : > { %v2144_v22 = vmul.f32 %v2140_v21, %v2111_v7 }
 0xca0   : > { %v2147_v50 = vrot.slane %v2144_v22, 7 }
 0xca2   : > { %v2148_v51 = vsel %vm2123_vm8, %v2147_v50, %v2143_v31 }
 0xca3   : > { %2150 = vst.msk [vmem:[#allocation4] sm:$0x3] %vm2126_vm9, %v2148_v51 }
 0xca4 PF: > { %p2581_p6 = scmp.eq.s32.totalorder %s2875_s25, 1  ;;  %s2776_s5 = smov [#allocation2]  }
 0xca5   : > { %s2157_s26 = sshll.u32 %s2776_s5, 4  ;;  %s2158_s26 = int_to_ptr.vmem [resolvable:$true] %s2157_s26 }
 0xca6   : > { %s2698_s21 = scalar_lea.vmem %s2158_s26, 256  ;;  %p2705_p10 = scmp.lt.s32.totalorder %s2158_s26, %s2158_s26 }
 0xca7   : > { %p2699_p7 = scmp.ne.s32.totalorder %s2158_s26, %s2698_s21  ;;  %p2706_p11 = scmp.lt.s32.totalorder %s2698_s21, %s2698_s21 }
 0xca9   : > { %p2700_p8 = pnand %p2699_p7, %p2581_p6  ;;  %p2707_p12 = por %p2706_p11, %p2705_p10 }
 0xcab   : > { %p2701_p9 = pneg %p2700_p8 }
 0xcad   : > { %p2708_p13 = pnand %p2707_p12, %p2701_p9 }
 0xcaf   : > { %2711 = shalt.err (!%p2708_p13)
}
 0xcb0   : > { %s3326_s27 = sld [smem:[#allocation15_spill]] }
 0xcb6   : > { %s2712_s18 = scalar_lea.hbm %s3326_s27, 256 }
 0xcb7   : > { %p2713_p0 = scmp.ne.s32.totalorder %s3326_s27, %s2712_s18  ;;  %p2718_p3 = scmp.lt.u32.totalorder %s2712_s18, %s3326_s27 }
 0xcb9   : > { %p2714_p1 = pnand %p2713_p0, %p2581_p6 }
 0xcbb   : > { %p2715_p2 = pneg %p2714_p1 }
 0xcbd   : > { %p2720_p4 = pnand %p2718_p3, %p2715_p2 }
 0xcbf   : > { %2723 = shalt.err (!%p2720_p4)
}
 0xcc0   : > { %s2777_s8 = smov 128   ;;  %s2778_s24 = smov [#allocation4]  }
 0xcc1   : > { %2574 = dma.vmem_to_hbm [thread:$0]  (%p2581_p6), %s2158_s26, 256, %s3326_s27, [#allocation3], %s2777_s8, %s2777_s8, %s2773_s30  }
 0xcc2   : > { %s2171_s4 = sshll.u32 %s2778_s24, 4  ;;  %s2172_s4 = int_to_ptr.vmem [resolvable:$true] %s2171_s4 }
 0xcc3   : > { %s2724_s28 = scalar_lea.vmem %s2172_s4, 32  ;;  %p2731_p9 = scmp.lt.s32.totalorder %s2172_s4, %s2172_s4 }
 0xcc4   : > { %p2725_p5 = scmp.ne.s32.totalorder %s2172_s4, %s2724_s28  ;;  %p2732_p10 = scmp.lt.s32.totalorder %s2724_s28, %s2724_s28 }
 0xcc6   : > { %p2726_p7 = pnand %p2725_p5, %p2581_p6  ;;  %p2733_p11 = por %p2732_p10, %p2731_p9 }
 0xcc8   : > { %p2727_p8 = pneg %p2726_p7 }
 0xcca   : > { %p2734_p12 = pnand %p2733_p11, %p2727_p8 }
 0xccc   : > { %2737 = shalt.err (!%p2734_p12)
}
 0xccd   : > { %s3327_s16 = sld [smem:[#allocation16_spill]] }
 0xcd3   : > { %s2738_s6 = scalar_lea.hbm %s3327_s16, 32 }
 0xcd4   : > { %p2739_p13 = scmp.ne.s32.totalorder %s3327_s16, %s2738_s6  ;;  %p2744_p2 = scmp.lt.u32.totalorder %s2738_s6, %s3327_s16 }
 0xcd6   : > { %p2740_p0 = pnand %p2739_p13, %p2581_p6 }
 0xcd8   : > { %p2741_p1 = pneg %p2740_p0 }
 0xcda   : > { %p2746_p3 = pnand %p2744_p2, %p2741_p1 }
 0xcdc   : > { %2749 = shalt.err (!%p2746_p3)
}
 0xcdd   : > { %2576 = dma.vmem_to_hbm [thread:$0]  (%p2581_p6), %s2172_s4, 32, %s3327_s16, [#allocation5]  }
 0xcde   : > { %2755 = dma.done.wait (%p2581_p6), [#allocation3], 256  }
 0xcdf   : > { %2757 = vsyncadd (%p2581_p6), [#allocation3], 4294967040 }
 0xce0   : > { %2759 = dma.done.wait (%p2581_p6), [#allocation5], 32  }
 0xce1   : > { %2761 = vsyncadd (%p2581_p6), [#allocation5], 4294967264 }
 0xce2 PF: > { %s3328_s23 = sld [smem:[#allocation8_spill]] }
 0xce8   : > { %s30_s24 = sadd.s32 1, %s3328_s23  }
 0xce9   : > { %p27_p4 = scmp.ge.s32.totalorder %s30_s24, 4  }
 0xceb   :  { %29 = sbr.rel (!%p27_p4) target bundleno = 11 (0xb), region = 160 }
 0xcf2   :  { %2188 = vsyncpa [#allocation3], 1 }
 0xcf3   :  { %2190 = vsyncpa [#allocation3 + $0x1], 1 }
 0xcf4   :  { %2191 = vsyncpa [#allocation5], 1 }

// kernel: blip1_wrapper_forward.4
= control target key start
LH: loop header
LB: loop body
LE: loop exit
PB: predicated region body
PF: predicated region fallthrough
CT: control target
= control target key end

     0   :  { %s4610_s0 = inlined_call_operand.vmem [shape: f32[2,5,32], index: 0, kind: input, shape index: {}]   ;;  %s4611_s1 = inlined_call_operand.vmem [shape: f32[2,1,32], index: 1, kind: input, shape index: {}]   ;;  %s4612_s2 = inlined_call_operand.vmem [shape: f32[2,1,32], index: 2, kind: input, shape index: {}]   ;;  %s4613_s3 = inlined_call_operand.vmem [shape: bf16[2,32,96], index: 3, kind: input, shape index: {}]   ;;  %s4614_s4 = inlined_call_operand.vmem [shape: f32[2,1,96], index: 4, kind: input, shape index: {}]   ;;  %s4615_s5 = inlined_call_operand.vmem [shape: bf16[2,32,32], index: 5, kind: input, shape index: {}]   ;;  %s4616_s6 = inlined_call_operand.vmem [shape: f32[2,1,32], index: 6, kind: input, shape index: {}]   ;;  %s4617_s7 = inlined_call_operand.vmem [shape: f32[2,1,32], index: 7, kind: input, shape index: {}]   ;;  %s4618_s8 = inlined_call_operand.vmem [shape: f32[2,1,32], index: 8, kind: input, shape index: {}]   ;;  %s4619_s9 = inlined_call_operand.vmem [shape: bf16[2,32,64], index: 9, kind: input, shape index: {}]   ;;  %s4620_s10 = inlined_call_operand.vmem [shape: f32[2,1,64], index: 10, kind: input, shape index: {}]   ;;  %s4621_s11 = inlined_call_operand.vmem [shape: bf16[2,64,32], index: 11, kind: input, shape index: {}]   ;;  %s4622_s12 = inlined_call_operand.vmem [shape: f32[2,1,32], index: 12, kind: input, shape index: {}]   ;;  %s4623_s13 = inlined_call_operand.vmem [shape: f32[1,32], index: 13, kind: input, shape index: {}]   ;;  %s4624_s14 = inlined_call_operand.vmem [shape: f32[1,32], index: 14, kind: input, shape index: {}]   ;;  %s4625_s15 = inlined_call_operand.hbm [shape: f32[2,5,32], index: 15, kind: output, shape index: {0}]   ;;  %s4626_s16 = inlined_call_operand.hbm [shape: f32[2,32], index: 16, kind: output, shape index: {1}]  }
   0x1   :  { %4631 = sst [smem:[#allocation9_spill]] %s4610_s0 }
   0x2   :  { %4632 = sst [smem:[#allocation10_spill]] %s4613_s3 }
   0x3   :  { %4633 = sst [smem:[#allocation11_spill]] %s4615_s5 }
   0x4   :  { %4634 = sst [smem:[#allocation12_spill]] %s4623_s13 }
   0x5   :  { %4635 = sst [smem:[#allocation13_spill]] %s4624_s14 }
   0x6   :  { %4636 = sst [smem:[#allocation14_spill]] %s4625_s15 }
   0x7   :  { %4637 = sst [smem:[#allocation15_spill]] %s4626_s16 }
   0x8   :  { %22 = vsyncpa [#allocation3], 0 }
   0x9   :  { %23 = vsyncpa [#allocation5], 0  ;;  %s3992_s21 = smov 0  }
   0xa LB: > { %4638 = sst [smem:[#allocation8_spill]] %s3890_s21  ;;  %s3998_s22 = sadd.s32 4294967295, %s3890_s21   ;;  %s3890_s21 = sphi %s3992_s21, %s29_s21  }
   0xb   : > { %p3479_p0 = scmp.ge.s32.totalorder %s3890_s21, 1  ;;  %p551_p1 = scmp.lt.s32.totalorder %s3890_s21, 3 }
   0xd   : > { %p552_p2 = pnand %p3479_p0, %p551_p1 }
   0xe   : > { %p635_p3 = scmp.lt.s32.totalorder (!%p552_p2), %s3998_s22, 1  ;;  %s4639_s3 = sld [smem:[#allocation10_spill]] (!%p552_p2) }
   0xf   : > { %555 = sbr.rel (%p552_p2) target bundleno = 3421 (0xd5d), region = 80  ;;  %s4640_s5 = sld [smem:[#allocation11_spill]] (!%p552_p2) }
  0x10   : > { %p3488_p4 = scmp.ne.s32.totalorder (!%p552_p2), %s3998_s22, 0 }
  0x16   : > { %s4004_s23 = scalar_select %p635_p3, %s3998_s22, 1 }
  0x17   : > { %683 = sbr.rel (%p3488_p4) target bundleno = 31 (0x1f), region = 84  ;;  %s4641_s19 = sld [smem:[#allocation9_spill]] (!%p3488_p4)  ;;  %vm686_vm0 = vcmask (!%p3488_p4), 258048  }
  0x18   : > { %s3543_s30 = sshll.u32 %s4004_s23, 4  ;;  %s659_s14 = scalar_lea.vmem %s4617_s7, %s4004_s23 }
  0x19   : > { %s4022_s24 = scalar_lea.vmem %s4639_s3, %s3543_s30  ;;  %s4027_s16 = scalar_lea.vmem %s4640_s5, %s3543_s30 }
  0x1a   : > { %s662_s18 = scalar_lea.vmem %s4618_s8, %s4004_s23  ;;  %s4044_s3 = scalar_lea.vmem %s4619_s9, %s3543_s30 }
  0x1b   : > { %s670_s5 = scalar_lea.vmem %s4620_s10, %s4004_s23  ;;  %s3546_s13 = sshll.u32 %s4004_s23, 5 }
  0x1c   : > { %s4054_s27 = scalar_lea.vmem %s4621_s11, %s3546_s13  ;;  %s678_s0 = scalar_lea.vmem %s4622_s12, %s4004_s23 }
  0x1d   : > { %v684_v0 = vld [vmem:[%s4641_s19] sm:$0x1f] (!%p3488_p4)  ;;  %v685_v1 = vld [vmem:[%s4641_s19 + $0x8] sm:$0x1f] (!%p3488_p4) }
  0x1e   : > { %687 = vst.msk [vmem:[#allocation2] sm:$0x1f] %vm686_vm0, %v684_v0  ;;  %688 = vst.msk [vmem:[#allocation2 + $0x8] sm:$0x1f] %vm686_vm0, %v685_v1 }
  0x1f PF: > { %vm693_vm1 = vcmask 258048   ;;  %v3760_v16 = vld [vmem:[%s4022_s24] sm:$0xff]   ;;  %v3892_v17 = vmov 0.0   ;;  %vm3893_vm2 = vmmov 0   ;;  %v3761_v18 = vld [vmem:[%s4022_s24 + $0x8] sm:$0xff]   ;;  %v753_v27 = vlaneseq  ;;  %s4642_s25 = scalar_lea.vmem %s4611_s1, %s4004_s23  ;;  %s4643_s29 = scalar_lea.vmem %s4612_s2, %s4004_s23 }
  0x20   : > { %3593 = vmatprep.subr.bf16.mxu0 %v3892_v17  ;;  %3597 = vmatprep.mubr.msk.bf16.mxu0 %vm3893_vm2, %v3892_v17  ;;  %v3894_v25 = vmov 1966171168   ;;  %v3489_v31 = vld [vmem:[%s4642_s25] ss:$0 sm:$0xff]  ;;  %vm912_vm3 = vcmask 261120   ;;  %s4644_s30 = scalar_lea.vmem %s4614_s4, %s4004_s23  ;;  %s3895_s20 = smov 120  }
  0x21   : > { %3594 = vmatpush3.bf16.msra.mxu0 %v3760_v16  ;;  %3601 = vmatprep.subr.bf16.mxu1 %v3892_v17  ;;  %v751_v26 = vunpack.c.l.s4 %v3894_v25  ;;  %v754_v29 = vshrl.u32 %v753_v27, 7  ;;  %v3490_v33 = vld [vmem:[%s4643_s29] ss:$0 sm:$0xff]  ;;  %s3896_s21 = smov 112   ;;  %s3897_s13 = smov 104   ;;  %vm1421_vm4 = vcmask 64512  }
  0x22   : > { %3595 = vmatprep.subr.bf16.mxu0 %v3892_v17  ;;  %3603 = vmatprep.mubr.msk.bf16.mxu1 %vm3893_vm2, %v3892_v17  ;;  %s3898_s24 = smov 96   ;;  %vm1811_vm5 = vcmask 36864   ;;  %s3899_s25 = smov 64   ;;  %vm1914_vm6 = vcmask 1041408   ;;  %vm1915_vm7 = vcmask 1042432   ;;  %vm1910_vm8 = vcmask 39936  }
  0x23   : > { %v752_v28 = vunpack.c.0.s8 %v751_v26  ;;  %s3901_s15 = smov 8   ;;  %s3902_s26 = smov 16   ;;  %vm2326_vm9 = vcmask 195584   ;;  %vm2323_vm10 = vcmask 130048   ;;  %vm3009_vm11 = vcmask 523264  }
  0x24   : > { %s3903_s29 = smov 24   ;;  %s4645_s17 = scalar_lea.vmem %s4616_s6, %s4004_s23 }
  0x25   : > { %v689_v2 = vld [vmem:[#allocation2] sm:$0x1f]  ;;  %v690_v3 = vld [vmem:[#allocation2 + $0x8] sm:$0x1f]  ;;  %3596 = vmatpush3.bf16.msra.mxu0 %v3761_v18  ;;  %v4091_v34 = vsub.s32 %v752_v28, %v754_v29  ;;  %p3533_p5 = scmp.eq.s32.totalorder %s3998_s22, 1 }
  0x26   : > { %v694_v4 = vsel %vm693_vm1, %v689_v2, 0.0  ;;  %v697_v5 = vsel %vm693_vm1, %v690_v3, 0.0  ;;  %3607 = vmatprep.subr.bf16.mxu0 %v3892_v17 }
  0x27   : > { %695 = vadd.xlane.f32.xlu0 %v694_v4 }
  0x2b   : > { %698 = vadd.xlane.f32.xlu0 %v697_v5 }
  0xb4   : > { %v696_v6 = vpop.xlane.xlu0 %695 }
  0xb5   : > { %v701_v7 = vmul.f32 0.03125, %v696_v6 }
  0xb7   : > { %v703_v8 = vsub.f32 %v689_v2, %v701_v7 }
  0xb8   : > { %v699_v9 = vpop.xlane.xlu0 %698 }
  0xb9   : > { %v702_v10 = vmul.f32 0.03125, %v699_v9  ;;  %v705_v11 = vmul.f32 %v703_v8, %v703_v8 }
  0xbb   : > { %v704_v12 = vsub.f32 %v690_v3, %v702_v10  ;;  %v707_v13 = vsel %vm693_vm1, %v705_v11, 0.0  ;;  %v3492_v10 = vld [vmem:[%s4644_s30] ss:$0 sm:$0xff] }
  0xbc   : > { %708 = vadd.xlane.f32.xlu1 %v707_v13 }
  0xbd   : > { %v706_v14 = vmul.f32 %v704_v12, %v704_v12 }
  0xbf   : > { %v710_v15 = vsel %vm693_vm1, %v706_v14, 0.0 }
  0xc0   : > { %711 = vadd.xlane.f32.xlu1 %v710_v15 }
 0x149   : > { %v709_v19 = vpop.xlane.xlu1 %708 }
 0x14a   : > { %v713_v20 = vmul.f32 0.03125, %v709_v19 }
 0x14c   : > { %v715_v21 = vadd.f32 1e-05, %v713_v20 }
 0x14d   : > { %v712_v22 = vpop.xlane.xlu1 %711 }
 0x14e   : > { %3770 = vrsqrt.f32 %v715_v21  ;;  %v714_v23 = vmul.f32 0.03125, %v712_v22 }
 0x150   : > { %v716_v24 = vadd.f32 1e-05, %v714_v23 }
 0x152   : > { %3772 = vrsqrt.f32 %v716_v24 }
 0x158   : > { %v3771_v30 = vpop.eup %3770 }
 0x159   : > { %v719_v32 = vmul.f32 %v3771_v30, %v703_v8 }
 0x15b   : > { %v727_v35 = vmul.f32 %v3489_v31, %v719_v32 }
 0x15c   : > { %v3773_v36 = vpop.eup %3772 }
 0x15d   : > { %v735_v37 = vadd.f32 %v3490_v33, %v727_v35  ;;  %v720_v38 = vmul.f32 %v3773_v36, %v704_v12 }
 0x15f   : > { %v749_v39 = vcombine.high %v735_v37, %v735_v37  ;;  %v756_v40 = vrot.slane %v735_v37, %v4091_v34  ;;  %v728_v41 = vmul.f32 %v3489_v31, %v720_v38 }
 0x161   : > { %v763_v42 = vrot.slane %v749_v39, %v4091_v34  ;;  %v764_v43 = vcombine.high %v756_v40, %v756_v40  ;;  %v736_v44 = vadd.f32 %v3490_v33, %v728_v41  ;;  %v771_v47 = vrot.slane %v756_v40, %v4091_v34 }
 0x163   : > { %v788_v45 = vcombine.high %v736_v44, %v736_v44  ;;  %v795_v46 = vrot.slane %v736_v44, %v4091_v34  ;;  %v785_v48 = vrot.slane %v764_v43, %v4091_v34  ;;  %v778_v49 = vrot.slane %v763_v42, %v4091_v34 }
 0x165   : > { %v802_v50 = vrot.slane %v788_v45, %v4091_v34  ;;  %v803_v51 = vcombine.high %v795_v46, %v795_v46  ;;  %v810_v52 = vrot.slane %v795_v46, %v4091_v34  ;;  %v827_v53 = vcombine.low %v771_v47, %v785_v48 }
 0x166   : > { %v3491_v54 = vcombine.high %v771_v47, %v785_v48 }
 0x167   : > { %v824_v55 = vrot.slane %v803_v51, %v4091_v34  ;;  %v825_v56 = vcombine.high %v810_v52, %v810_v52  ;;  %v829_v57 = vcombine.low %v778_v49, %v810_v52  ;;  %v837_v58 = vrot.slane %v827_v53, %v4091_v34 }
 0x168   : > { %v844_v59 = vrot.slane %v3491_v54, %v4091_v34  ;;  %v817_v60 = vrot.slane %v802_v50, %v4091_v34 }
 0x169   : > { %v826_v61 = vcombine.high %v824_v55, %v824_v55  ;;  %v830_v62 = vcombine.low %v824_v55, %v825_v56  ;;  %v851_v63 = vrot.slane %v829_v57, %v4091_v34 }
 0x16a   : > { %v859_v1 = vcombine.low %v837_v58, %v844_v59 }
 0x16b   : > { %v858_v0 = vrot.slane %v830_v62, %v4091_v34  ;;  %v876_v2 = vcombine.low %v826_v61, %v817_v60 }
 0x16c   : > { %v867_v5 = vrot.slane %v859_v1, %v4091_v34 }
 0x16d   : > { %v860_v3 = vcombine.low %v851_v63, %v858_v0  ;;  %v883_v4 = vrot.slane %v876_v2, %v4091_v34 }
 0x16f   : > { %v874_v6 = vrot.slane %v860_v3, %v4091_v34  ;;  %v890_v8 = vrot.slane %v883_v4, %v4091_v34 }
 0x171   : > { %v875_v7 = vcombine.low %v867_v5, %v874_v6 }
 0x173   : > { %v893_v9 = vpack.c.bf16 %v890_v8, %v875_v7 }
 0x175   : > { %3598 = vmatmul.mubr.msk.bf16.vlgmr.msra.gmra.mrb[0].mxu0 %vm912_vm3, %v893_v9 }
 0x176   : > { %3609 = vmatprep.mubr.msk.bf16.mxu0 %vm3893_vm2, %v3892_v17 }
 0x248   : > { %v950_v11 = vpop.f32.mrb[0].mxu0 }
 0x249   : > { %v951_v12 = vadd.f32 %v3492_v10, %v950_v11  ;;  %v3599_v13 = vpop.f32.mrb[1].mxu0 }
 0x24a   : > { %v953_v14 = vpop.f32.mrb[2].mxu0 }
 0x24b   : > { %v959_v15 = vcombine.high %v951_v12, %v951_v12  ;;  %v966_v16 = vrot.slane %v951_v12, %v4091_v34  ;;  %v954_v18 = vadd.f32 %v3492_v10, %v953_v14  ;;  %v3600_v19 = vpop.f32.mrb[3].mxu0 }
 0x24d   : > { %v973_v20 = vrot.slane %v959_v15, %v4091_v34  ;;  %v974_v21 = vcombine.high %v966_v16, %v966_v16  ;;  %v982_v22 = vrot.slane %v966_v16, %v4091_v34  ;;  %v1014_v23 = vrot.slane %v954_v18, %v4091_v34 }
 0x24f   : > { %v975_v24 = vcombine.high %v973_v20, %v973_v20  ;;  %v989_v25 = vrot.slane %v973_v20, %v4091_v34  ;;  %v996_v26 = vrot.slane %v974_v21, %v4091_v34  ;;  %v1015_v27 = vcombine.high %v1014_v23, %v1014_v23  ;;  %1030 = vrot.lane.b32.xlu0 %v982_v22, %s3895_s20 }
 0x250   : > { %v1022_v30 = vrot.slane %v1014_v23, %v4091_v34  ;;  %v1004_v32 = vcombine.high %v982_v22, %v982_v22 }
 0x251   : > { %v1003_v28 = vrot.slane %v975_v24, %v4091_v34  ;;  %1032 = vrot.lane.b32.xlu1 %v996_v26, %s3895_s20  ;;  %v1005_v29 = vcombine.high %v989_v25, %v989_v25  ;;  %v1029_v31 = vrot.slane %v1015_v27, %v4091_v34  ;;  %v1006_v44 = vcombine.high %v996_v26, %v996_v26 }
 0x252   : > { %v1090_v45 = vcombine.low %v982_v22, %v996_v26  ;;  %v3496_v46 = vcombine.high %v982_v22, %v996_v26  ;;  %v1112_v50 = vrot.slane %v989_v25, %v4091_v34 }
 0x253   : > { %1050 = vrot.lane.b32.xlu0 %v982_v22, %s3896_s21  ;;  %v1007_v33 = vcombine.high %v1003_v28, %v1003_v28  ;;  %v1129_v35 = vcombine.low %v1003_v28, %v1005_v29  ;;  %v1151_v39 = vrot.slane %v1029_v31, %v4091_v34 }
 0x254   : > { %v1098_v47 = vrot.slane %v1090_v45, %v4091_v34  ;;  %v1105_v48 = vrot.slane %v3496_v46, %v4091_v34  ;;  %v1127_v52 = vrot.slane %v1112_v50, %v4091_v34 }
 0x255   : > { %1034 = vrot.lane.b32.xlu1 %v1004_v32, %s3895_s20  ;;  %v1130_v36 = vcombine.low %v1007_v33, %v1022_v30  ;;  %v1137_v37 = vrot.slane %v1129_v35, %v4091_v34  ;;  %v1166_v42 = vrot.slane %v1151_v39, %v4091_v34 }
 0x256   : > { %v1113_v49 = vcombine.low %v1098_v47, %v1105_v48 }
 0x257   : > { %1070 = vrot.lane.b32.xlu0 %v982_v22, %s3897_s13  ;;  %v1144_v38 = vrot.slane %v1130_v36, %v4091_v34 }
 0x258   : > { %v1120_v51 = vrot.slane %v1113_v49, %v4091_v34 }
 0x259   : > { %1046 = vrot.lane.b32.xlu1 %v1022_v30, %s3895_s20  ;;  %v1152_v40 = vcombine.low %v1137_v37, %v1144_v38 }
 0x25a   : > { %v1128_v53 = vcombine.low %v1120_v51, %v1127_v52 }
 0x25b   : > { %1038 = vrot.lane.b32.xlu0 %v989_v25, %s3895_s20  ;;  %v1159_v41 = vrot.slane %v1152_v40, %v4091_v34 }
 0x25c   : > { %v4166_v54 = vpack.c.bf16 %v1128_v53, %v1128_v53 }
 0x25d   : > { %1052 = vrot.lane.b32.xlu1 %v996_v26, %s3896_s21  ;;  %v1167_v43 = vcombine.low %v1159_v41, %v1166_v42 }
 0x25f   : > { %1054 = vrot.lane.b32.xlu0 %v1004_v32, %s3896_s21  ;;  %v4172_v55 = vpack.c.bf16 %v1167_v43, %v1167_v43 }
 0x261   : > { %1066 = vrot.lane.b32.xlu1 %v1022_v30, %s3896_s21 }
 0x263   : > { %1058 = vrot.lane.b32.xlu0 %v989_v25, %s3896_s21 }
 0x265   : > { %1072 = vrot.lane.b32.xlu1 %v996_v26, %s3897_s13 }
 0x267   : > { %1040 = vrot.lane.b32.xlu0 %v1003_v28, %s3895_s20 }
 0x269   : > { %1036 = vrot.lane.b32.xlu1 %v1006_v44, %s3895_s20 }
 0x26b   : > { %1060 = vrot.lane.b32.xlu0 %v1003_v28, %s3896_s21 }
 0x26d   : > { %1042 = vrot.lane.b32.xlu1 %v1005_v29, %s3895_s20 }
 0x26f   : > { %1044 = vrot.lane.b32.xlu0 %v1007_v33, %s3895_s20 }
 0x271   : > { %1048 = vrot.lane.b32.xlu1 %v1029_v31, %s3895_s20 }
 0x273   : > { %1074 = vrot.lane.b32.xlu0 %v1004_v32, %s3897_s13 }
 0x275   : > { %1056 = vrot.lane.b32.xlu1 %v1006_v44, %s3896_s21 }
 0x277   : > { %1064 = vrot.lane.b32.xlu0 %v1007_v33, %s3896_s21 }
 0x279   : > { %1062 = vrot.lane.b32.xlu1 %v1005_v29, %s3896_s21 }
 0x27b   : > { %1080 = vrot.lane.b32.xlu0 %v1003_v28, %s3897_s13 }
 0x27d   : > { %1068 = vrot.lane.b32.xlu1 %v1029_v31, %s3896_s21 }
 0x27f   : > { %1084 = vrot.lane.b32.xlu0 %v1007_v33, %s3897_s13 }
 0x281   : > { %1076 = vrot.lane.b32.xlu1 %v1006_v44, %s3897_s13 }
 0x283   : > { %1078 = vrot.lane.b32.xlu0 %v989_v25, %s3897_s13 }
 0x285   : > { %1082 = vrot.lane.b32.xlu1 %v1005_v29, %s3897_s13 }
 0x287   : > { %1419 = vrot.lane.b32.xlu0 %v4166_v54, %s3898_s24 }
 0x289   : > { %1086 = vrot.lane.b32.xlu1 %v1022_v30, %s3897_s13 }
 0x28d   : > { %1088 = vrot.lane.b32.xlu1 %v1029_v31, %s3897_s13 }
 0x291   : > { %1469 = vrot.lane.b32.xlu1 %v4172_v55, %s3898_s24 }
 0x2c1   : > { %v1031_v56 = vpop.permute.xlu0 %1030 }
 0x2c3   : > { %v1033_v57 = vpop.permute.xlu1 %1032 }
 0x2c4   : > { %v1168_v5 = vcombine.low %v1031_v56, %v1033_v57 }
 0x2c5   : > { %v1051_v58 = vpop.permute.xlu0 %1050 }
 0x2c6   : > { %v1176_v9 = vrot.slane %v1168_v5, %v4091_v34 }
 0x2c7   : > { %v1035_v59 = vpop.permute.xlu1 %1034 }
 0x2c9   : > { %v4176_v60 = vpop.permute.xlu0 %1070 }
 0x2cb   : > { %v1047_v61 = vpop.permute.xlu1 %1046 }
 0x2cd   : > { %v1039_v62 = vpop.permute.xlu0 %1038 }
 0x2ce   : > { %v1190_v10 = vrot.slane %v1039_v62, %v4091_v34 }
 0x2cf   : > { %v1053_v63 = vpop.permute.xlu1 %1052 }
 0x2d0   : > { %v1205_v16 = vrot.slane %v1190_v10, %v4091_v34  ;;  %v1246_v25 = vcombine.low %v1051_v58, %v1053_v63 }
 0x2d1   : > { %v1055_v0 = vpop.permute.xlu0 %1054 }
 0x2d2   : > { %v1254_v33 = vrot.slane %v1246_v25, %v4091_v34 }
 0x2d3   : > { %v1067_v1 = vpop.permute.xlu1 %1066 }
 0x2d5   : > { %v1059_v2 = vpop.permute.xlu0 %1058 }
 0x2d6   : > { %v1268_v36 = vrot.slane %v1059_v2, %v4091_v34 }
 0x2d7   : > { %v1073_v3 = vpop.permute.xlu1 %1072 }
 0x2d8   : > { %v1283_v45 = vrot.slane %v1268_v36, %v4091_v34  ;;  %v1324_v56 = vcombine.low %v4176_v60, %v1073_v3 }
 0x2d9   : > { %v1041_v4 = vpop.permute.xlu0 %1040 }
 0x2db   : > { %v1037_v6 = vpop.permute.xlu1 %1036 }
 0x2dc   : > { %v1169_v7 = vcombine.low %v1035_v59, %v1037_v6 }
 0x2dd   : > { %v1061_v8 = vpop.permute.xlu0 %1060 }
 0x2de   : > { %v1183_v11 = vrot.slane %v1169_v7, %v4091_v34 }
 0x2df   : > { %v1043_v12 = vpop.permute.xlu1 %1042 }
 0x2e0   : > { %v1191_v13 = vcombine.low %v1176_v9, %v1183_v11  ;;  %v1207_v14 = vcombine.low %v1041_v4, %v1043_v12 }
 0x2e1   : > { %v1045_v15 = vpop.permute.xlu0 %1044 }
 0x2e2   : > { %v1208_v18 = vcombine.low %v1045_v15, %v1047_v61  ;;  %v1198_v19 = vrot.slane %v1191_v13, %v4091_v34  ;;  %v1215_v21 = vrot.slane %v1207_v14, %v4091_v34 }
 0x2e3   : > { %v1049_v20 = vpop.permute.xlu1 %1048 }
 0x2e4   : > { %v1222_v22 = vrot.slane %v1208_v18, %v4091_v34  ;;  %v1229_v23 = vrot.slane %v1049_v20, %v4091_v34  ;;  %v1206_v24 = vcombine.low %v1198_v19, %v1205_v16 }
 0x2e5   : > { %v1075_v26 = vpop.permute.xlu0 %1074 }
 0x2e6   : > { %v1230_v27 = vcombine.low %v1215_v21, %v1222_v22  ;;  %v4186_v28 = vpack.c.bf16 %v1206_v24, %v1206_v24  ;;  %v1244_v30 = vrot.slane %v1229_v23, %v4091_v34 }
 0x2e7   : > { %v1057_v29 = vpop.permute.xlu1 %1056 }
 0x2e8   : > { %v1247_v31 = vcombine.low %v1055_v0, %v1057_v29  ;;  %1518 = vrot.lane.b32.xlu0 %v4186_v28, %s3898_s24  ;;  %v1237_v32 = vrot.slane %v1230_v27, %v4091_v34 }
 0x2e9   : > { %v1065_v35 = vpop.permute.xlu0 %1064 }
 0x2ea   : > { %v1261_v37 = vrot.slane %v1247_v31, %v4091_v34  ;;  %v1286_v38 = vcombine.low %v1065_v35, %v1067_v1  ;;  %v1245_v39 = vcombine.low %v1237_v32, %v1244_v30  ;;  %v1332_v1 = vrot.slane %v1324_v56, %v4091_v34 }
 0x2eb   : > { %v1063_v40 = vpop.permute.xlu1 %1062 }
 0x2ec   : > { %v1269_v41 = vcombine.low %v1254_v33, %v1261_v37  ;;  %v1285_v42 = vcombine.low %v1061_v8, %v1063_v40  ;;  %v4195_v43 = vpack.c.bf16 %v1245_v39, %v1245_v39  ;;  %v1300_v46 = vrot.slane %v1286_v38, %v4091_v34 }
 0x2ed   : > { %v1081_v44 = vpop.permute.xlu0 %1080 }
 0x2ee   : > { %v1293_v47 = vrot.slane %v1285_v42, %v4091_v34  ;;  %1567 = vrot.lane.b32.xlu1 %v4195_v43, %s3898_s24  ;;  %v1276_v48 = vrot.slane %v1269_v41, %v4091_v34 }
 0x2ef   : > { %v1069_v49 = vpop.permute.xlu1 %1068 }
 0x2f0   : > { %v1308_v50 = vcombine.low %v1293_v47, %v1300_v46  ;;  %v1307_v51 = vrot.slane %v1069_v49, %v4091_v34  ;;  %v1284_v52 = vcombine.low %v1276_v48, %v1283_v45 }
 0x2f1   : > { %v1085_v53 = vpop.permute.xlu0 %1084 }
 0x2f2   : > { %v1322_v57 = vrot.slane %v1307_v51, %v4091_v34  ;;  %v4206_v58 = vpack.c.bf16 %v1284_v52, %v1284_v52  ;;  %v1315_v59 = vrot.slane %v1308_v50, %v4091_v34 }
 0x2f3   : > { %v1077_v61 = vpop.permute.xlu1 %1076 }
 0x2f4   : > { %v1325_v62 = vcombine.low %v1075_v26, %v1077_v61  ;;  %1616 = vrot.lane.b32.xlu0 %v4206_v58, %s3898_s24  ;;  %v1323_v63 = vcombine.low %v1315_v59, %v1322_v57 }
 0x2f5   : > { %v1079_v0 = vpop.permute.xlu0 %1078 }
 0x2f6   : > { %v1339_v2 = vrot.slane %v1325_v62, %v4091_v34  ;;  %v1346_v4 = vrot.slane %v1079_v0, %v4091_v34  ;;  %v4214_v60 = vpack.c.bf16 %v1323_v63, %v1323_v63 }
 0x2f7   : > { %v1083_v3 = vpop.permute.xlu1 %1082 }
 0x2f8   : > { %v1347_v5 = vcombine.low %v1332_v1, %v1339_v2  ;;  %1665 = vrot.lane.b32.xlu1 %v4214_v60, %s3898_s24  ;;  %v1361_v7 = vrot.slane %v1346_v4, %v4091_v34  ;;  %v1363_v8 = vcombine.low %v1081_v44, %v1083_v3 }
 0x2f9   : > { %v1420_v6 = vpop.permute.xlu0 %1419 }
 0x2fa   : > { %v1426_v9 = vsel %vm1421_vm4, %v1420_v6, 0  ;;  %v1354_v10 = vrot.slane %v1347_v5, %v4091_v34  ;;  %v1371_v14 = vrot.slane %v1363_v8, %v4091_v34 }
 0x2fb   : > { %3602 = vmatpush3.bf16.xpose.msra.mxu1 %v1426_v9  ;;  %v1087_v11 = vpop.permute.xlu1 %1086 }
 0x2fc   : > { %v1364_v12 = vcombine.low %v1085_v53, %v1087_v11  ;;  %v1362_v13 = vcombine.low %v1354_v10, %v1361_v7  ;;  %3613 = vmatprep.subr.bf16.mxu1 %v3892_v17 }
 0x2fe   : > { %v1378_v15 = vrot.slane %v1364_v12, %v4091_v34  ;;  %v4224_v16 = vpack.c.bf16 %v1362_v13, %v1362_v13 }
 0x2ff   : > { %v1089_v18 = vpop.permute.xlu1 %1088 }
 0x300   : > { %v1386_v19 = vcombine.low %v1371_v14, %v1378_v15  ;;  %v1385_v20 = vrot.slane %v1089_v18, %v4091_v34  ;;  %1714 = vrot.lane.b32.xlu0 %v4224_v16, %s3898_s24 }
 0x302   : > { %v1400_v21 = vrot.slane %v1385_v20, %v4091_v34  ;;  %3604 = vmatmul.mubr.msk.bf16.vlgmr.msra.gmra.mrb[0].mxu1 %vm1421_vm4, %v4166_v54  ;;  %v1393_v22 = vrot.slane %v1386_v19, %v4091_v34 }
 0x303   : > { %v1470_v23 = vpop.permute.xlu1 %1469  ;;  %3615 = vmatprep.mubr.msk.bf16.mxu1 %vm3893_vm2, %v3892_v17 }
 0x304   : > { %v1475_v24 = vsel %vm1421_vm4, %v1470_v23, 0  ;;  %v1401_v25 = vcombine.low %v1393_v22, %v1400_v21 }
 0x305   : > { %3608 = vmatpush3.bf16.xpose.msra.mxu0 %v1475_v24 }
 0x306   : > { %v4236_v26 = vpack.c.bf16 %v1401_v25, %v1401_v25  ;;  %3619 = vmatprep.subr.bf16.mxu0 %v3892_v17 }
 0x308   : > { %1763 = vrot.lane.b32.xlu1 %v4236_v26, %s3898_s24 }
 0x30c   : > { %3610 = vmatmul.mubr.msk.bf16.vlgmr.msra.gmra.mrb[4].mxu0 %vm1421_vm4, %v4172_v55 }
 0x30d   : > { %3621 = vmatprep.mubr.msk.bf16.mxu0 %vm3893_vm2, %v3892_v17 }
 0x35a   : > { %v1519_v27 = vpop.permute.xlu0 %1518 }
 0x35b   : > { %v1524_v29 = vsel %vm1421_vm4, %v1519_v27, 0 }
 0x35c   : > { %3614 = vmatpush3.bf16.xpose.msra.mxu1 %v1524_v29 }
 0x35d   : > { %3625 = vmatprep.subr.bf16.mxu1 %v3892_v17 }
 0x360   : > { %v1568_v30 = vpop.permute.xlu1 %1567 }
 0x361   : > { %v1573_v31 = vsel %vm1421_vm4, %v1568_v30, 0 }
 0x362   : > { %3620 = vmatpush3.bf16.xpose.msra.mxu0 %v1573_v31 }
 0x363   : > { %3616 = vmatmul.mubr.msk.bf16.vlgmr.msra.gmra.mrb[4].mxu1 %vm1421_vm4, %v4186_v28  ;;  %3631 = vmatprep.subr.bf16.mxu0 %v3892_v17 }
 0x364   : > { %3627 = vmatprep.mubr.msk.bf16.mxu1 %vm3893_vm2, %v3892_v17 }
 0x366   : > { %v1617_v32 = vpop.permute.xlu0 %1616 }
 0x367   : > { %v1622_v33 = vsel %vm1421_vm4, %v1617_v32, 0 }
 0x368   : > { %3626 = vmatpush3.bf16.xpose.msra.mxu1 %v1622_v33 }
 0x369   : > { %3622 = vmatmul.mubr.msk.bf16.vlgmr.msra.gmra.mrb[8].mxu0 %vm1421_vm4, %v4195_v43  ;;  %3637 = vmatprep.subr.bf16.mxu1 %v3892_v17 }
 0x36a   : > { %v1666_v35 = vpop.permute.xlu1 %1665  ;;  %3633 = vmatprep.mubr.msk.bf16.mxu0 %vm3893_vm2, %v3892_v17 }
 0x36b   : > { %v1671_v36 = vsel %vm1421_vm4, %v1666_v35, 0 }
 0x36c   : > { %3632 = vmatpush3.bf16.xpose.msra.mxu0 %v1671_v36 }
 0x36d   : > { %3643 = vmatprep.subr.bf16.mxu0 %v3892_v17 }
 0x36f   : > { %3628 = vmatmul.mubr.msk.bf16.vlgmr.msra.gmra.mrb[8].mxu1 %vm1421_vm4, %v4206_v58 }
 0x370   : > { %3639 = vmatprep.mubr.msk.bf16.mxu1 %vm3893_vm2, %v3892_v17 }
 0x372   : > { %v1715_v37 = vpop.permute.xlu0 %1714 }
 0x373   : > { %v1720_v38 = vsel %vm1421_vm4, %v1715_v37, 0  ;;  %3634 = vmatmul.mubr.msk.bf16.vlgmr.msra.gmra.mrb[12].mxu0 %vm1421_vm4, %v4214_v60 }
 0x374   : > { %3638 = vmatpush3.bf16.xpose.msra.mxu1 %v1720_v38  ;;  %3645 = vmatprep.mubr.msk.bf16.mxu0 %vm3893_vm2, %v3892_v17  ;;  %v3900_v38 = vmov 65535  }
 0x375   : > { %3649 = vmatprep.subr.bf16.mxu1 %v3892_v17 }
 0x37a   : > { %v1764_v39 = vpop.permute.xlu1 %1763 }
 0x37b   : > { %v1769_v40 = vsel %vm1421_vm4, %v1764_v39, 0  ;;  %3640 = vmatmul.mubr.msk.bf16.vlgmr.msra.gmra.mrb[12].mxu1 %vm1421_vm4, %v4224_v16  ;;  %v1916_v39 = vsel %vm1914_vm6, 4294967295, %v3900_v38 }
 0x37c   : > { %3644 = vmatpush3.bf16.xpose.msra.mxu0 %v1769_v40  ;;  %3651 = vmatprep.mubr.msk.bf16.mxu1 %vm3893_vm2, %v3892_v17 }
 0x37d   : > { %3655 = vmatprep.subr.bf16.mxu0 %v3892_v17 }
 0x383   : > { %3646 = vmatmul.mubr.msk.bf16.vlgmr.msra.gmra.mrb[16].mxu0 %vm1421_vm4, %v4236_v26 }
 0x384   : > { %3657 = vmatprep.mubr.msk.bf16.mxu0 %vm3893_vm2, %v3892_v17 }
 0x3d5   : > { %v1462_v41 = vpop.f32.mrb[0].mxu1 }
 0x3d6   : > { %v3605_v42 = vpop.f32.mrb[1].mxu1  ;;  %v1812_v44 = vsel %vm1811_vm5, %v1462_v41, -inf }
 0x3d7   : > { %v1465_v45 = vpop.f32.mrb[2].mxu1  ;;  %1813 = vmax.xlane.f32.xlu0 %v1812_v44  ;;  %v4324_v44 = vsel %vm1915_vm7, %v1916_v39, 0 }
 0x3d8   : > { %v3606_v46 = vpop.f32.mrb[3].mxu1 }
 0x3df   : > { %v1511_v47 = vpop.f32.mrb[4].mxu0 }
 0x3e0   : > { %v3611_v48 = vpop.f32.mrb[5].mxu0  ;;  %v1815_v49 = vsel %vm1811_vm5, %v1511_v47, -inf }
 0x3e1   : > { %1816 = vmax.xlane.f32.xlu1 %v1815_v49  ;;  %v1514_v50 = vpop.f32.mrb[6].mxu0 }
 0x3e2   : > { %v3612_v51 = vpop.f32.mrb[7].mxu0 }
 0x436   : > { %v1560_v52 = vpop.f32.mrb[4].mxu1 }
 0x437   : > { %v3617_v53 = vpop.f32.mrb[5].mxu1  ;;  %v1818_v56 = vsel %vm1811_vm5, %v1560_v52, -inf }
 0x438   : > { %v1563_v57 = vpop.f32.mrb[6].mxu1  ;;  %1819 = vmax.xlane.f32.xlu0 %v1818_v56 }
 0x439   : > { %v3618_v59 = vpop.f32.mrb[7].mxu1 }
 0x43c   : > { %v4284_v61 = vpop.f32.mrb[8].mxu0 }
 0x43d   : > { %v3623_v62 = vpop.f32.mrb[9].mxu0  ;;  %v1821_v63 = vsel %vm1811_vm5, %v4284_v61, -inf }
 0x43e   : > { %1822 = vmax.xlane.f32.xlu0 %v1821_v63  ;;  %v1612_v0 = vpop.f32.mrb[10].mxu0 }
 0x43f   : > { %v3624_v1 = vpop.f32.mrb[11].mxu0 }
 0x442   : > { %v4288_v2 = vpop.f32.mrb[8].mxu1 }
 0x443   : > { %v3629_v4 = vpop.f32.mrb[9].mxu1  ;;  %v1824_v3 = vsel %vm1811_vm5, %v4288_v2, -inf }
 0x444   : > { %v1661_v5 = vpop.f32.mrb[10].mxu1  ;;  %1825 = vmax.xlane.f32.xlu0 %v1824_v3 }
 0x445   : > { %v3630_v6 = vpop.f32.mrb[11].mxu1 }
 0x446   : > { %v1707_v7 = vpop.f32.mrb[12].mxu0 }
 0x447   : > { %v3635_v8 = vpop.f32.mrb[13].mxu0  ;;  %v1827_v9 = vsel %vm1811_vm5, %v1707_v7, -inf }
 0x448   : > { %1828 = vmax.xlane.f32.xlu1 %v1827_v9  ;;  %v1710_v10 = vpop.f32.mrb[14].mxu0 }
 0x449   : > { %v3636_v11 = vpop.f32.mrb[15].mxu0 }
 0x44e   : > { %v4293_v12 = vpop.f32.mrb[12].mxu1 }
 0x44f   : > { %v3641_v13 = vpop.f32.mrb[13].mxu1  ;;  %v1830_v14 = vsel %vm1811_vm5, %v4293_v12, -inf }
 0x450   : > { %v1759_v15 = vpop.f32.mrb[14].mxu1  ;;  %1831 = vmax.xlane.f32.xlu0 %v1830_v14 }
 0x451   : > { %v3642_v18 = vpop.f32.mrb[15].mxu1 }
 0x456   : > { %v4297_v19 = vpop.f32.mrb[16].mxu0 }
 0x457   : > { %v3647_v20 = vpop.f32.mrb[17].mxu0  ;;  %v1833_v27 = vsel %vm1811_vm5, %v4297_v19, -inf }
 0x458   : > { %v1808_v21 = vpop.f32.mrb[18].mxu0 }
 0x459   : > { %1961 = vrot.lane.b32.xlu1 %v4172_v55, %s3899_s25  ;;  %v3648_v22 = vpop.f32.mrb[19].mxu0 }
 0x45d   : > { %2009 = vrot.lane.b32.xlu1 %v4186_v28, %s3899_s25 }
 0x464   : > { %v1814_v23 = vpop.xlane.xlu0 %1813 }
 0x465   : > { %v1836_v24 = vsub.f32 %v1462_v41, %v1814_v23 }
 0x466   : > { %1908 = vrot.lane.b32.xlu0 %v4166_v54, %s3899_s25 }
 0x467   : > { %v1844_v25 = vmul.f32 1.442695, %v1836_v24 }
 0x469   : > { %3774 = vpow2.f32 %v1844_v25 }
 0x46e   : > { %v1817_v28 = vpop.xlane.xlu1 %1816 }
 0x46f   : > { %v1837_v30 = vsub.f32 %v1511_v47, %v1817_v28 }
 0x471   : > { %v1846_v54 = vmul.f32 1.442695, %v1837_v30 }
 0x473   : > { %v4307_v29 = vpop.eup %3774  ;;  %3776 = vpow2.f32 %v1846_v54 }
 0x474   : > { %v1860_v55 = vsel %vm1811_vm5, %v4307_v29, 0.0 }
 0x47d   : > { %v4313_v31 = vpop.eup %3776 }
 0x47e   : > { %v1863_v32 = vsel %vm1811_vm5, %v4313_v31, 0.0 }
 0x481   : > { %1834 = vmax.xlane.f32.xlu1 %v1833_v27 }
 0x485   : > { %1861 = vadd.xlane.f32.xlu0 %v1860_v55 }
 0x492   : > { %2057 = vrot.lane.b32.xlu1 %v4195_v43, %s3899_s25 }
 0x4b6   : > { %1864 = vadd.xlane.f32.xlu1 %v1863_v32 }
 0x4c5   : > { %v1820_v33 = vpop.xlane.xlu0 %1819 }
 0x4c6   : > { %v1838_v35 = vsub.f32 %v1560_v52, %v1820_v33 }
 0x4c7   : > { %2153 = vrot.lane.b32.xlu1 %v4214_v60, %s3899_s25 }
 0x4c8   : > { %v1848_v36 = vmul.f32 1.442695, %v1838_v35 }
 0x4ca   : > { %3778 = vpow2.f32 %v1848_v36 }
 0x4cb   : > { %v1823_v37 = vpop.xlane.xlu0 %1822 }
 0x4cc   : > { %v1839_v40 = vsub.f32 %v4284_v61, %v1823_v37 }
 0x4ce   : > { %v1850_v45 = vmul.f32 1.442695, %v1839_v40 }
 0x4d0   : > { %3780 = vpow2.f32 %v1850_v45 }
 0x4d1   : > { %v1826_v60 = vpop.xlane.xlu0 %1825 }
 0x4d2   : > { %v1840_v61 = vsub.f32 %v4288_v2, %v1826_v60 }
 0x4d4   : > { %v4319_v43 = vpop.eup %3778  ;;  %v1852_v62 = vmul.f32 1.442695, %v1840_v61 }
 0x4d5   : > { %v1829_v41 = vpop.xlane.xlu1 %1828  ;;  %v1866_v42 = vsel %vm1811_vm5, %v4319_v43, 0.0 }
 0x4d6   : > { %1867 = vadd.xlane.f32.xlu0 %v1866_v42  ;;  %v1841_v46 = vsub.f32 %v1707_v7, %v1829_v41 }
 0x4d8   : > { %v1854_v49 = vmul.f32 1.442695, %v1841_v46 }
 0x4d9   : > { %v1962_v47 = vpop.permute.xlu1 %1961 }
 0x4da   : > { %v1967_v48 = vand.u32 %v1962_v47, %v4324_v44  ;;  %3782 = vpow2.f32 %v1854_v49  ;;  %v4330_v53 = vpop.eup %3780 }
 0x4db   : > { %v1869_v56 = vsel %vm1811_vm5, %v4330_v53, 0.0  ;;  %3784 = vpow2.f32 %v1852_v62 }
 0x4dc   : > { %3656 = vmatpush3.bf16.msra.mxu0 %v1967_v48 }
 0x4dd   : > { %v1832_v50 = vpop.xlane.xlu0 %1831  ;;  %3667 = vmatprep.subr.bf16.mxu0 %v3892_v17  ;;  %v2010_v4 = vpop.permute.xlu1 %2009 }
 0x4de   : > { %v1842_v63 = vsub.f32 %v4293_v12, %v1832_v50  ;;  %v2015_v14 = vand.u32 %v2010_v4, %v4324_v44 }
 0x4e0   : > { %v1856_v0 = vmul.f32 1.442695, %v1842_v63 }
 0x4e1   : > { %v1909_v51 = vpop.permute.xlu0 %1908 }
 0x4e2   : > { %v1919_v52 = vand.u32 %v4324_v44, %v1909_v51  ;;  %3786 = vpow2.f32 %v1856_v0 }
 0x4e4   : > { %3650 = vmatpush3.bf16.msra.mxu1 %v1919_v52  ;;  %v4334_v57 = vpop.eup %3782 }
 0x4e5   : > { %3661 = vmatprep.subr.bf16.mxu1 %v3892_v17  ;;  %v1875_v59 = vsel %vm1811_vm5, %v4334_v57, 0.0  ;;  %v4342_v1 = vpop.eup %3784 }
 0x4e6   : > { %v1872_v3 = vsel %vm1811_vm5, %v4342_v1, 0.0 }
 0x4eb   : > { %1870 = vadd.xlane.f32.xlu1 %v1869_v56 }
 0x4ec   : > { %2105 = vrot.lane.b32.xlu0 %v4206_v58, %s3899_s25  ;;  %v4346_v5 = vpop.eup %3786 }
 0x4ed   : > { %v1878_v6 = vsel %vm1811_vm5, %v4346_v5, 0.0 }
 0x4ef   : > { %1876 = vadd.xlane.f32.xlu1 %v1875_v59 }
 0x50b   : > { %1873 = vadd.xlane.f32.xlu0 %v1872_v3 }
 0x50e   : > { %v1835_v58 = vpop.xlane.xlu1 %1834 }
 0x50f   : > { %v1843_v2 = vsub.f32 %v4297_v19, %v1835_v58  ;;  %1879 = vadd.xlane.f32.xlu0 %v1878_v6 }
 0x511   : > { %v1858_v7 = vmul.f32 1.442695, %v1843_v2 }
 0x512   : > { %v1862_v8 = vpop.xlane.xlu0 %1861  ;;  %v2058_v15 = vpop.permute.xlu1 %2057 }
 0x513   : > { %3788 = vpow2.f32 %v1858_v7  ;;  %v2063_v22 = vand.u32 %v2058_v15, %v4324_v44 }
 0x514   : > { %3790 = vrcp.f32 %v1862_v8 }
 0x51d   : > { %v4351_v9 = vpop.eup %3788 }
 0x51e   : > { %v3791_v10 = vpop.eup %3790  ;;  %v1881_v11 = vsel %vm1811_vm5, %v4351_v9, 0.0 }
 0x51f   : > { %v1892_v12 = vmul.f32 %v3791_v10, %v4307_v29  ;;  %1882 = vadd.xlane.f32.xlu1 %v1881_v11 }
 0x521   : > { %v1900_v13 = vpack.c.bf16 %v1892_v12, %v1892_v12 }
 0x523   : > { %3652 = vmatmul.mubr.msk.bf16.vlgmr.msra.gmra.mrb[16].mxu1 %vm1910_vm8, %v1900_v13 }
 0x524   : > { %3662 = vmatpush3.bf16.msra.mxu1 %v2015_v14  ;;  %3663 = vmatprep.mubr.msk.bf16.mxu1 %vm3893_vm2, %v3892_v17 }
 0x525   : > { %2201 = vrot.lane.b32.xlu0 %v4224_v16, %s3899_s25  ;;  %3673 = vmatprep.subr.bf16.mxu1 %v3892_v17 }
 0x530   : > { %2249 = vrot.lane.b32.xlu1 %v4236_v26, %s3899_s25 }
 0x543   : > { %v1865_v18 = vpop.xlane.xlu1 %1864 }
 0x544   : > { %3792 = vrcp.f32 %v1865_v18 }
 0x547   : > { %v2154_v29 = vpop.permute.xlu1 %2153 }
 0x548   : > { %v2159_v33 = vand.u32 %v2154_v29, %v4324_v44 }
 0x54e   : > { %v3793_v19 = vpop.eup %3792 }
 0x54f   : > { %v1893_v20 = vmul.f32 %v3793_v19, %v4313_v31 }
 0x551   : > { %v1901_v21 = vpack.c.bf16 %v1893_v20, %v1893_v20 }
 0x553   : > { %3658 = vmatmul.mubr.msk.bf16.vlgmr.msra.gmra.mrb[20].mxu0 %vm1910_vm8, %v1901_v21 }
 0x554   : > { %3668 = vmatpush3.bf16.msra.mxu0 %v2063_v22  ;;  %3669 = vmatprep.mubr.msk.bf16.mxu0 %vm3893_vm2, %v3892_v17  ;;  %v3762_v22 = vld [vmem:[%s4027_s16] sm:$0xff]  }
 0x555   : > { %3679 = vmatprep.subr.bf16.mxu0 %v3892_v17 }
 0x563   : > { %v1868_v16 = vpop.xlane.xlu0 %1867 }
 0x564   : > { %3794 = vrcp.f32 %v1868_v16 }
 0x567   : > { %v2106_v24 = vpop.permute.xlu0 %2105 }
 0x568   : > { %v2111_v27 = vand.u32 %v2106_v24, %v4324_v44 }
 0x56e   : > { %v3795_v26 = vpop.eup %3794 }
 0x56f   : > { %v1894_v23 = vmul.f32 %v3795_v26, %v4319_v43 }
 0x571   : > { %v1902_v25 = vpack.c.bf16 %v1894_v23, %v1894_v23  ;;  %v3763_v23 = vld [vmem:[%s4027_s16 + $0x8] sm:$0xff]  }
 0x573   : > { %3664 = vmatmul.mubr.msk.bf16.vlgmr.msra.gmra.mrb[20].mxu1 %vm1910_vm8, %v1902_v25 }
 0x574   : > { %3674 = vmatpush3.bf16.msra.mxu1 %v2111_v27  ;;  %3675 = vmatprep.mubr.msk.bf16.mxu1 %vm3893_vm2, %v3892_v17 }
 0x575   : > { %3685 = vmatprep.subr.bf16.mxu1 %v3892_v17 }
 0x578   : > { %v1871_v55 = vpop.xlane.xlu1 %1870 }
 0x579   : > { %3796 = vrcp.f32 %v1871_v55 }
 0x57c   : > { %v1877_v28 = vpop.xlane.xlu1 %1876 }
 0x57d   : > { %3798 = vrcp.f32 %v1877_v28 }
 0x583   : > { %v3797_v30 = vpop.eup %3796 }
 0x584   : > { %v1895_v54 = vmul.f32 %v3797_v30, %v4330_v53 }
 0x586   : > { %v1903_v31 = vpack.c.bf16 %v1895_v54, %v1895_v54 }
 0x587   : > { %v3799_v32 = vpop.eup %3798 }
 0x588   : > { %3670 = vmatmul.mubr.msk.bf16.vlgmr.msra.gmra.mrb[24].mxu0 %vm1910_vm8, %v1903_v31  ;;  %v1897_v35 = vmul.f32 %v3799_v32, %v4334_v57 }
 0x589   : > { %3680 = vmatpush3.bf16.msra.mxu0 %v2159_v33  ;;  %3681 = vmatprep.mubr.msk.bf16.mxu0 %vm3893_vm2, %v3892_v17 }
 0x58a   : > { %3691 = vmatprep.subr.bf16.mxu0 %v3892_v17  ;;  %v1905_v36 = vpack.c.bf16 %v1897_v35, %v1897_v35 }
 0x590   : > { %3682 = vmatmul.mubr.msk.bf16.vlgmr.msra.gmra.mrb[28].mxu0 %vm1910_vm8, %v1905_v36 }
 0x591   : > { %3693 = vmatprep.mubr.msk.bf16.mxu0 %vm3893_vm2, %v3892_v17 }
 0x598   : > { %v1874_v37 = vpop.xlane.xlu0 %1873 }
 0x599   : > { %3800 = vrcp.f32 %v1874_v37 }
 0x59c   : > { %v1880_v43 = vpop.xlane.xlu0 %1879 }
 0x59d   : > { %3802 = vrcp.f32 %v1880_v43 }
 0x5a0   : > { %v2202_v40 = vpop.permute.xlu0 %2201 }
 0x5a1   : > { %v2207_v45 = vand.u32 %v2202_v40, %v4324_v44 }
 0x5a3   : > { %v3801_v38 = vpop.eup %3800 }
 0x5a4   : > { %v1896_v39 = vmul.f32 %v3801_v38, %v4342_v1 }
 0x5a6   : > { %v1904_v41 = vpack.c.bf16 %v1896_v39, %v1896_v39 }
 0x5a7   : > { %v3803_v42 = vpop.eup %3802 }
 0x5a8   : > { %3676 = vmatmul.mubr.msk.bf16.vlgmr.msra.gmra.mrb[24].mxu1 %vm1910_vm8, %v1904_v41  ;;  %v1898_v60 = vmul.f32 %v3803_v42, %v4346_v5 }
 0x5a9   : > { %3686 = vmatpush3.bf16.msra.mxu1 %v2207_v45  ;;  %3687 = vmatprep.mubr.msk.bf16.mxu1 %vm3893_vm2, %v3892_v17 }
 0x5aa   : > { %3697 = vmatprep.subr.bf16.mxu1 %v3892_v17  ;;  %v1906_v47 = vpack.c.bf16 %v1898_v60, %v1898_v60 }
 0x5ac   : > { %v1883_v46 = vpop.xlane.xlu1 %1882 }
 0x5ad   : > { %3804 = vrcp.f32 %v1883_v46 }
 0x5b0   : > { %3688 = vmatmul.mubr.msk.bf16.vlgmr.msra.gmra.mrb[28].mxu1 %vm1910_vm8, %v1906_v47  ;;  %v2250_v48 = vpop.permute.xlu1 %2249 }
 0x5b1   : > { %v2255_v49 = vand.u32 %v2250_v48, %v4324_v44  ;;  %3701 = vmatprep.mubr.msk.bf16.mxu1 %vm3893_vm2, %v3892_v17  ;;  %3698 = vmatpush3.bf16.msra.mxu1 %v3762_v22 }
 0x5b2   : > { %3699 = vmatprep.subr.bf16.mxu1 %v3892_v17 }
 0x5b3   : > { %3692 = vmatpush3.bf16.msra.mxu0 %v2255_v49 }
 0x5b4   : > { %3705 = vmatprep.subr.bf16.mxu0 %v3892_v17 }
 0x5b5   : > { %3700 = vmatpush3.bf16.msra.mxu1 %v3763_v23 }
 0x5b6   : > { %3713 = vmatprep.subr.bf16.mxu1 %v3892_v17 }
 0x5b7   : > { %v3805_v50 = vpop.eup %3804 }
 0x5b8   : > { %v1899_v51 = vmul.f32 %v3805_v50, %v4351_v9 }
 0x5ba   : > { %v1907_v52 = vpack.c.bf16 %v1899_v51, %v1899_v51 }
 0x5bc   : > { %3694 = vmatmul.mubr.msk.bf16.vlgmr.msra.gmra.mrb[32].mxu0 %vm1910_vm8, %v1907_v52 }
 0x5bd   : > { %3709 = vmatprep.mubr.msk.bf16.mxu0 %vm3893_vm2, %v3892_v17 }
 0x5f6   : > { %v1955_v53 = vpop.f32.mrb[16].mxu1 }
 0x5f7   : > { %v3653_v56 = vpop.f32.mrb[17].mxu1 }
 0x5f8   : > { %v1958_v57 = vpop.f32.mrb[18].mxu1 }
 0x5f9   : > { %v3654_v59 = vpop.f32.mrb[19].mxu1 }
 0x626   : > { %v2003_v44 = vpop.f32.mrb[20].mxu0 }
 0x627   : > { %v3659_v61 = vpop.f32.mrb[21].mxu0 }
 0x628   : > { %v2006_v62 = vpop.f32.mrb[22].mxu0 }
 0x629   : > { %v3660_v63 = vpop.f32.mrb[23].mxu0 }
 0x646   : > { %v2051_v0 = vpop.f32.mrb[20].mxu1 }
 0x647   : > { %2299 = vrot.lane.b32.xlu0 %v2051_v0, %s3901_s15  ;;  %v3665_v1 = vpop.f32.mrb[21].mxu1 }
 0x648   : > { %v2054_v4 = vpop.f32.mrb[22].mxu1 }
 0x649   : > { %v3666_v3 = vpop.f32.mrb[23].mxu1 }
 0x65b   : > { %v2099_v5 = vpop.f32.mrb[24].mxu0 }
 0x65c   : > { %2301 = vrot.lane.b32.xlu1 %v2099_v5, %s3901_s15  ;;  %v3671_v58 = vpop.f32.mrb[25].mxu0 }
 0x65d   : > { %v2102_v6 = vpop.f32.mrb[26].mxu0 }
 0x65e   : > { %v3672_v2 = vpop.f32.mrb[27].mxu0 }
 0x663   : > { %v2195_v7 = vpop.f32.mrb[28].mxu0 }
 0x664   : > { %2309 = vrot.lane.b32.xlu1 %v2195_v7, %s3902_s26  ;;  %v3683_v8 = vpop.f32.mrb[29].mxu0 }
 0x665   : > { %v2198_v9 = vpop.f32.mrb[30].mxu0  ;;  %v3514_v8 = vld [vmem:[%s4645_s17] ss:$0 sm:$0xff] }
 0x666   : > { %v3684_v10 = vpop.f32.mrb[31].mxu0 }
 0x67b   : > { %v2147_v11 = vpop.f32.mrb[24].mxu1 }
 0x67c   : > { %2307 = vrot.lane.b32.xlu0 %v2147_v11, %s3902_s26  ;;  %v3677_v12 = vpop.f32.mrb[25].mxu1 }
 0x67d   : > { %v2150_v13 = vpop.f32.mrb[26].mxu1 }
 0x67e   : > { %v3678_v14 = vpop.f32.mrb[27].mxu1 }
 0x683   : > { %v2243_v15 = vpop.f32.mrb[28].mxu1 }
 0x684   : > { %2315 = vrot.lane.b32.xlu0 %v2243_v15, %s3903_s29  ;;  %v3689_v18 = vpop.f32.mrb[29].mxu1 }
 0x685   : > { %v2246_v19 = vpop.f32.mrb[30].mxu1 }
 0x686   : > { %v3690_v20 = vpop.f32.mrb[31].mxu1 }
 0x68f   : > { %v2291_v21 = vpop.f32.mrb[32].mxu0 }
 0x690   : > { %2317 = vrot.lane.b32.xlu1 %v2291_v21, %s3903_s29  ;;  %v3695_v16 = vpop.f32.mrb[33].mxu0 }
 0x691   : > { %v2294_v26 = vpop.f32.mrb[34].mxu0 }
 0x692   : > { %v3696_v24 = vpop.f32.mrb[35].mxu0 }
 0x6b9   : > { %v2300_v25 = vpop.permute.xlu0 %2299 }
 0x6ba   : > { %v2321_v29 = vsel %vm1421_vm4, %v1955_v53, %v2300_v25 }
 0x6ce   : > { %v2302_v31 = vpop.permute.xlu1 %2301 }
 0x6cf   : > { %v2322_v37 = vsel %vm1421_vm4, %v2003_v44, %v2302_v31 }
 0x6d6   : > { %v2310_v33 = vpop.permute.xlu1 %2309 }
 0x6d7   : > { %v2325_v38 = vsel %vm2323_vm10, %v2322_v37, %v2310_v33 }
 0x6ee   : > { %v2308_v27 = vpop.permute.xlu0 %2307 }
 0x6ef   : > { %v2324_v55 = vsel %vm2323_vm10, %v2321_v29, %v2308_v27 }
 0x6f6   : > { %v2316_v28 = vpop.permute.xlu0 %2315 }
 0x6f7   : > { %v2327_v30 = vsel %vm2326_vm9, %v2324_v55, %v2316_v28 }
 0x6f8   : > { %v2338_v54 = vrot.slane %v2327_v30, %v4091_v34  ;;  %v2331_v35 = vcombine.high %v2327_v30, %v2327_v30 }
 0x6fa   : > { %v2346_v32 = vcombine.high %v2338_v54, %v2338_v54  ;;  %v2353_v43 = vrot.slane %v2338_v54, %v4091_v34  ;;  %v2345_v39 = vrot.slane %v2331_v35, %v4091_v34 }
 0x6fc   : > { %v2367_v36 = vrot.slane %v2346_v32, %v4091_v34  ;;  %v2360_v47 = vrot.slane %v2345_v39, %v4091_v34 }
 0x6fe   : > { %v2409_v41 = vcombine.low %v2353_v43, %v2367_v36  ;;  %v3513_v45 = vcombine.high %v2353_v43, %v2367_v36 }
 0x700   : > { %v2419_v51 = vrot.slane %v2409_v41, %v4091_v34  ;;  %v2426_v52 = vrot.slane %v3513_v45, %v4091_v34 }
 0x702   : > { %v2318_v40 = vpop.permute.xlu1 %2317  ;;  %v2441_v62 = vcombine.low %v2419_v51, %v2426_v52  ;;  %v3815_v51 = vld [vmem:[#allocation2 + $0x8] sm:$0x1f] }
 0x703   : > { %v2328_v42 = vsel %vm2326_vm9, %v2325_v38, %v2318_v40 }
 0x704   : > { %v2370_v60 = vcombine.high %v2328_v42, %v2328_v42  ;;  %v2377_v46 = vrot.slane %v2328_v42, %v4091_v34  ;;  %v2449_v5 = vrot.slane %v2441_v62, %v4091_v34 }
 0x706   : > { %v2384_v48 = vrot.slane %v2370_v60, %v4091_v34  ;;  %v2385_v49 = vcombine.high %v2377_v46, %v2377_v46  ;;  %v2392_v50 = vrot.slane %v2377_v46, %v4091_v34  ;;  %v3814_v60 = vld [vmem:[#allocation2] sm:$0x1f] }
 0x708   : > { %v2406_v53 = vrot.slane %v2385_v49, %v4091_v34  ;;  %v2407_v56 = vcombine.high %v2392_v50, %v2392_v50  ;;  %v2411_v57 = vcombine.low %v2360_v47, %v2392_v50  ;;  %v2399_v59 = vrot.slane %v2384_v48, %v4091_v34 }
 0x70a   : > { %v2408_v44 = vcombine.high %v2406_v53, %v2406_v53  ;;  %v2412_v61 = vcombine.low %v2406_v53, %v2407_v56  ;;  %v2433_v63 = vrot.slane %v2411_v57, %v4091_v34 }
 0x70c   : > { %v2440_v0 = vrot.slane %v2412_v61, %v4091_v34  ;;  %v2458_v1 = vcombine.low %v2408_v44, %v2399_v59 }
 0x70e   : > { %v2442_v4 = vcombine.low %v2433_v63, %v2440_v0  ;;  %v2465_v3 = vrot.slane %v2458_v1, %v4091_v34 }
 0x710   : > { %v2456_v58 = vrot.slane %v2442_v4, %v4091_v34  ;;  %v2472_v6 = vrot.slane %v2465_v3, %v4091_v34  ;;  %v3764_v3 = vld [vmem:[%s4044_s3] sm:$0xff]  }
 0x711   : > { %3706 = vmatpush3.bf16.msra.mxu0 %v3764_v3 }
 0x712   : > { %v2457_v2 = vcombine.low %v2449_v5, %v2456_v58  ;;  %v3765_v5 = vld [vmem:[%s4044_s3 + $0x8] sm:$0xff]   ;;  %3707 = vmatprep.subr.bf16.mxu0 %v3892_v17 }
 0x714   : > { %v2475_v7 = vpack.c.bf16 %v2472_v6, %v2457_v2 }
 0x715   : > { %3708 = vmatpush3.bf16.msra.mxu0 %v3765_v5 }
 0x716   : > { %3702 = vmatmul.mubr.msk.bf16.vlgmr.msra.gmra.mrb[32].mxu1 %vm912_vm3, %v2475_v7 }
 0x717   : > { %3721 = vmatprep.mubr.msk.bf16.mxu1 %vm3893_vm2, %v3892_v17 }
 0x7e9   : > { %v2531_v9 = vpop.f32.mrb[32].mxu1 }
 0x7ea   : > { %v2532_v10 = vadd.f32 %v3514_v8, %v2531_v9  ;;  %v3703_v11 = vpop.f32.mrb[33].mxu1 }
 0x7eb   : > { %v2534_v12 = vpop.f32.mrb[34].mxu1  ;;  %v3519_v11 = vld [vmem:[%s659_s14] ss:$0 sm:$0xff] }
 0x7ec   : > { %v2540_v13 = vcombine.high %v2532_v10, %v2532_v10  ;;  %v2547_v14 = vrot.slane %v2532_v10, %v4091_v34  ;;  %v2535_v15 = vadd.f32 %v3514_v8, %v2534_v12  ;;  %v3704_v18 = vpop.f32.mrb[35].mxu1 }
 0x7ee   : > { %v2554_v19 = vrot.slane %v2540_v13, %v4091_v34  ;;  %v2555_v20 = vcombine.high %v2547_v14, %v2547_v14  ;;  %v2595_v21 = vrot.slane %v2535_v15, %v4091_v34  ;;  %v2563_v22 = vrot.slane %v2547_v14, %v4091_v34  ;;  %v3520_v13 = vld [vmem:[%s662_s18] ss:$0 sm:$0xff] }
 0x7f0   : > { %v2556_v16 = vcombine.high %v2554_v19, %v2554_v19  ;;  %v2570_v26 = vrot.slane %v2554_v19, %v4091_v34  ;;  %v2577_v23 = vrot.slane %v2555_v20, %v4091_v34  ;;  %v2596_v24 = vcombine.high %v2595_v21, %v2595_v21 }
 0x7f1   : > { %v2603_v30 = vrot.slane %v2595_v21, %v4091_v34 }
 0x7f2   : > { %v2584_v25 = vrot.slane %v2556_v16, %v4091_v34  ;;  %v2586_v27 = vcombine.high %v2570_v26, %v2570_v26  ;;  %v2611_v29 = vcombine.low %v2563_v22, %v2577_v23  ;;  %v3518_v55 = vcombine.high %v2563_v22, %v2577_v23 }
 0x7f3   : > { %v2633_v28 = vrot.slane %v2570_v26, %v4091_v34  ;;  %v2610_v54 = vrot.slane %v2596_v24, %v4091_v34 }
 0x7f4   : > { %v2619_v31 = vrot.slane %v2611_v29, %v4091_v34  ;;  %v2626_v32 = vrot.slane %v3518_v55, %v4091_v34  ;;  %v2650_v33 = vcombine.low %v2584_v25, %v2586_v27  ;;  %v2588_v35 = vcombine.high %v2584_v25, %v2584_v25 }
 0x7f5   : > { %v2672_v43 = vrot.slane %v2610_v54, %v4091_v34  ;;  %v2648_v41 = vrot.slane %v2633_v28, %v4091_v34 }
 0x7f6   : > { %v2634_v36 = vcombine.low %v2619_v31, %v2626_v32  ;;  %v2651_v37 = vcombine.low %v2588_v35, %v2603_v30  ;;  %v2658_v38 = vrot.slane %v2650_v33, %v4091_v34 }
 0x7f7   : > { %v2687_v48 = vrot.slane %v2672_v43, %v4091_v34 }
 0x7f8   : > { %v2665_v39 = vrot.slane %v2651_v37, %v4091_v34  ;;  %v2641_v40 = vrot.slane %v2634_v36, %v4091_v34 }
 0x7fa   : > { %v2673_v42 = vcombine.low %v2658_v38, %v2665_v39  ;;  %v2649_v45 = vcombine.low %v2641_v40, %v2648_v41 }
 0x7fc   : > { %v4456_v46 = vadd.f32 %v3814_v60, %v2649_v45  ;;  %v2680_v47 = vrot.slane %v2673_v42, %v4091_v34 }
 0x7fe   : > { %v2695_v49 = vsel %vm693_vm1, %v4456_v46, 0.0  ;;  %v2688_v50 = vcombine.low %v2680_v47, %v2687_v48 }
 0x7ff   : > { %2696 = vadd.xlane.f32.xlu0 %v2695_v49 }
 0x800   : > { %v4462_v52 = vadd.f32 %v3815_v51, %v2688_v50 }
 0x802   : > { %v2698_v53 = vsel %vm693_vm1, %v4462_v52, 0.0 }
 0x803   : > { %2699 = vadd.xlane.f32.xlu1 %v2698_v53 }
 0x88c   : > { %v2697_v56 = vpop.xlane.xlu0 %2696 }
 0x88d   : > { %v2701_v57 = vmul.f32 0.03125, %v2697_v56 }
 0x88f   : > { %v2703_v59 = vsub.f32 %v4456_v46, %v2701_v57  ;;  %v3766_v57 = vld [vmem:[%s4054_s27] sm:$0xff]  }
 0x890   : > { %v2700_v44 = vpop.xlane.xlu1 %2699  ;;  %3714 = vmatpush3.bf16.msra.mxu1 %v3766_v57 }
 0x891   : > { %v2702_v61 = vmul.f32 0.03125, %v2700_v44  ;;  %v2705_v62 = vmul.f32 %v2703_v59, %v2703_v59  ;;  %3715 = vmatprep.subr.bf16.mxu1 %v3892_v17  ;;  %v3768_v44 = vld [vmem:[%s4054_s27 + $0x10] sm:$0xff]  }
 0x893   : > { %v2704_v63 = vsub.f32 %v4462_v52, %v2702_v61  ;;  %v2707_v0 = vsel %vm693_vm1, %v2705_v62, 0.0  ;;  %v3769_v61 = vld [vmem:[%s4054_s27 + $0x18] sm:$0xff]   ;;  %v3522_v62 = vld [vmem:[%s670_s5] ss:$0 sm:$0xff] }
 0x894   : > { %2708 = vadd.xlane.f32.xlu0 %v2707_v0 }
 0x895   : > { %v2706_v1 = vmul.f32 %v2704_v63, %v2704_v63 }
 0x897   : > { %v2710_v4 = vsel %vm693_vm1, %v2706_v1, 0.0 }
 0x898   : > { %2711 = vadd.xlane.f32.xlu0 %v2710_v4 }
 0x921   : > { %v2709_v58 = vpop.xlane.xlu0 %2708 }
 0x922   : > { %v2713_v6 = vmul.f32 0.03125, %v2709_v58 }
 0x924   : > { %v2715_v2 = vadd.f32 1e-05, %v2713_v6 }
 0x925   : > { %v2712_v7 = vpop.xlane.xlu0 %2711 }
 0x926   : > { %3806 = vrsqrt.f32 %v2715_v2  ;;  %v2714_v8 = vmul.f32 0.03125, %v2712_v7 }
 0x928   : > { %v2716_v9 = vadd.f32 1e-05, %v2714_v8 }
 0x92a   : > { %3808 = vrsqrt.f32 %v2716_v9 }
 0x930   : > { %v3807_v10 = vpop.eup %3806 }
 0x931   : > { %v2719_v12 = vmul.f32 %v3807_v10, %v2703_v59  ;;  %v3767_v59 = vld [vmem:[%s4054_s27 + $0x8] sm:$0xff]  }
 0x932   : > { %3716 = vmatpush3.bf16.msra.mxu1 %v3767_v59 }
 0x933   : > { %v2727_v14 = vmul.f32 %v3519_v11, %v2719_v12  ;;  %3717 = vmatprep.subr.bf16.mxu1 %v3892_v17 }
 0x934   : > { %v3809_v15 = vpop.eup %3808 }
 0x935   : > { %v2735_v18 = vadd.f32 %v3520_v13, %v2727_v14  ;;  %v2720_v19 = vmul.f32 %v3809_v15, %v2704_v63 }
 0x936   : > { %3718 = vmatpush3.bf16.msra.mxu1 %v3768_v44 }
 0x937   : > { %v2739_v20 = vcombine.high %v2735_v18, %v2735_v18  ;;  %v2746_v21 = vrot.slane %v2735_v18, %v4091_v34  ;;  %v2728_v22 = vmul.f32 %v3519_v11, %v2720_v19  ;;  %3719 = vmatprep.subr.bf16.mxu1 %v3892_v17 }
 0x939   : > { %v2753_v16 = vrot.slane %v2739_v20, %v4091_v34  ;;  %v2754_v26 = vcombine.high %v2746_v21, %v2746_v21  ;;  %v2736_v23 = vadd.f32 %v3520_v13, %v2728_v22  ;;  %v2761_v24 = vrot.slane %v2746_v21, %v4091_v34 }
 0x93a   : > { %3720 = vmatpush3.bf16.msra.mxu1 %v3769_v61 }
 0x93b   : > { %v2775_v25 = vrot.slane %v2754_v26, %v4091_v34  ;;  %v2778_v27 = vcombine.high %v2736_v23, %v2736_v23  ;;  %v2785_v29 = vrot.slane %v2736_v23, %v4091_v34  ;;  %v2768_v55 = vrot.slane %v2753_v16, %v4091_v34  ;;  %v3526_v26 = vld [vmem:[%s678_s0] ss:$0 sm:$0xff] }
 0x93d   : > { %v2792_v28 = vrot.slane %v2778_v27, %v4091_v34  ;;  %v2793_v30 = vcombine.high %v2785_v29, %v2785_v29  ;;  %v2800_v54 = vrot.slane %v2785_v29, %v4091_v34  ;;  %v2822_v31 = vcombine.low %v2761_v24, %v2775_v25 }
 0x93e   : > { %v3521_v32 = vcombine.high %v2761_v24, %v2775_v25 }
 0x93f   : > { %v2814_v33 = vrot.slane %v2793_v30, %v4091_v34  ;;  %v2815_v35 = vcombine.high %v2800_v54, %v2800_v54  ;;  %v2824_v36 = vcombine.low %v2768_v55, %v2800_v54  ;;  %v2832_v37 = vrot.slane %v2822_v31, %v4091_v34 }
 0x940   : > { %v2839_v43 = vrot.slane %v3521_v32, %v4091_v34  ;;  %v2807_v38 = vrot.slane %v2792_v28, %v4091_v34 }
 0x941   : > { %v2816_v39 = vcombine.high %v2814_v33, %v2814_v33  ;;  %v2825_v40 = vcombine.low %v2814_v33, %v2815_v35  ;;  %v2846_v41 = vrot.slane %v2824_v36, %v4091_v34 }
 0x942   : > { %v2854_v45 = vcombine.low %v2832_v37, %v2839_v43 }
 0x943   : > { %v2853_v42 = vrot.slane %v2825_v40, %v4091_v34  ;;  %v2871_v60 = vcombine.low %v2816_v39, %v2807_v38 }
 0x944   : > { %v2862_v49 = vrot.slane %v2854_v45, %v4091_v34 }
 0x945   : > { %v2855_v47 = vcombine.low %v2846_v41, %v2853_v42  ;;  %v2878_v48 = vrot.slane %v2871_v60, %v4091_v34 }
 0x947   : > { %v2869_v50 = vrot.slane %v2855_v47, %v4091_v34  ;;  %v2885_v53 = vrot.slane %v2878_v48, %v4091_v34 }
 0x949   : > { %v2870_v51 = vcombine.low %v2862_v49, %v2869_v50 }
 0x94b   : > { %v2888_v56 = vpack.c.bf16 %v2885_v53, %v2870_v51 }
 0x94d   : > { %3710 = vmatmul.mubr.msk.bf16.vlgmr.msra.gmra.mrb[36].mxu0 %vm912_vm3, %v2888_v56 }
 0xa20   : > { %v2944_v63 = vpop.f32.mrb[36].mxu0 }
 0xa21   : > { %v2945_v0 = vadd.f32 %v3522_v62, %v2944_v63  ;;  %v3711_v1 = vpop.f32.mrb[37].mxu0 }
 0xa22   : > { %v2947_v4 = vpop.f32.mrb[38].mxu0 }
 0xa23   : > { %v2953_v3 = vmul.f32 0.044715, %v2945_v0  ;;  %v2948_v5 = vadd.f32 %v3522_v62, %v2947_v4  ;;  %v3712_v58 = vpop.f32.mrb[39].mxu0  ;;  %v2951_v18 = vmul.f32 0.5, %v2945_v0 }
 0xa25   : > { %v2955_v6 = vmul.f32 %v2953_v3, %v2945_v0  ;;  %v2954_v2 = vmul.f32 0.044715, %v2948_v5  ;;  %v2952_v19 = vmul.f32 0.5, %v2948_v5 }
 0xa27   : > { %v2957_v7 = vmul.f32 %v2955_v6, %v2945_v0  ;;  %v2956_v8 = vmul.f32 %v2954_v2, %v2948_v5 }
 0xa29   : > { %v2959_v9 = vadd.f32 %v2957_v7, %v2945_v0  ;;  %v2958_v10 = vmul.f32 %v2956_v8, %v2948_v5 }
 0xa2b   : > { %v2961_v17 = vmul.f32 0.7978846, %v2959_v9  ;;  %v2960_v11 = vadd.f32 %v2958_v10, %v2948_v5 }
 0xa2d   : > { %3810 = vtanh.f32 %v2961_v17  ;;  %v2962_v12 = vmul.f32 0.7978846, %v2960_v11 }
 0xa2f   : > { %3812 = vtanh.f32 %v2962_v12 }
 0xa37   : > { %v3811_v13 = vpop.eup %3810 }
 0xa38   : > { %v2965_v14 = vadd.f32 1.0, %v3811_v13 }
 0xa39   : > { %v3813_v15 = vpop.eup %3812 }
 0xa3a   : > { %v2966_v20 = vadd.f32 1.0, %v3813_v15  ;;  %v2967_v21 = vmul.f32 %v2965_v14, %v2951_v18 }
 0xa3c   : > { %v2968_v22 = vmul.f32 %v2966_v20, %v2952_v19 }
 0xa3e   : > { %v2978_v16 = vpack.c.bf16 %v2968_v22, %v2967_v21 }
 0xa40   : > { %3722 = vmatmul.mubr.msk.bf16.vlgmr.msra.gmra.mrb[36].mxu1 %vm3009_vm11, %v2978_v16 }
 0xb13   : > { %v3047_v23 = vpop.f32.mrb[36].mxu1 }
 0xb14   : > { %v3048_v24 = vadd.f32 %v3526_v26, %v3047_v23  ;;  %v3723_v25 = vpop.f32.mrb[37].mxu1 }
 0xb15   : > { %v3050_v27 = vpop.f32.mrb[38].mxu1 }
 0xb16   : > { %v3056_v29 = vcombine.high %v3048_v24, %v3048_v24  ;;  %v3063_v55 = vrot.slane %v3048_v24, %v4091_v34  ;;  %v3051_v28 = vadd.f32 %v3526_v26, %v3050_v27  ;;  %v3724_v30 = vpop.f32.mrb[39].mxu1 }
 0xb18   : > { %v3070_v54 = vrot.slane %v3056_v29, %v4091_v34  ;;  %v3071_v31 = vcombine.high %v3063_v55, %v3063_v55  ;;  %v3111_v32 = vrot.slane %v3051_v28, %v4091_v34  ;;  %v3079_v33 = vrot.slane %v3063_v55, %v4091_v34 }
 0xb1a   : > { %v3072_v35 = vcombine.high %v3070_v54, %v3070_v54  ;;  %v3086_v36 = vrot.slane %v3070_v54, %v4091_v34  ;;  %v3093_v37 = vrot.slane %v3071_v31, %v4091_v34  ;;  %v3112_v43 = vcombine.high %v3111_v32, %v3111_v32 }
 0xb1b   : > { %v3119_v45 = vrot.slane %v3111_v32, %v4091_v34 }
 0xb1c   : > { %v3100_v38 = vrot.slane %v3072_v35, %v4091_v34  ;;  %v3102_v39 = vcombine.high %v3086_v36, %v3086_v36  ;;  %v3127_v40 = vcombine.low %v3079_v33, %v3093_v37  ;;  %v3532_v41 = vcombine.high %v3079_v33, %v3093_v37 }
 0xb1d   : > { %v3149_v42 = vrot.slane %v3086_v36, %v4091_v34  ;;  %v3126_v60 = vrot.slane %v3112_v43, %v4091_v34 }
 0xb1e   : > { %v3135_v47 = vrot.slane %v3127_v40, %v4091_v34  ;;  %v3142_v48 = vrot.slane %v3532_v41, %v4091_v34  ;;  %v3166_v49 = vcombine.low %v3100_v38, %v3102_v39  ;;  %v3104_v50 = vcombine.high %v3100_v38, %v3100_v38 }
 0xb1f   : > { %v3164_v56 = vrot.slane %v3149_v42, %v4091_v34  ;;  %v3188_v61 = vrot.slane %v3126_v60, %v4091_v34 }
 0xb20   : > { %v3150_v51 = vcombine.low %v3135_v47, %v3142_v48  ;;  %v3167_v53 = vcombine.low %v3104_v50, %v3119_v45  ;;  %v3174_v59 = vrot.slane %v3166_v49, %v4091_v34 }
 0xb21   : > { %v3203_v4 = vrot.slane %v3188_v61, %v4091_v34 }
 0xb22   : > { %v3157_v57 = vrot.slane %v3150_v51, %v4091_v34  ;;  %v3181_v44 = vrot.slane %v3167_v53, %v4091_v34 }
 0xb24   : > { %v3165_v62 = vcombine.low %v3157_v57, %v3164_v56  ;;  %v3189_v63 = vcombine.low %v3174_v59, %v3181_v44  ;;  %3212 = sbr.rel (%p3533_p5) target bundleno = 2861 (0xb2d), region = 88 }
 0xb26   : > { %v3207_v0 = vadd.f32 %v3165_v62, %v4456_v46  ;;  %v3196_v1 = vrot.slane %v3189_v63, %v4091_v34 }
 0xb28   : > { %v3204_v3 = vcombine.low %v3196_v1, %v3203_v4  ;;  %3213 = vst.msk [vmem:[#allocation2] sm:$0x1f] (!%p3533_p5), %vm693_vm1, %v3207_v0 }
 0xb2a   : > { %v3208_v5 = vadd.f32 %v3204_v3, %v4462_v52 }
 0xb2c   : > { %3214 = vst.msk [vmem:[#allocation2 + $0x8] sm:$0x1f] %vm693_vm1, %v3208_v5 }
 0xb2d PF: > { %p3534_p6 = scmp.ne.s32.totalorder %s3998_s22, 1 }
 0xb2e   : > { %v3224_v46 = vsel (!%p3534_p6), %vm693_vm1, %v3208_v5, 0.0  ;;  %v3221_v34 = vsel (!%p3534_p6), %vm693_vm1, %v3207_v0, 0.0  ;;  %s4646_s13 = sld [smem:[#allocation12_spill]] (!%p3534_p6)  ;;  %s4647_s26 = sld [smem:[#allocation13_spill]] (!%p3534_p6)  ;;  %vm3270_vm12 = vcmask (!%p3534_p6), 1041409   ;;  %vm3273_vm13 = vcmask (!%p3534_p6), 254976  }
 0xb2f   : > { %3218 = sbr.rel (%p3534_p6) target bundleno = 3361 (0xd21), region = 92  ;;  %3225 = vadd.xlane.f32.xlu0 (!%p3534_p6), %v3224_v46 }
 0xb33   : > { %3222 = vadd.xlane.f32.xlu0 (!%p3534_p6), %v3221_v34 }
 0xb34   : > { %v3535_v21 = vld [vmem:[%s4646_s13] ss:$0 sm:$0xff] (!%p3534_p6) }
 0xb35   : > { %v3536_v16 = vld [vmem:[%s4647_s26] ss:$0 sm:$0xff] (!%p3534_p6) }
 0xbbc   : > { %v3226_v52 = vpop.xlane.xlu0 %3225 }
 0xbbd   : > { %v3228_v58 = vmul.f32 0.03125, %v3226_v52 }
 0xbbf   : > { %v3230_v6 = vsub.f32 %v3208_v5, %v3228_v58 }
 0xbc0   : > { %v3223_v2 = vpop.xlane.xlu0 %3222 }
 0xbc1   : > { %v3227_v7 = vmul.f32 0.03125, %v3223_v2  ;;  %v3232_v8 = vmul.f32 %v3230_v6, %v3230_v6 }
 0xbc3   : > { %v3229_v9 = vsub.f32 %v3207_v0, %v3227_v7  ;;  %v3236_v10 = vsel %vm693_vm1, %v3232_v8, 0.0 }
 0xbc4   : > { %3237 = vadd.xlane.f32.xlu1 %v3236_v10 }
 0xbc5   : > { %v3231_v17 = vmul.f32 %v3229_v9, %v3229_v9 }
 0xbc7   : > { %v3233_v11 = vsel %vm693_vm1, %v3231_v17, 0.0 }
 0xbc8   : > { %3234 = vadd.xlane.f32.xlu1 %v3233_v11 }
 0xc51   : > { %v3238_v12 = vpop.xlane.xlu1 %3237 }
 0xc52   : > { %v3240_v13 = vmul.f32 0.03125, %v3238_v12 }
 0xc54   : > { %v3242_v14 = vadd.f32 1e-05, %v3240_v13 }
 0xc55   : > { %v3235_v15 = vpop.xlane.xlu1 %3234 }
 0xc56   : > { %3816 = vrsqrt.f32 %v3242_v14  ;;  %v3239_v18 = vmul.f32 0.03125, %v3235_v15 }
 0xc58   : > { %v3241_v19 = vadd.f32 1e-05, %v3239_v18 }
 0xc5a   : > { %3818 = vrsqrt.f32 %v3241_v19 }
 0xc60   : > { %v3817_v20 = vpop.eup %3816 }
 0xc61   : > { %v3246_v22 = vmul.f32 %v3817_v20, %v3230_v6 }
 0xc63   : > { %v3254_v26 = vmul.f32 %v3535_v21, %v3246_v22 }
 0xc64   : > { %v3819_v23 = vpop.eup %3818 }
 0xc65   : > { %v3245_v24 = vmul.f32 %v3819_v23, %v3229_v9  ;;  %v3262_v25 = vadd.f32 %v3536_v16, %v3254_v26 }
 0xc67   : > { %v3253_v27 = vmul.f32 %v3535_v21, %v3245_v24  ;;  %3264 = vst.msk [vmem:[#allocation2 + $0x8] sm:$0x1f] %vm693_vm1, %v3262_v25  ;;  %v3266_v29 = vmul.f32 %v3262_v25, %v3262_v25 }
 0xc69   : > { %v3261_v55 = vadd.f32 %v3536_v16, %v3253_v27  ;;  %v3269_v30 = vrot.slane %v3266_v29, 7 }
 0xc6b   : > { %v3265_v28 = vmul.f32 %v3261_v55, %v3261_v55  ;;  %3263 = vst.msk [vmem:[#allocation2] sm:$0x1f] %vm693_vm1, %v3261_v55 }
 0xc6d   : > { %v3271_v54 = vsel %vm3270_vm12, %v3269_v30, %v3265_v28 }
 0xc6e   : > { %v3274_v31 = vsel %vm3273_vm13, %v3271_v54, 0.0 }
 0xc6f   : > { %3275 = vadd.xlane.f32.xlu0 %v3274_v31 }
 0xcfc   : > { %v3276_v32 = vpop.xlane.xlu0 %3275 }
 0xcfd   : > { %3820 = vrsqrt.f32 %v3276_v32  ;;  %vm3279_vm14 = vcmp.eq.f32.partialorder %v3276_v32, inf  ;;  %v3282_v36 = vand.u32 2147483648, %v3276_v32  ;;  %vm3281_vm15 = vcmp.eq.f32.partialorder %v3276_v32, 0.0 }
 0xd07   : > { %v3821_v33 = vpop.eup %3820 }
 0xd08   : > { %v3278_v35 = vmul.f32 %v3821_v33, %v3276_v32 }
 0xd0a   : > { %v3280_v37 = vsel %vm3279_vm14, %v3276_v32, %v3278_v35 }
 0xd0b   : > { %v3283_v43 = vsel %vm3281_vm15, %v3282_v36, %v3280_v37 }
 0xd0c   : > { %v3284_v38 = vmax.f32 %v3283_v43, 1e-12 }
 0xd0e   : > { %3822 = vrcp.f32 %v3284_v38 }
 0xd18   : > { %v3823_v39 = vpop.eup %3822 }
 0xd19   : > { %v3287_v40 = vrot.slane %v3823_v39, 1  ;;  %v3290_v42 = vmul.f32 %v3823_v39, %v3261_v55 }
 0xd1b   : > { %v3291_v41 = vmul.f32 %v3287_v40, %v3262_v25 }
 0xd1d   : > { %v3294_v45 = vrot.slane %v3291_v41, 7 }
 0xd1f   : > { %v3295_v60 = vsel %vm3270_vm12, %v3294_v45, %v3290_v42 }
 0xd20   : > { %3297 = vst.msk [vmem:[#allocation4] sm:$0x3] %vm3273_vm13, %v3295_v60 }
 0xd21 PF: > { %s3904_s29 = smov [#allocation2]   ;;  %s3905_s28 = smov [#allocation4]  }
 0xd22   : > { %s3304_s16 = sshll.u32 %s3904_s29, 4  ;;  %s3318_s17 = sshll.u32 %s3905_s28, 4  ;;  %s3305_s16 = int_to_ptr.vmem [resolvable:$true] %s3304_s16  ;;  %s3319_s17 = int_to_ptr.vmem [resolvable:$true] %s3318_s17 }
 0xd23   : > { %s3824_s30 = scalar_lea.vmem %s3305_s16, 256  ;;  %p3831_p10 = scmp.lt.s32.totalorder %s3305_s16, %s3305_s16 }
 0xd24   : > { %p3825_p7 = scmp.ne.s32.totalorder %s3305_s16, %s3824_s30  ;;  %p3832_p11 = scmp.lt.s32.totalorder %s3824_s30, %s3824_s30 }
 0xd26   : > { %p3826_p8 = pnand %p3825_p7, %p3533_p5  ;;  %p3833_p12 = por %p3832_p11, %p3831_p10 }
 0xd28   : > { %p3827_p9 = pneg %p3826_p8 }
 0xd2a   : > { %p3834_p13 = pnand %p3833_p12, %p3827_p9 }
 0xd2c   : > { %3837 = shalt.err (!%p3834_p13)
}
 0xd2d   : > { %s4648_s3 = sld [smem:[#allocation14_spill]] }
 0xd33   : > { %s3838_s14 = scalar_lea.hbm %s4648_s3, 256 }
 0xd34   : > { %p3839_p0 = scmp.ne.s32.totalorder %s4648_s3, %s3838_s14  ;;  %p3844_p3 = scmp.lt.u32.totalorder %s3838_s14, %s4648_s3 }
 0xd36   : > { %p3840_p1 = pnand %p3839_p0, %p3533_p5 }
 0xd38   : > { %p3841_p2 = pneg %p3840_p1 }
 0xd3a   : > { %p3846_p4 = pnand %p3844_p3, %p3841_p2 }
 0xd3c   : > { %3849 = shalt.err (!%p3846_p4)
}
 0xd3d   : > { %s3906_s0 = smov 128   ;;  %s3850_s25 = scalar_lea.vmem %s3319_s17, 32 }
 0xd3e   : > { %3726 = dma.vmem_to_hbm [thread:$0]  (%p3533_p5), %s3305_s16, 256, %s4648_s3, [#allocation3], %s3906_s0, %s3906_s0, %s3901_s15  }
 0xd3f   : > { %p3851_p6 = scmp.ne.s32.totalorder %s3319_s17, %s3850_s25  ;;  %p3857_p9 = scmp.lt.s32.totalorder %s3319_s17, %s3319_s17 }
 0xd40   : > { %p3858_p10 = scmp.lt.s32.totalorder %s3850_s25, %s3850_s25 }
 0xd41   : > { %p3852_p7 = pnand %p3851_p6, %p3533_p5 }
 0xd42   : > { %p3859_p11 = por %p3858_p10, %p3857_p9 }
 0xd43   : > { %p3853_p8 = pneg %p3852_p7 }
 0xd45   : > { %p3860_p12 = pnand %p3859_p11, %p3853_p8 }
 0xd47   : > { %3863 = shalt.err (!%p3860_p12)
}
 0xd48   : > { %s4649_s28 = sld [smem:[#allocation15_spill]] }
 0xd4e   : > { %s3864_s30 = scalar_lea.hbm %s4649_s28, 32 }
 0xd4f   : > { %p3865_p13 = scmp.ne.s32.totalorder %s4649_s28, %s3864_s30  ;;  %p3870_p2 = scmp.lt.u32.totalorder %s3864_s30, %s4649_s28 }
 0xd51   : > { %p3866_p0 = pnand %p3865_p13, %p3533_p5 }
 0xd53   : > { %p3867_p1 = pneg %p3866_p0 }
 0xd55   : > { %p3872_p3 = pnand %p3870_p2, %p3867_p1 }
 0xd57   : > { %3875 = shalt.err (!%p3872_p3)
}
 0xd58   : > { %3728 = dma.vmem_to_hbm [thread:$0]  (%p3533_p5), %s3319_s17, 32, %s4649_s28, [#allocation5]  }
 0xd59   : > { %3881 = dma.done.wait (%p3533_p5), [#allocation3], 256  }
 0xd5a   : > { %3883 = vsyncadd (%p3533_p5), [#allocation3], 4294967040 }
 0xd5b   : > { %3885 = dma.done.wait (%p3533_p5), [#allocation5], 32  }
 0xd5c   : > { %3887 = vsyncadd (%p3533_p5), [#allocation5], 4294967264 }
 0xd5d PF: > { %s4650_s5 = sld [smem:[#allocation8_spill]] }
 0xd63   : > { %s29_s21 = sadd.s32 1, %s4650_s5  }
 0xd64   : > { %p26_p4 = scmp.ge.s32.totalorder %s29_s21, 4  }
 0xd66   :  { %28 = sbr.rel (!%p26_p4) target bundleno = 10 (0xa), region = 160 }
 0xd6d   :  { %3335 = vsyncpa [#allocation3], 1 }
 0xd6e   :  { %3337 = vsyncpa [#allocation3 + $0x1], 1 }
 0xd6f   :  { %3338 = vsyncpa [#allocation5], 1 }

</bundles_post_ra>
